<compile_context>
chip_gen: v5e
topology: v5e:2x2
jax: 0.10.0
libtpu: 0.0.40
codegen_flags: <defaults>
</compile_context>

<pallas_src>
import jax
import jax.numpy as jnp
from jax.experimental import pallas as pl
from jax.experimental.pallas import tpu as pltpu


def _round_up(x, m):
    return ((x + m - 1) // m) * m


# ---------------------------------------------------------------------------
# Fused kernel: conv1 -> ReLU -> conv2 -> ReLU -> flatten -> fc1 -> ReLU
#               -> fc2 -> ReLU    (everything as MXU matmuls)
# x_ref   : (TB, 400)     f32   input block, 20x20 flattened row-major
# w1_ref  : (400, 768)          conv1 lowered to a dense matrix, out in (h,w,c)
# b1_ref  : (1, 768)      f32
# w2_ref  : (768, 1440)         conv2 lowered to a dense matrix, out in (h,w,c)
# b2_ref  : (1, 1440)     f32
# fw1_ref : (1440, 50)          fc1 weight, rows pre-permuted to (h,w,c) order
# fb1_ref : (1, 50)       f32
# fw2_ref : (50, 10)
# fb2_ref : (1, 10)       f32
# o_ref   : (TB, 10)      f32
# ---------------------------------------------------------------------------
def cnn_kernel(x_ref, w1_ref, b1_ref, w2_ref, b2_ref,
               fw1_ref, fb1_ref, fw2_ref, fb2_ref, o_ref):
    w1 = w1_ref[...]
    w2 = w2_ref[...]
    fw1 = fw1_ref[...]
    fw2 = fw2_ref[...]
    wdt = w1.dtype

    # conv1 + ReLU
    h1 = jnp.dot(x_ref[...].astype(wdt), w1, preferred_element_type=jnp.float32)
    h1 = jnp.maximum(h1 + b1_ref[...], 0.0)            # (TB, 768)

    # conv2 + ReLU
    h2 = jnp.dot(h1.astype(wdt), w2, preferred_element_type=jnp.float32)
    h2 = jnp.maximum(h2 + b2_ref[...], 0.0)             # (TB, 1440)

    # fc1 + ReLU
    z1 = jnp.dot(h2.astype(wdt), fw1, preferred_element_type=jnp.float32)
    z1 = jnp.maximum(z1 + fb1_ref[...], 0.0)             # (TB, 50)

    # fc2 + ReLU
    z2 = jnp.dot(z1.astype(wdt), fw2, preferred_element_type=jnp.float32)
    o_ref[...] = jnp.maximum(z2 + fb2_ref[...], 0.0)      # (TB, 10)


def prepare_params(params, mxu_dtype=jnp.float32):
    """One-time weight preprocessing (hoisted out of the forward path).

    Lowers both convolutions to dense matrices (identity-image trick) so the
    kernel is pure MXU matmuls.  mxu_dtype=jnp.bfloat16 halves weight
    footprint / doubles MXU rate on v6e/v7x (f32 accumulation); default f32
    for exact reference numerics.
    """
    w1, b1, w2, b2, fw1, fb1, fw2, fb2 = params

    # conv1: (cout=3, cin=1, 5, 5) -> dense (400, 768), output flat in (h,w,c).
    eye1 = jnp.eye(400, dtype=jnp.float32).reshape(400, 1, 20, 20)
    dn1 = jax.lax.conv_dimension_numbers(eye1.shape, w1.shape,
                                         ("NCHW", "OIHW", "NCHW"))
    w1_mat = jax.lax.conv_general_dilated(eye1, w1, (1, 1), "VALID",
                                          dimension_numbers=dn1)
    w1_mat = jnp.transpose(w1_mat, (0, 2, 3, 1)).reshape(400, 768)
    b1_row = jnp.tile(b1, 16 * 16).reshape(1, 768)       # (h,w,c): c fastest

    # conv2: (cout=10, cin=3, 5, 5) -> dense (768, 1440); input/output (h,w,c).
    eye2 = jnp.eye(768, dtype=jnp.float32).reshape(768, 16, 16, 3)
    eye2 = jnp.transpose(eye2, (0, 3, 1, 2))              # -> NCHW
    dn2 = jax.lax.conv_dimension_numbers(eye2.shape, w2.shape,
                                         ("NCHW", "OIHW", "NCHW"))
    w2_mat = jax.lax.conv_general_dilated(eye2, w2, (1, 1), "VALID",
                                          dimension_numbers=dn2)
    w2_mat = jnp.transpose(w2_mat, (0, 2, 3, 1)).reshape(768, 1440)
    b2_row = jnp.tile(b2, 12 * 12).reshape(1, 1440)

    # fc1: permute the 1440-wide input axis from PyTorch's (c,h,w) flatten
    # order to the kernel's (h,w,c) order, then transpose to (in, out).
    fw1_mat = jnp.transpose(fw1.reshape(50, 10, 12, 12), (2, 3, 1, 0))
    fw1_mat = fw1_mat.reshape(1440, 50)
    fw2_mat = jnp.transpose(fw2, (1, 0))                  # (50, 10)

    return (w1_mat.astype(mxu_dtype), b1_row.astype(jnp.float32),
            w2_mat.astype(mxu_dtype), b2_row.astype(jnp.float32),
            fw1_mat.astype(mxu_dtype), fb1.reshape(1, 50).astype(jnp.float32),
            fw2_mat.astype(mxu_dtype), fb2.reshape(1, 10).astype(jnp.float32))


def cnn_forward(x_nchw, kparams, *, block_batch=128):
    """Forward pass matching the PyTorch CNN.forward semantics.

    x_nchw : (N, 1, 20, 20) float32
    kparams: output of prepare_params()
    returns: (N, 10) float32
    """
    w1_m, b1_r, w2_m, b2_r, fw1_m, fb1_r, fw2_m, fb2_r = kparams
    n = x_nchw.shape[0]
    # cin == 1: NCHW flatten == row-major (20,20) flatten, matching W1_mat rows.
    x = x_nchw.reshape(n, 400).astype(jnp.float32)

    tb = min(block_batch, _round_up(n, 8))
    tb = _round_up(tb, 8)
    n_pad = _round_up(n, tb)
    if n_pad != n:
        x = jnp.pad(x, ((0, n_pad - n), (0, 0)))

    grid = (n_pad // tb,)
    full = lambda a: pl.BlockSpec(a.shape, lambda i, _nd=a.ndim: (0,) * _nd)

    out = pl.pallas_call(
        cnn_kernel,
        out_shape=jax.ShapeDtypeStruct((n_pad, 10), jnp.float32),
        grid=grid,
        in_specs=[
            pl.BlockSpec((tb, 400), lambda i: (i, 0)),    # x, batch tiled
            full(w1_m), full(b1_r),
            full(w2_m), full(b2_r),
            full(fw1_m), full(fb1_r),
            full(fw2_m), full(fb2_r),
        ],
        out_specs=pl.BlockSpec((tb, 10), lambda i: (i, 0)),
        compiler_params=pltpu.CompilerParams(
            dimension_semantics=("parallel",),
            vmem_limit_bytes=32 * 1024 * 1024,
        ),
    )(x, w1_m, b1_r, w2_m, b2_r, fw1_m, fb1_r, fw2_m, fb2_r)

    return out[:n] if n_pad != n else out


def make_params(key):
    """Deterministic parameter init (PyTorch layout/shapes)."""
    ks = jax.random.split(key, 8)
    scale = 0.1
    w1 = scale * jax.random.normal(ks[0], (3, 1, 5, 5), jnp.float32)     # conv1.weight
    b1 = scale * jax.random.normal(ks[1], (3,), jnp.float32)             # conv1.bias
    w2 = scale * jax.random.normal(ks[2], (10, 3, 5, 5), jnp.float32)    # conv2.weight
    b2 = scale * jax.random.normal(ks[3], (10,), jnp.float32)            # conv2.bias
    fw1 = scale * jax.random.normal(ks[4], (50, 10 * 12 * 12), jnp.float32)  # fc1.weight
    fb1 = scale * jax.random.normal(ks[5], (50,), jnp.float32)               # fc1.bias
    fw2 = scale * jax.random.normal(ks[6], (10, 50), jnp.float32)            # fc2.weight
    fb2 = scale * jax.random.normal(ks[7], (10,), jnp.float32)               # fc2.bias
    return (w1, b1, w2, b2, fw1, fb1, fw2, fb2)


def reference_forward(x_nchw, params):
    """Pure-JAX reference (mirrors PyTorch ops) for correctness checking."""
    w1, b1, w2, b2, fw1, fb1, fw2, fb2 = params
    dn = jax.lax.conv_dimension_numbers(x_nchw.shape, w1.shape,
                                        ("NCHW", "OIHW", "NCHW"))
    h = jax.lax.conv_general_dilated(x_nchw, w1, (1, 1), "VALID",
                                     dimension_numbers=dn)
    h = jax.nn.relu(h + b1[None, :, None, None])
    h = jax.lax.conv_general_dilated(h, w2, (1, 1), "VALID",
                                     dimension_numbers=dn)
    h = jax.nn.relu(h + b2[None, :, None, None])
    h = h.reshape(h.shape[0], -1)
    h = jax.nn.relu(h @ fw1.T + fb1)
    h = jax.nn.relu(h @ fw2.T + fb2)
    return h


if __name__ == "__main__":
    key = jax.random.PRNGKey(0)
    k_x, k_p = jax.random.split(key)

    # Input implied by the module: 20x20 single-channel (conv stack -> 12x12x10)
    x = jax.random.normal(k_x, (2, 1, 20, 20), jnp.float32)
    params = make_params(k_p)

    # One-time weight preprocessing (kept out of the forward path).
    kparams = prepare_params(params)      # use mxu_dtype=jnp.bfloat16 on v6e/v7x

    fwd = jax.jit(cnn_forward)
    out = fwd(x, kparams)
    out = jax.block_until_ready(out)

    ref = reference_forward(x, params)
    assert out.shape == (2, 10)
    assert jnp.allclose(out, ref, atol=1e-3, rtol=1e-3)

    print("KERNEL_OK")
</pallas_src>

<mosaic_0001>
module attributes {stable_mosaic.version = 11 : i64} {
  func.func @cnn_kernel(%arg0: i32, %arg1: memref<8x400xf32, #tpu.memory_space<vmem>>, %arg2: memref<400x768xf32, #tpu.memory_space<vmem>>, %arg3: memref<1x768xf32, #tpu.memory_space<vmem>>, %arg4: memref<768x1440xf32, #tpu.memory_space<vmem>>, %arg5: memref<1x1440xf32, #tpu.memory_space<vmem>>, %arg6: memref<1440x50xf32, #tpu.memory_space<vmem>>, %arg7: memref<1x50xf32, #tpu.memory_space<vmem>>, %arg8: memref<50x10xf32, #tpu.memory_space<vmem>>, %arg9: memref<1x10xf32, #tpu.memory_space<vmem>>, %arg10: memref<8x10xf32, #tpu.memory_space<vmem>>) attributes {dimension_semantics = [#tpu.dimension_semantics<parallel>], iteration_bounds = array<i64: 1>, scalar_prefetch = 0 : i64, scratch_operands = 0 : i64, tpu.core_type = #tpu.core_type<tc>, window_params = [{transform_indices = @transform_0, window_bounds = array<i64: 8, 400>}, {pipeline_mode = #tpu.pipeline_mode<synchronous>, transform_indices = @transform_1, window_bounds = array<i64: 400, 768>}, {pipeline_mode = #tpu.pipeline_mode<synchronous>, transform_indices = @transform_2, window_bounds = array<i64: 1, 768>}, {pipeline_mode = #tpu.pipeline_mode<synchronous>, transform_indices = @transform_3, window_bounds = array<i64: 768, 1440>}, {pipeline_mode = #tpu.pipeline_mode<synchronous>, transform_indices = @transform_4, window_bounds = array<i64: 1, 1440>}, {pipeline_mode = #tpu.pipeline_mode<synchronous>, transform_indices = @transform_5, window_bounds = array<i64: 1440, 50>}, {pipeline_mode = #tpu.pipeline_mode<synchronous>, transform_indices = @transform_6, window_bounds = array<i64: 1, 50>}, {pipeline_mode = #tpu.pipeline_mode<synchronous>, transform_indices = @transform_7, window_bounds = array<i64: 50, 10>}, {pipeline_mode = #tpu.pipeline_mode<synchronous>, transform_indices = @transform_8, window_bounds = array<i64: 1, 10>}, {transform_indices = @transform_9, window_bounds = array<i64: 8, 10>}]} {
    %c0 = arith.constant 0 : index
    %c0_0 = arith.constant 0 : index
    %0 = vector.load %arg2[%c0, %c0_0] : memref<400x768xf32, #tpu.memory_space<vmem>>, vector<400x768xf32>
    %c0_1 = arith.constant 0 : index
    %c0_2 = arith.constant 0 : index
    %1 = vector.load %arg4[%c0_1, %c0_2] : memref<768x1440xf32, #tpu.memory_space<vmem>>, vector<768x1440xf32>
    %c0_3 = arith.constant 0 : index
    %c0_4 = arith.constant 0 : index
    %2 = vector.load %arg6[%c0_3, %c0_4] : memref<1440x50xf32, #tpu.memory_space<vmem>>, vector<1440x50xf32>
    %c0_5 = arith.constant 0 : index
    %c0_6 = arith.constant 0 : index
    %3 = vector.load %arg8[%c0_5, %c0_6] : memref<50x10xf32, #tpu.memory_space<vmem>>, vector<50x10xf32>
    %c0_7 = arith.constant 0 : index
    %c0_8 = arith.constant 0 : index
    %4 = vector.load %arg1[%c0_7, %c0_8] : memref<8x400xf32, #tpu.memory_space<vmem>>, vector<8x400xf32>
    %cst = arith.constant dense<0.000000e+00> : vector<8x768xf32>
    %5 = tpu.matmul %4, %0, %cst {dimension_numbers = #tpu.dot_dimension_numbers<[1], [0], [0], [1], [0, 0, 1, 1], [], []>} : vector<8x400xf32>, vector<400x768xf32>, vector<8x768xf32> -> vector<8x768xf32>
    %c0_9 = arith.constant 0 : index
    %c0_10 = arith.constant 0 : index
    %6 = vector.load %arg3[%c0_9, %c0_10] : memref<1x768xf32, #tpu.memory_space<vmem>>, vector<1x768xf32>
    %7 = vector.broadcast %6 : vector<1x768xf32> to vector<8x768xf32>
    %8 = arith.addf %5, %7 : vector<8x768xf32>
    %cst_11 = arith.constant 0.000000e+00 : f32
    %9 = vector.broadcast %cst_11 : f32 to vector<8x768xf32>
    %10 = arith.maximumf %8, %9 : vector<8x768xf32>
    %cst_12 = arith.constant dense<0.000000e+00> : vector<8x1440xf32>
    %11 = tpu.matmul %10, %1, %cst_12 {dimension_numbers = #tpu.dot_dimension_numbers<[1], [0], [0], [1], [0, 0, 1, 1], [], []>} : vector<8x768xf32>, vector<768x1440xf32>, vector<8x1440xf32> -> vector<8x1440xf32>
    %c0_13 = arith.constant 0 : index
    %c0_14 = arith.constant 0 : index
    %12 = vector.load %arg5[%c0_13, %c0_14] : memref<1x1440xf32, #tpu.memory_space<vmem>>, vector<1x1440xf32>
    %13 = vector.broadcast %12 : vector<1x1440xf32> to vector<8x1440xf32>
    %14 = arith.addf %11, %13 : vector<8x1440xf32>
    %cst_15 = arith.constant 0.000000e+00 : f32
    %15 = vector.broadcast %cst_15 : f32 to vector<8x1440xf32>
    %16 = arith.maximumf %14, %15 : vector<8x1440xf32>
    %cst_16 = arith.constant dense<0.000000e+00> : vector<8x50xf32>
    %17 = tpu.matmul %16, %2, %cst_16 {dimension_numbers = #tpu.dot_dimension_numbers<[1], [0], [0], [1], [0, 0, 1, 1], [], []>} : vector<8x1440xf32>, vector<1440x50xf32>, vector<8x50xf32> -> vector<8x50xf32>
    %c0_17 = arith.constant 0 : index
    %c0_18 = arith.constant 0 : index
    %18 = vector.load %arg7[%c0_17, %c0_18] : memref<1x50xf32, #tpu.memory_space<vmem>>, vector<1x50xf32>
    %19 = vector.broadcast %18 : vector<1x50xf32> to vector<8x50xf32>
    %20 = arith.addf %17, %19 : vector<8x50xf32>
    %cst_19 = arith.constant 0.000000e+00 : f32
    %21 = vector.broadcast %cst_19 : f32 to vector<8x50xf32>
    %22 = arith.maximumf %20, %21 : vector<8x50xf32>
    %cst_20 = arith.constant dense<0.000000e+00> : vector<8x10xf32>
    %23 = tpu.matmul %22, %3, %cst_20 {dimension_numbers = #tpu.dot_dimension_numbers<[1], [0], [0], [1], [0, 0, 1, 1], [], []>} : vector<8x50xf32>, vector<50x10xf32>, vector<8x10xf32> -> vector<8x10xf32>
    %c0_21 = arith.constant 0 : index
    %c0_22 = arith.constant 0 : index
    %24 = vector.load %arg9[%c0_21, %c0_22] : memref<1x10xf32, #tpu.memory_space<vmem>>, vector<1x10xf32>
    %25 = vector.broadcast %24 : vector<1x10xf32> to vector<8x10xf32>
    %26 = arith.addf %23, %25 : vector<8x10xf32>
    %cst_23 = arith.constant 0.000000e+00 : f32
    %27 = vector.broadcast %cst_23 : f32 to vector<8x10xf32>
    %28 = arith.maximumf %26, %27 : vector<8x10xf32>
    %c0_24 = arith.constant 0 : index
    %c0_25 = arith.constant 0 : index
    %29 = vector.load %arg10[%c0_24, %c0_25] : memref<8x10xf32, #tpu.memory_space<vmem>>, vector<8x10xf32>
    tpu.vector_store %arg10[%c0_24, %c0_25], %28 {strides = array<i32>} : memref<8x10xf32, #tpu.memory_space<vmem>>, vector<8x10xf32>,
    return
  }
  func.func @transform_0(%arg0: i32) -> (i32, i32) {
    %c0_i32 = arith.constant 0 : i32
    %c0_i32_0 = arith.constant 0 : i32
    return %arg0, %c0_i32 : i32, i32
  }
  func.func @transform_1(%arg0: i32) -> (i32, i32) {
    %c0_i32 = arith.constant 0 : i32
    %c0_i32_0 = arith.constant 0 : i32
    %c0_i32_1 = arith.constant 0 : i32
    return %c0_i32, %c0_i32_0 : i32, i32
  }
  func.func @transform_2(%arg0: i32) -> (i32, i32) {
    %c0_i32 = arith.constant 0 : i32
    %c0_i32_0 = arith.constant 0 : i32
    %c0_i32_1 = arith.constant 0 : i32
    return %c0_i32, %c0_i32_0 : i32, i32
  }
  func.func @transform_3(%arg0: i32) -> (i32, i32) {
    %c0_i32 = arith.constant 0 : i32
    %c0_i32_0 = arith.constant 0 : i32
    %c0_i32_1 = arith.constant 0 : i32
    return %c0_i32, %c0_i32_0 : i32, i32
  }
  func.func @transform_4(%arg0: i32) -> (i32, i32) {
    %c0_i32 = arith.constant 0 : i32
    %c0_i32_0 = arith.constant 0 : i32
    %c0_i32_1 = arith.constant 0 : i32
    return %c0_i32, %c0_i32_0 : i32, i32
  }
  func.func @transform_5(%arg0: i32) -> (i32, i32) {
    %c0_i32 = arith.constant 0 : i32
    %c0_i32_0 = arith.constant 0 : i32
    %c0_i32_1 = arith.constant 0 : i32
    return %c0_i32, %c0_i32_0 : i32, i32
  }
  func.func @transform_6(%arg0: i32) -> (i32, i32) {
    %c0_i32 = arith.constant 0 : i32
    %c0_i32_0 = arith.constant 0 : i32
    %c0_i32_1 = arith.constant 0 : i32
    return %c0_i32, %c0_i32_0 : i32, i32
  }
  func.func @transform_7(%arg0: i32) -> (i32, i32) {
    %c0_i32 = arith.constant 0 : i32
    %c0_i32_0 = arith.constant 0 : i32
    %c0_i32_1 = arith.constant 0 : i32
    return %c0_i32, %c0_i32_0 : i32, i32
  }
  func.func @transform_8(%arg0: i32) -> (i32, i32) {
    %c0_i32 = arith.constant 0 : i32
    %c0_i32_0 = arith.constant 0 : i32
    %c0_i32_1 = arith.constant 0 : i32
    return %c0_i32, %c0_i32_0 : i32, i32
  }
  func.func @transform_9(%arg0: i32) -> (i32, i32) {
    %c0_i32 = arith.constant 0 : i32
    %c0_i32_0 = arith.constant 0 : i32
    return %arg0, %c0_i32 : i32, i32
  }
}

</mosaic_0001>

<bundles_post_ra>
// kernel: cnn_forward.1
= control target key start
LH: loop header
LB: loop body
LE: loop exit
PB: predicated region body
PF: predicated region fallthrough
CT: control target
= control target key end

     0   :  { %vm1689_vm0 = vcmask 130048   ;;  %vm3663_vm1 = vcmask 261120   ;;  %vm3916_vm2 = vcmask 1041408   ;;  %vm3912_vm3 = vcmask 408576   ;;  %s9209_s1 = inlined_call_operand.vmem [shape: f32[400,768], index: 1, kind: input, shape index: {}]   ;;  %s9210_s0 = inlined_call_operand.vmem [shape: f32[8,400], index: 0, kind: input, shape index: {}]   ;;  %s9211_s3 = inlined_call_operand.vmem [shape: f32[768,1440], index: 3, kind: input, shape index: {}]   ;;  %s9212_s2 = inlined_call_operand.vmem [shape: f32[1,768], index: 2, kind: input, shape index: {}]   ;;  %s9213_s4 = inlined_call_operand.vmem [shape: f32[1,1440], index: 4, kind: input, shape index: {}]   ;;  %s9214_s5 = inlined_call_operand.vmem [shape: f32[1440,50], index: 5, kind: input, shape index: {}]   ;;  %s9215_s6 = inlined_call_operand.vmem [shape: f32[1,50], index: 6, kind: input, shape index: {}]   ;;  %s9216_s8 = inlined_call_operand.vmem [shape: f32[1,10], index: 8, kind: input, shape index: {}]   ;;  %s9217_s7 = inlined_call_operand.vmem [shape: f32[50,10], index: 7, kind: input, shape index: {}]   ;;  %s9218_s9 = inlined_call_operand.vmem [shape: f32[8,10], index: 9, kind: output, shape index: {}]  }
   0x1   :  { %v122_v0 = vld [vmem:[%s9209_s1 + $0x2d0] sm:$0xff]  ;;  %v123_v2 = vld [vmem:[%s9209_s1 + $0x2d8] sm:$0xff]  ;;  %v116_v4 = vld [vmem:[%s9209_s1 + $0x2a0] sm:$0xff]  ;;  %vm3941_vm4 = vcmask 80896  }
   0x2   :  { %v218_v1 = vld [vmem:[%s9209_s1 + $0x5d0] sm:$0xff]  ;;  %1693 = vmatpush.msra.mxu0 %v122_v0  ;;  %v212_v5 = vld [vmem:[%s9209_s1 + $0x5a0] sm:$0xff]  ;;  %1773 = vmatpush.msra.mxu3 %v123_v2  ;;  %v117_v6 = vld [vmem:[%s9209_s1 + $0x2a8] sm:$0xff] }
   0x3   :  { %1713 = vmatpush.msra.mxu1 %v218_v1  ;;  %v314_v3 = vld [vmem:[%s9209_s1 + $0x8d0] sm:$0xff]  ;;  %v308_v7 = vld [vmem:[%s9209_s1 + $0x8a0] sm:$0xff]  ;;  %v111_v10 = vld [vmem:[%s9209_s1 + $0x278] sm:$0xff] }
   0x4   :  { %1733 = vmatpush.msra.mxu2 %v314_v3  ;;  %v110_v8 = vld [vmem:[%s9209_s1 + $0x270] sm:$0xff]  ;;  %1694 = vmatpush.msra.mxu0 %v116_v4  ;;  %v104_v12 = vld [vmem:[%s9209_s1 + $0x240] sm:$0xff]  ;;  %v105_v14 = vld [vmem:[%s9209_s1 + $0x248] sm:$0xff] }
   0x5   :  { %1714 = vmatpush.msra.mxu1 %v212_v5  ;;  %v206_v9 = vld [vmem:[%s9209_s1 + $0x570] sm:$0xff]  ;;  %1774 = vmatpush.msra.mxu3 %v117_v6  ;;  %v200_v13 = vld [vmem:[%s9209_s1 + $0x540] sm:$0xff]  ;;  %v99_v18 = vld [vmem:[%s9209_s1 + $0x218] sm:$0xff] }
   0x6   :  { %v302_v11 = vld [vmem:[%s9209_s1 + $0x870] sm:$0xff]  ;;  %1734 = vmatpush.msra.mxu2 %v308_v7  ;;  %1695 = vmatpush.msra.mxu0 %v110_v8  ;;  %v296_v15 = vld [vmem:[%s9209_s1 + $0x840] sm:$0xff]  ;;  %v93_v22 = vld [vmem:[%s9209_s1 + $0x1e8] sm:$0xff] }
   0x7   :  { %1715 = vmatpush.msra.mxu1 %v206_v9  ;;  %1775 = vmatpush.msra.mxu3 %v111_v10  ;;  %v98_v16 = vld [vmem:[%s9209_s1 + $0x210] sm:$0xff]  ;;  %v92_v20 = vld [vmem:[%s9209_s1 + $0x1e0] sm:$0xff]  ;;  %v87_v26 = vld [vmem:[%s9209_s1 + $0x1b8] sm:$0xff] }
   0x8   :  { %1735 = vmatpush.msra.mxu2 %v302_v11  ;;  %v194_v17 = vld [vmem:[%s9209_s1 + $0x510] sm:$0xff]  ;;  %1696 = vmatpush.msra.mxu0 %v104_v12  ;;  %v188_v21 = vld [vmem:[%s9209_s1 + $0x4e0] sm:$0xff]  ;;  %v81_v30 = vld [vmem:[%s9209_s1 + $0x188] sm:$0xff] }
   0x9   :  { %1716 = vmatpush.msra.mxu1 %v200_v13  ;;  %v290_v19 = vld [vmem:[%s9209_s1 + $0x810] sm:$0xff]  ;;  %1776 = vmatpush.msra.mxu3 %v105_v14  ;;  %v284_v23 = vld [vmem:[%s9209_s1 + $0x7e0] sm:$0xff]  ;;  %v75_v34 = vld [vmem:[%s9209_s1 + $0x158] sm:$0xff] }
   0xa   :  { %1736 = vmatpush.msra.mxu2 %v296_v15  ;;  %1697 = vmatpush.msra.mxu0 %v98_v16  ;;  %v86_v24 = vld [vmem:[%s9209_s1 + $0x1b0] sm:$0xff]  ;;  %v80_v28 = vld [vmem:[%s9209_s1 + $0x180] sm:$0xff]  ;;  %v69_v38 = vld [vmem:[%s9209_s1 + $0x128] sm:$0xff] }
   0xb   :  { %1717 = vmatpush.msra.mxu1 %v194_v17  ;;  %1777 = vmatpush.msra.mxu3 %v99_v18  ;;  %v182_v25 = vld [vmem:[%s9209_s1 + $0x4b0] sm:$0xff]  ;;  %v176_v29 = vld [vmem:[%s9209_s1 + $0x480] sm:$0xff]  ;;  %v63_v42 = vld [vmem:[%s9209_s1 + $0xf8] sm:$0xff] }
   0xc   :  { %1737 = vmatpush.msra.mxu2 %v290_v19  ;;  %1698 = vmatpush.msra.mxu0 %v92_v20  ;;  %v278_v27 = vld [vmem:[%s9209_s1 + $0x7b0] sm:$0xff]  ;;  %v272_v31 = vld [vmem:[%s9209_s1 + $0x780] sm:$0xff]  ;;  %v57_v46 = vld [vmem:[%s9209_s1 + $0xc8] sm:$0xff] }
   0xd   :  { %1718 = vmatpush.msra.mxu1 %v188_v21  ;;  %1778 = vmatpush.msra.mxu3 %v93_v22  ;;  %v74_v32 = vld [vmem:[%s9209_s1 + $0x150] sm:$0xff]  ;;  %v68_v36 = vld [vmem:[%s9209_s1 + $0x120] sm:$0xff]  ;;  %v51_v50 = vld [vmem:[%s9209_s1 + $0x98] sm:$0xff] }
   0xe   :  { %1738 = vmatpush.msra.mxu2 %v284_v23  ;;  %1699 = vmatpush.msra.mxu0 %v86_v24  ;;  %v170_v33 = vld [vmem:[%s9209_s1 + $0x450] sm:$0xff]  ;;  %v164_v37 = vld [vmem:[%s9209_s1 + $0x420] sm:$0xff]  ;;  %v45_v54 = vld [vmem:[%s9209_s1 + $0x68] sm:$0xff] }
   0xf   :  { %1719 = vmatpush.msra.mxu1 %v182_v25  ;;  %1779 = vmatpush.msra.mxu3 %v87_v26  ;;  %v266_v35 = vld [vmem:[%s9209_s1 + $0x750] sm:$0xff]  ;;  %v260_v39 = vld [vmem:[%s9209_s1 + $0x720] sm:$0xff]  ;;  %v39_v58 = vld [vmem:[%s9209_s1 + $0x38] sm:$0xff] }
  0x10   :  { %1739 = vmatpush.msra.mxu2 %v278_v27  ;;  %1700 = vmatpush.msra.mxu0 %v80_v28  ;;  %v62_v40 = vld [vmem:[%s9209_s1 + $0xf0] sm:$0xff]  ;;  %v56_v44 = vld [vmem:[%s9209_s1 + $0xc0] sm:$0xff]  ;;  %v33_v62 = vld [vmem:[%s9209_s1 + $0x8] sm:$0xff] }
  0x11   :  { %1720 = vmatpush.msra.mxu1 %v176_v29  ;;  %1780 = vmatpush.msra.mxu3 %v81_v30  ;;  %v158_v41 = vld [vmem:[%s9209_s1 + $0x3f0] sm:$0xff]  ;;  %v152_v45 = vld [vmem:[%s9209_s1 + $0x3c0] sm:$0xff]  ;;  %v219_v1 = vld [vmem:[%s9209_s1 + $0x5d8] sm:$0xff] }
  0x12   :  { %1740 = vmatpush.msra.mxu2 %v272_v31  ;;  %1701 = vmatpush.msra.mxu0 %v74_v32  ;;  %v254_v43 = vld [vmem:[%s9209_s1 + $0x6f0] sm:$0xff]  ;;  %v248_v47 = vld [vmem:[%s9209_s1 + $0x6c0] sm:$0xff]  ;;  %v327_v3 = vld [vmem:[%s9209_s1 + $0x938] sm:$0xff] }
  0x13   :  { %1721 = vmatpush.msra.mxu1 %v170_v33  ;;  %1781 = vmatpush.msra.mxu3 %v75_v34  ;;  %v50_v48 = vld [vmem:[%s9209_s1 + $0x90] sm:$0xff]  ;;  %v44_v52 = vld [vmem:[%s9209_s1 + $0x60] sm:$0xff]  ;;  %v213_v5 = vld [vmem:[%s9209_s1 + $0x5a8] sm:$0xff] }
  0x14   :  { %1741 = vmatpush.msra.mxu2 %v266_v35  ;;  %1702 = vmatpush.msra.mxu0 %v68_v36  ;;  %v146_v49 = vld [vmem:[%s9209_s1 + $0x390] sm:$0xff]  ;;  %v140_v53 = vld [vmem:[%s9209_s1 + $0x360] sm:$0xff]  ;;  %v4227_v7 = vld [vmem:[%s9210_s0 + $0x8] sm:$0xff] }
  0x15   :  { %1722 = vmatpush.msra.mxu1 %v164_v37  ;;  %1782 = vmatpush.msra.mxu3 %v69_v38  ;;  %v242_v51 = vld [vmem:[%s9209_s1 + $0x690] sm:$0xff]  ;;  %v236_v55 = vld [vmem:[%s9209_s1 + $0x660] sm:$0xff]  ;;  %v315_v8 = vld [vmem:[%s9209_s1 + $0x8d8] sm:$0xff] }
  0x16   :  { %1742 = vmatpush.msra.mxu2 %v260_v39  ;;  %1703 = vmatpush.msra.mxu0 %v62_v40  ;;  %v38_v56 = vld [vmem:[%s9209_s1 + $0x30] sm:$0xff]  ;;  %v32_v60 = vld [vmem:[%s9209_s1] sm:$0xff]  ;;  %v321_v9 = vld [vmem:[%s9209_s1 + $0x908] sm:$0xff] }
  0x17   :  { %1723 = vmatpush.msra.mxu1 %v158_v41  ;;  %1783 = vmatpush.msra.mxu3 %v63_v42  ;;  %v134_v57 = vld [vmem:[%s9209_s1 + $0x330] sm:$0xff]  ;;  %v128_v61 = vld [vmem:[%s9209_s1 + $0x300] sm:$0xff]  ;;  %v207_v11 = vld [vmem:[%s9209_s1 + $0x578] sm:$0xff] }
  0x18   :  { %1743 = vmatpush.msra.mxu2 %v254_v43  ;;  %1704 = vmatpush.msra.mxu0 %v56_v44  ;;  %v230_v59 = vld [vmem:[%s9209_s1 + $0x630] sm:$0xff]  ;;  %v224_v63 = vld [vmem:[%s9209_s1 + $0x600] sm:$0xff]  ;;  %v309_v14 = vld [vmem:[%s9209_s1 + $0x8a8] sm:$0xff] }
  0x19   :  { %1724 = vmatpush.msra.mxu1 %v152_v45  ;;  %1784 = vmatpush.msra.mxu3 %v57_v46  ;;  %v326_v0 = vld [vmem:[%s9209_s1 + $0x930] sm:$0xff]  ;;  %v124_v2 = vld [vmem:[%s9209_s1 + $0x2e0] sm:$0xff]  ;;  %v201_v15 = vld [vmem:[%s9209_s1 + $0x548] sm:$0xff] }
  0x1a   :  { %1744 = vmatpush.msra.mxu2 %v248_v47  ;;  %1705 = vmatpush.msra.mxu0 %v50_v48  ;;  %v320_v4 = vld [vmem:[%s9209_s1 + $0x900] sm:$0xff]  ;;  %v118_v6 = vld [vmem:[%s9209_s1 + $0x2b0] sm:$0xff]  ;;  %v303_v18 = vld [vmem:[%s9209_s1 + $0x878] sm:$0xff] }
  0x1b   :  { %1725 = vmatpush.msra.mxu1 %v146_v49  ;;  %1785 = vmatpush.msra.mxu3 %v51_v50  ;;  %v4238_v10 = vld [vmem:[%s9210_s0 + $0x10] sm:$0xff]  ;;  %v112_v12 = vld [vmem:[%s9209_s1 + $0x280] sm:$0xff]  ;;  %v195_v19 = vld [vmem:[%s9209_s1 + $0x518] sm:$0xff] }
  0x1c   :  { %1745 = vmatpush.msra.mxu2 %v242_v51  ;;  %1706 = vmatpush.msra.mxu0 %v44_v52  ;;  %v220_v13 = vld [vmem:[%s9209_s1 + $0x5e0] sm:$0xff]  ;;  %v106_v16 = vld [vmem:[%s9209_s1 + $0x250] sm:$0xff]  ;;  %v297_v22 = vld [vmem:[%s9209_s1 + $0x848] sm:$0xff] }
  0x1d   :  { %1726 = vmatpush.msra.mxu1 %v140_v53  ;;  %1786 = vmatpush.msra.mxu3 %v45_v54  ;;  %v214_v17 = vld [vmem:[%s9209_s1 + $0x5b0] sm:$0xff]  ;;  %v100_v20 = vld [vmem:[%s9209_s1 + $0x220] sm:$0xff]  ;;  %v189_v23 = vld [vmem:[%s9209_s1 + $0x4e8] sm:$0xff] }
  0x1e   :  { %1746 = vmatpush.msra.mxu2 %v236_v55  ;;  %1707 = vmatpush.msra.mxu0 %v38_v56  ;;  %v208_v21 = vld [vmem:[%s9209_s1 + $0x580] sm:$0xff]  ;;  %v94_v24 = vld [vmem:[%s9209_s1 + $0x1f0] sm:$0xff]  ;;  %v291_v26 = vld [vmem:[%s9209_s1 + $0x818] sm:$0xff] }
  0x1f   :  { %1727 = vmatpush.msra.mxu1 %v134_v57  ;;  %1787 = vmatpush.msra.mxu3 %v39_v58  ;;  %v202_v25 = vld [vmem:[%s9209_s1 + $0x550] sm:$0xff]  ;;  %v183_v27 = vld [vmem:[%s9209_s1 + $0x4b8] sm:$0xff]  ;;  %v88_v28 = vld [vmem:[%s9209_s1 + $0x1c0] sm:$0xff] }
  0x20   :  { %1747 = vmatpush.msra.mxu2 %v230_v59  ;;  %1708 = vmatpush.msra.mxu0 %v32_v60  ;;  %v196_v29 = vld [vmem:[%s9209_s1 + $0x520] sm:$0xff]  ;;  %v285_v30 = vld [vmem:[%s9209_s1 + $0x7e8] sm:$0xff]  ;;  %v82_v32 = vld [vmem:[%s9209_s1 + $0x190] sm:$0xff] }
  0x21   :  { %1728 = vmatpush.msra.mxu1 %v128_v61  ;;  %1788 = vmatpush.msra.mxu3 %v33_v62  ;;  %v177_v31 = vld [vmem:[%s9209_s1 + $0x488] sm:$0xff]  ;;  %v190_v33 = vld [vmem:[%s9209_s1 + $0x4f0] sm:$0xff]  ;;  %v279_v34 = vld [vmem:[%s9209_s1 + $0x7b8] sm:$0xff] }
  0x22   :  { %1748 = vmatpush.msra.mxu2 %v224_v63  ;;  %1793 = vmatpush.msrb.mxu0 %v219_v1  ;;  %v171_v35 = vld [vmem:[%s9209_s1 + $0x458] sm:$0xff]  ;;  %v76_v36 = vld [vmem:[%s9209_s1 + $0x160] sm:$0xff]  ;;  %v273_v38 = vld [vmem:[%s9209_s1 + $0x788] sm:$0xff] }
  0x23   :  { %1767 = vmatpush.msrb.mxu1 %v326_v0  ;;  %1853 = vmatpush.msrb.mxu3 %v124_v2  ;;  %v184_v37 = vld [vmem:[%s9209_s1 + $0x4c0] sm:$0xff]  ;;  %v165_v39 = vld [vmem:[%s9209_s1 + $0x428] sm:$0xff]  ;;  %v70_v40 = vld [vmem:[%s9209_s1 + $0x130] sm:$0xff] }
  0x24   :  { %1847 = vmatpush.msrb.mxu2 %v327_v3  ;;  %1794 = vmatpush.msrb.mxu0 %v213_v5  ;;  %v178_v41 = vld [vmem:[%s9209_s1 + $0x490] sm:$0xff]  ;;  %v267_v42 = vld [vmem:[%s9209_s1 + $0x758] sm:$0xff]  ;;  %v64_v44 = vld [vmem:[%s9209_s1 + $0x100] sm:$0xff] }
  0x25   :  { %1768 = vmatpush.msrb.mxu1 %v320_v4  ;;  %1854 = vmatpush.msrb.mxu3 %v118_v6  ;;  %v159_v43 = vld [vmem:[%s9209_s1 + $0x3f8] sm:$0xff]  ;;  %v172_v45 = vld [vmem:[%s9209_s1 + $0x460] sm:$0xff]  ;;  %v261_v46 = vld [vmem:[%s9209_s1 + $0x728] sm:$0xff] }
  0x26   :  { %1729 = vmatmul.f32.vlgmr.msra.gmra.mxu1 %v4227_v7  ;;  %1848 = vmatpush.msrb.mxu2 %v321_v9  ;;  %v153_v47 = vld [vmem:[%s9209_s1 + $0x3c8] sm:$0xff]  ;;  %v58_v48 = vld [vmem:[%s9209_s1 + $0xd0] sm:$0xff]  ;;  %v255_v50 = vld [vmem:[%s9209_s1 + $0x6f8] sm:$0xff] }
  0x27   :  { %1813 = vmatpush.msra.mxu1 %v315_v8  ;;  %1749 = vmatmul.f32.vlgmr.msra.gmra.mxu2 %v4238_v10  ;;  %v166_v49 = vld [vmem:[%s9209_s1 + $0x430] sm:$0xff]  ;;  %v4365_v51 = vld [vmem:[%s9210_s0] sm:$0xff]  ;;  %v147_v52 = vld [vmem:[%s9209_s1 + $0x398] sm:$0xff] }
  0x28   :  { %1795 = vmatpush.msrb.mxu0 %v207_v11  ;;  %1855 = vmatpush.msrb.mxu3 %v112_v12  ;;  %v52_v53 = vld [vmem:[%s9209_s1 + $0xa0] sm:$0xff]  ;;  %v249_v55 = vld [vmem:[%s9209_s1 + $0x6c8] sm:$0xff]  ;;  %v4387_v57 = vld [vmem:[%s9210_s0 + $0x18] sm:$0xff] }
  0x29   :  { %1873 = vmatpush.msra.mxu2 %v220_v13  ;;  %1814 = vmatpush.msra.mxu1 %v309_v14  ;;  %v160_v54 = vld [vmem:[%s9209_s1 + $0x400] sm:$0xff]  ;;  %v141_v56 = vld [vmem:[%s9209_s1 + $0x368] sm:$0xff]  ;;  %v46_v58 = vld [vmem:[%s9209_s1 + $0x70] sm:$0xff] }
  0x2a   :  { %1796 = vmatpush.msrb.mxu0 %v201_v15  ;;  %1856 = vmatpush.msrb.mxu3 %v106_v16  ;;  %v154_v59 = vld [vmem:[%s9209_s1 + $0x3d0] sm:$0xff]  ;;  %v243_v60 = vld [vmem:[%s9209_s1 + $0x698] sm:$0xff]  ;;  %v40_v62 = vld [vmem:[%s9209_s1 + $0x40] sm:$0xff] }
  0x2b   :  { %1874 = vmatpush.msra.mxu2 %v214_v17  ;;  %1815 = vmatpush.msra.mxu1 %v303_v18  ;;  %v135_v61 = vld [vmem:[%s9209_s1 + $0x338] sm:$0xff]  ;;  %v148_v63 = vld [vmem:[%s9209_s1 + $0x3a0] sm:$0xff]  ;;  %v237_v0 = vld [vmem:[%s9209_s1 + $0x668] sm:$0xff] }
  0x2c   :  { %1797 = vmatpush.msrb.mxu0 %v195_v19  ;;  %1857 = vmatpush.msrb.mxu3 %v100_v20  ;;  %v129_v1 = vld [vmem:[%s9209_s1 + $0x308] sm:$0xff]  ;;  %v34_v2 = vld [vmem:[%s9209_s1 + $0x10] sm:$0xff]  ;;  %v231_v4 = vld [vmem:[%s9209_s1 + $0x638] sm:$0xff] }
  0x2d   :  { %1875 = vmatpush.msra.mxu2 %v208_v21  ;;  %1816 = vmatpush.msra.mxu1 %v297_v22  ;;  %v142_v3 = vld [vmem:[%s9209_s1 + $0x370] sm:$0xff]  ;;  %v316_v5 = vld [vmem:[%s9209_s1 + $0x8e0] sm:$0xff]  ;;  %v125_v6 = vld [vmem:[%s9209_s1 + $0x2e8] sm:$0xff] }
  0x2e   :  { %1798 = vmatpush.msrb.mxu0 %v189_v23  ;;  %1858 = vmatpush.msrb.mxu3 %v94_v24  ;;  %v136_v8 = vld [vmem:[%s9209_s1 + $0x340] sm:$0xff]  ;;  %v225_v9 = vld [vmem:[%s9209_s1 + $0x608] sm:$0xff]  ;;  %v310_v11 = vld [vmem:[%s9209_s1 + $0x8b0] sm:$0xff] }
  0x2f   :  { %1876 = vmatpush.msra.mxu2 %v202_v25  ;;  %1817 = vmatpush.msra.mxu1 %v291_v26  ;;  %v119_v12 = vld [vmem:[%s9209_s1 + $0x2b8] sm:$0xff]  ;;  %v130_v13 = vld [vmem:[%s9209_s1 + $0x310] sm:$0xff]  ;;  %v304_v14 = vld [vmem:[%s9209_s1 + $0x880] sm:$0xff] }
  0x30   :  { %1799 = vmatpush.msrb.mxu0 %v183_v27  ;;  %1859 = vmatpush.msrb.mxu3 %v88_v28  ;;  %v113_v15 = vld [vmem:[%s9209_s1 + $0x288] sm:$0xff]  ;;  %v328_v17 = vld [vmem:[%s9209_s1 + $0x940] sm:$0xff]  ;;  %v298_v18 = vld [vmem:[%s9209_s1 + $0x850] sm:$0xff] }
  0x31   :  { %1877 = vmatpush.msra.mxu2 %v196_v29  ;;  %1818 = vmatpush.msra.mxu1 %v285_v30  ;;  %v317_v16 = vld [vmem:[%s9209_s1 + $0x8e8] sm:$0xff]  ;;  %v107_v19 = vld [vmem:[%s9209_s1 + $0x258] sm:$0xff]  ;;  %v322_v21 = vld [vmem:[%s9209_s1 + $0x910] sm:$0xff] }
  0x32   :  { %1800 = vmatpush.msrb.mxu0 %v177_v31  ;;  %1860 = vmatpush.msrb.mxu3 %v82_v32  ;;  %v311_v20 = vld [vmem:[%s9209_s1 + $0x8b8] sm:$0xff]  ;;  %v292_v22 = vld [vmem:[%s9209_s1 + $0x820] sm:$0xff]  ;;  %v101_v23 = vld [vmem:[%s9209_s1 + $0x228] sm:$0xff] }
  0x33   :  { %1878 = vmatpush.msra.mxu2 %v190_v33  ;;  %1819 = vmatpush.msra.mxu1 %v279_v34  ;;  %v221_v24 = vld [vmem:[%s9209_s1 + $0x5e8] sm:$0xff]  ;;  %v286_v26 = vld [vmem:[%s9209_s1 + $0x7f0] sm:$0xff]  ;;  %v95_v27 = vld [vmem:[%s9209_s1 + $0x1f8] sm:$0xff] }
  0x34   :  { %1801 = vmatpush.msrb.mxu0 %v171_v35  ;;  %1861 = vmatpush.msrb.mxu3 %v76_v36  ;;  %v305_v25 = vld [vmem:[%s9209_s1 + $0x888] sm:$0xff]  ;;  %v215_v28 = vld [vmem:[%s9209_s1 + $0x5b8] sm:$0xff]  ;;  %v280_v30 = vld [vmem:[%s9209_s1 + $0x7c0] sm:$0xff] }
  0x35   :  { %1879 = vmatpush.msra.mxu2 %v184_v37  ;;  %1820 = vmatpush.msra.mxu1 %v273_v38  ;;  %v299_v29 = vld [vmem:[%s9209_s1 + $0x858] sm:$0xff]  ;;  %v89_v31 = vld [vmem:[%s9209_s1 + $0x1c8] sm:$0xff]  ;;  %v274_v34 = vld [vmem:[%s9209_s1 + $0x790] sm:$0xff] }
  0x36   :  { %1802 = vmatpush.msrb.mxu0 %v165_v39  ;;  %1862 = vmatpush.msrb.mxu3 %v70_v40  ;;  %v209_v32 = vld [vmem:[%s9209_s1 + $0x588] sm:$0xff]  ;;  %v83_v35 = vld [vmem:[%s9209_s1 + $0x198] sm:$0xff]  ;;  %v268_v38 = vld [vmem:[%s9209_s1 + $0x760] sm:$0xff] }
  0x37   :  { %1880 = vmatpush.msra.mxu2 %v178_v41  ;;  %1821 = vmatpush.msra.mxu1 %v267_v42  ;;  %v293_v33 = vld [vmem:[%s9209_s1 + $0x828] sm:$0xff]  ;;  %v203_v36 = vld [vmem:[%s9209_s1 + $0x558] sm:$0xff]  ;;  %v262_v42 = vld [vmem:[%s9209_s1 + $0x730] sm:$0xff] }
  0x38   :  { %1803 = vmatpush.msrb.mxu0 %v159_v43  ;;  %1863 = vmatpush.msrb.mxu3 %v64_v44  ;;  %v287_v37 = vld [vmem:[%s9209_s1 + $0x7f8] sm:$0xff]  ;;  %v77_v39 = vld [vmem:[%s9209_s1 + $0x168] sm:$0xff] }
  0x39   :  { %1881 = vmatpush.msra.mxu2 %v172_v45  ;;  %1822 = vmatpush.msra.mxu1 %v261_v46  ;;  %v197_v40 = vld [vmem:[%s9209_s1 + $0x528] sm:$0xff]  ;;  %v71_v43 = vld [vmem:[%s9209_s1 + $0x138] sm:$0xff]  ;;  %v256_v46 = vld [vmem:[%s9209_s1 + $0x700] sm:$0xff] }
  0x3a   :  { %1804 = vmatpush.msrb.mxu0 %v153_v47  ;;  %1864 = vmatpush.msrb.mxu3 %v58_v48  ;;  %v281_v41 = vld [vmem:[%s9209_s1 + $0x7c8] sm:$0xff]  ;;  %v191_v44 = vld [vmem:[%s9209_s1 + $0x4f8] sm:$0xff] }
  0x3b   :  { %1882 = vmatpush.msra.mxu2 %v166_v49  ;;  %1823 = vmatpush.msra.mxu1 %v255_v50  ;;  %v275_v45 = vld [vmem:[%s9209_s1 + $0x798] sm:$0xff]  ;;  %v65_v47 = vld [vmem:[%s9209_s1 + $0x108] sm:$0xff]  ;;  %v250_v50 = vld [vmem:[%s9209_s1 + $0x6d0] sm:$0xff] }
  0x3c   :  { %1709 = vmatmul.f32.vlgmr.msra.gmra.mxu0 %v4365_v51  ;;  %1789 = vmatmul.f32.vlgmr.msra.gmra.mxu3 %v4365_v51  ;;  %v185_v48 = vld [vmem:[%s9209_s1 + $0x4c8] sm:$0xff] }
  0x3d   :  { %1805 = vmatpush.msrb.mxu0 %v147_v52  ;;  %1865 = vmatpush.msrb.mxu3 %v52_v53  ;;  %v269_v49 = vld [vmem:[%s9209_s1 + $0x768] sm:$0xff]  ;;  %v59_v52 = vld [vmem:[%s9209_s1 + $0xd8] sm:$0xff] }
  0x3e   :  { %1883 = vmatpush.msra.mxu2 %v160_v54  ;;  %1824 = vmatpush.msra.mxu1 %v249_v55  ;;  %v179_v53 = vld [vmem:[%s9209_s1 + $0x498] sm:$0xff]  ;;  %v244_v55 = vld [vmem:[%s9209_s1 + $0x6a0] sm:$0xff] }
  0x3f   :  { %1806 = vmatpush.msrb.mxu0 %v141_v56  ;;  %3947 = vmatmul.msk.f32.vlgmr.msrb.gmra.mxu1 %vm1689_vm0, %v4387_v57  ;;  %v263_v54 = vld [vmem:[%s9209_s1 + $0x738] sm:$0xff]  ;;  %v53_v56 = vld [vmem:[%s9209_s1 + $0xa8] sm:$0xff] }
  0x40   :  { %1866 = vmatpush.msrb.mxu3 %v46_v58  ;;  %1884 = vmatpush.msra.mxu2 %v154_v59  ;;  %v173_v58 = vld [vmem:[%s9209_s1 + $0x468] sm:$0xff] }
  0x41   :  { %1825 = vmatpush.msra.mxu1 %v243_v60  ;;  %1807 = vmatpush.msrb.mxu0 %v135_v61  ;;  %v257_v59 = vld [vmem:[%s9209_s1 + $0x708] sm:$0xff]  ;;  %v238_v60 = vld [vmem:[%s9209_s1 + $0x670] sm:$0xff]  ;;  %v47_v61 = vld [vmem:[%s9209_s1 + $0x78] sm:$0xff] }
  0x42   :  { %1867 = vmatpush.msrb.mxu3 %v40_v62  ;;  %1885 = vmatpush.msra.mxu2 %v148_v63  ;;  %v167_v62 = vld [vmem:[%s9209_s1 + $0x438] sm:$0xff] }
  0x43   :  { %1826 = vmatpush.msra.mxu1 %v237_v0  ;;  %1808 = vmatpush.msrb.mxu0 %v129_v1  ;;  %v251_v63 = vld [vmem:[%s9209_s1 + $0x6d8] sm:$0xff]  ;;  %v232_v0 = vld [vmem:[%s9209_s1 + $0x640] sm:$0xff]  ;;  %v41_v1 = vld [vmem:[%s9209_s1 + $0x48] sm:$0xff] }
  0x44   :  { %3948 = vmatmul.msk.f32.vlgmr.msrb.gmra.mxu2 %vm1689_vm0, %v4387_v57  ;;  %1868 = vmatpush.msrb.mxu3 %v34_v2  ;;  %v161_v2 = vld [vmem:[%s9209_s1 + $0x408] sm:$0xff] }
  0x45   :  { %1886 = vmatpush.msra.mxu2 %v142_v3  ;;  %1827 = vmatpush.msra.mxu1 %v231_v4  ;;  %v245_v3 = vld [vmem:[%s9209_s1 + $0x6a8] sm:$0xff]  ;;  %v226_v4 = vld [vmem:[%s9209_s1 + $0x610] sm:$0xff] }
  0x46   :  { %1893 = vmatpush.msra.mxu0 %v316_v5  ;;  %1933 = vmatpush.msra.mxu3 %v125_v6  ;;  %v35_v5 = vld [vmem:[%s9209_s1 + $0x18] sm:$0xff] }
  0x47   :  { %1809 = vmatmul.f32.vlgmr.msrb.gmra.mxu0 %v4227_v7  ;;  %1887 = vmatpush.msra.mxu2 %v136_v8  ;;  %v155_v6 = vld [vmem:[%s9209_s1 + $0x3d8] sm:$0xff] }
  0x48   :  { %1828 = vmatpush.msra.mxu1 %v225_v9  ;;  %1894 = vmatpush.msra.mxu0 %v310_v11  ;;  %v239_v8 = vld [vmem:[%s9209_s1 + $0x678] sm:$0xff]  ;;  %v149_v9 = vld [vmem:[%s9209_s1 + $0x3a8] sm:$0xff]  ;;  %v126_v11 = vld [vmem:[%s9209_s1 + $0x2f0] sm:$0xff] }
  0x49   :  { %1934 = vmatpush.msra.mxu3 %v119_v12  ;;  %1829 = vmatmul.f32.vlgmr.msra.gmra.mxu1 %v4238_v10  ;;  %v233_v12 = vld [vmem:[%s9209_s1 + $0x648] sm:$0xff] }
  0x4a   :  { %1888 = vmatpush.msra.mxu2 %v130_v13  ;;  %1895 = vmatpush.msra.mxu0 %v304_v14  ;;  %v143_v13 = vld [vmem:[%s9209_s1 + $0x378] sm:$0xff]  ;;  %v329_v14 = vld [vmem:[%s9209_s1 + $0x948] sm:$0xff] }
  0x4b   :  { %1935 = vmatpush.msra.mxu3 %v113_v15  ;;  %1927 = vmatpush.msrb.mxu1 %v328_v17  ;;  %v120_v15 = vld [vmem:[%s9209_s1 + $0x2c0] sm:$0xff]  ;;  %v137_v17 = vld [vmem:[%s9209_s1 + $0x348] sm:$0xff] }
  0x4c   :  { %1973 = vmatpush.msrb.mxu2 %v317_v16  ;;  %1896 = vmatpush.msra.mxu0 %v298_v18  ;;  %v227_v16 = vld [vmem:[%s9209_s1 + $0x618] sm:$0xff]  ;;  %v114_v18 = vld [vmem:[%s9209_s1 + $0x290] sm:$0xff] }
  0x4d   :  { %1936 = vmatpush.msra.mxu3 %v107_v19  ;;  %1928 = vmatpush.msrb.mxu1 %v322_v21  ;;  %v323_v19 = vld [vmem:[%s9209_s1 + $0x918] sm:$0xff]  ;;  %v222_v21 = vld [vmem:[%s9209_s1 + $0x5f0] sm:$0xff] }
  0x4e   :  { %1974 = vmatpush.msrb.mxu2 %v311_v20  ;;  %1897 = vmatpush.msra.mxu0 %v292_v22  ;;  %v131_v20 = vld [vmem:[%s9209_s1 + $0x318] sm:$0xff]  ;;  %v108_v22 = vld [vmem:[%s9209_s1 + $0x260] sm:$0xff] }
  0x4f   :  { %1937 = vmatpush.msra.mxu3 %v101_v23  ;;  %1953 = vmatpush.msra.mxu1 %v221_v24  ;;  %v216_v23 = vld [vmem:[%s9209_s1 + $0x5c0] sm:$0xff]  ;;  %v318_v24 = vld [vmem:[%s9209_s1 + $0x8f0] sm:$0xff] }
  0x50   :  { %1975 = vmatpush.msrb.mxu2 %v305_v25  ;;  %1898 = vmatpush.msra.mxu0 %v286_v26  ;;  %v102_v25 = vld [vmem:[%s9209_s1 + $0x230] sm:$0xff] }
  0x51   :  { %1938 = vmatpush.msra.mxu3 %v95_v27  ;;  %1954 = vmatpush.msra.mxu1 %v215_v28  ;;  %v210_v26 = vld [vmem:[%s9209_s1 + $0x590] sm:$0xff]  ;;  %v312_v27 = vld [vmem:[%s9209_s1 + $0x8c0] sm:$0xff] }
  0x52   :  { %1976 = vmatpush.msrb.mxu2 %v299_v29  ;;  %1899 = vmatpush.msra.mxu0 %v280_v30  ;;  %v96_v28 = vld [vmem:[%s9209_s1 + $0x200] sm:$0xff]  ;;  %v330_v29 = vld [vmem:[%s9209_s1 + $0x950] sm:$0xff] }
  0x53   :  { %1939 = vmatpush.msra.mxu3 %v89_v31  ;;  %1955 = vmatpush.msra.mxu1 %v209_v32  ;;  %v204_v30 = vld [vmem:[%s9209_s1 + $0x560] sm:$0xff]  ;;  %v306_v31 = vld [vmem:[%s9209_s1 + $0x890] sm:$0xff] }
  0x54   :  { %1977 = vmatpush.msrb.mxu2 %v293_v33  ;;  %1900 = vmatpush.msra.mxu0 %v274_v34  ;;  %v90_v32 = vld [vmem:[%s9209_s1 + $0x1d0] sm:$0xff]  ;;  %v324_v33 = vld [vmem:[%s9209_s1 + $0x920] sm:$0xff] }
  0x55   :  { %1940 = vmatpush.msra.mxu3 %v83_v35  ;;  %1956 = vmatpush.msra.mxu1 %v203_v36  ;;  %v198_v34 = vld [vmem:[%s9209_s1 + $0x530] sm:$0xff]  ;;  %v300_v35 = vld [vmem:[%s9209_s1 + $0x860] sm:$0xff] }
  0x56   :  { %1978 = vmatpush.msrb.mxu2 %v287_v37  ;;  %1901 = vmatpush.msra.mxu0 %v268_v38  ;;  %v84_v36 = vld [vmem:[%s9209_s1 + $0x1a0] sm:$0xff]  ;;  %v127_v37 = vld [vmem:[%s9209_s1 + $0x2f8] sm:$0xff] }
  0x57   :  { %1941 = vmatpush.msra.mxu3 %v77_v39  ;;  %1957 = vmatpush.msra.mxu1 %v197_v40  ;;  %v192_v38 = vld [vmem:[%s9209_s1 + $0x500] sm:$0xff]  ;;  %v294_v39 = vld [vmem:[%s9209_s1 + $0x830] sm:$0xff] }
  0x58   :  { %1979 = vmatpush.msrb.mxu2 %v281_v41  ;;  %1902 = vmatpush.msra.mxu0 %v262_v42  ;;  %v78_v40 = vld [vmem:[%s9209_s1 + $0x170] sm:$0xff]  ;;  %v121_v41 = vld [vmem:[%s9209_s1 + $0x2c8] sm:$0xff] }
  0x59   :  { %1942 = vmatpush.msra.mxu3 %v71_v43  ;;  %1958 = vmatpush.msra.mxu1 %v191_v44  ;;  %v186_v42 = vld [vmem:[%s9209_s1 + $0x4d0] sm:$0xff]  ;;  %v288_v43 = vld [vmem:[%s9209_s1 + $0x800] sm:$0xff] }
  0x5a   :  { %1980 = vmatpush.msrb.mxu2 %v275_v45  ;;  %1903 = vmatpush.msra.mxu0 %v256_v46  ;;  %v72_v44 = vld [vmem:[%s9209_s1 + $0x140] sm:$0xff]  ;;  %v115_v45 = vld [vmem:[%s9209_s1 + $0x298] sm:$0xff] }
  0x5b   :  { %1943 = vmatpush.msra.mxu3 %v65_v47  ;;  %1959 = vmatpush.msra.mxu1 %v185_v48  ;;  %v180_v46 = vld [vmem:[%s9209_s1 + $0x4a0] sm:$0xff]  ;;  %v282_v47 = vld [vmem:[%s9209_s1 + $0x7d0] sm:$0xff] }
  0x5c   :  { %1981 = vmatpush.msrb.mxu2 %v269_v49  ;;  %1869 = vmatmul.f32.vlgmr.msrb.gmra.mxu3 %v4365_v51  ;;  %v66_v48 = vld [vmem:[%s9209_s1 + $0x110] sm:$0xff]  ;;  %v109_v49 = vld [vmem:[%s9209_s1 + $0x268] sm:$0xff] }
  0x5d   :  { %1904 = vmatpush.msra.mxu0 %v250_v50  ;;  %1944 = vmatpush.msra.mxu3 %v59_v52  ;;  %v174_v50 = vld [vmem:[%s9209_s1 + $0x470] sm:$0xff]  ;;  %v276_v52 = vld [vmem:[%s9209_s1 + $0x7a0] sm:$0xff] }
  0x5e   :  { %1960 = vmatpush.msra.mxu1 %v179_v53  ;;  %1982 = vmatpush.msrb.mxu2 %v263_v54  ;;  %v60_v53 = vld [vmem:[%s9209_s1 + $0xe0] sm:$0xff] }
  0x5f   :  { %1905 = vmatpush.msra.mxu0 %v244_v55  ;;  %1889 = vmatmul.f32.vlgmr.msra.gmra.mxu2 %v4227_v7  ;;  %v168_v54 = vld [vmem:[%s9209_s1 + $0x440] sm:$0xff]  ;;  %v270_v55 = vld [vmem:[%s9209_s1 + $0x770] sm:$0xff] }
  0x60   :  { %1945 = vmatpush.msra.mxu3 %v53_v56  ;;  %1961 = vmatpush.msra.mxu1 %v173_v58  ;;  %v54_v56 = vld [vmem:[%s9209_s1 + $0xb0] sm:$0xff]  ;;  %v103_v58 = vld [vmem:[%s9209_s1 + $0x238] sm:$0xff] }
  0x61   :  { %1983 = vmatpush.msrb.mxu2 %v257_v59  ;;  %1906 = vmatpush.msra.mxu0 %v238_v60  ;;  %v162_v59 = vld [vmem:[%s9209_s1 + $0x410] sm:$0xff]  ;;  %v264_v60 = vld [vmem:[%s9209_s1 + $0x740] sm:$0xff] }
  0x62   :  { %1946 = vmatpush.msra.mxu3 %v47_v61  ;;  %1962 = vmatpush.msra.mxu1 %v167_v62  ;;  %v48_v61 = vld [vmem:[%s9209_s1 + $0x80] sm:$0xff]  ;;  %v97_v62 = vld [vmem:[%s9209_s1 + $0x208] sm:$0xff] }
  0x63   :  { %1984 = vmatpush.msrb.mxu2 %v251_v63  ;;  %1907 = vmatpush.msra.mxu0 %v232_v0  ;;  %v156_v63 = vld [vmem:[%s9209_s1 + $0x3e0] sm:$0xff]  ;;  %v258_v0 = vld [vmem:[%s9209_s1 + $0x710] sm:$0xff] }
  0x64   :  { %1947 = vmatpush.msra.mxu3 %v41_v1  ;;  %1963 = vmatpush.msra.mxu1 %v161_v2  ;;  %v42_v1 = vld [vmem:[%s9209_s1 + $0x50] sm:$0xff]  ;;  %v91_v2 = vld [vmem:[%s9209_s1 + $0x1d8] sm:$0xff] }
  0x65   :  { %1985 = vmatpush.msrb.mxu2 %v245_v3  ;;  %1908 = vmatpush.msra.mxu0 %v226_v4  ;;  %v150_v3 = vld [vmem:[%s9209_s1 + $0x3b0] sm:$0xff]  ;;  %v252_v4 = vld [vmem:[%s9209_s1 + $0x6e0] sm:$0xff] }
  0x66   :  { %1948 = vmatpush.msra.mxu3 %v35_v5  ;;  %1964 = vmatpush.msra.mxu1 %v155_v6  ;;  %v36_v5 = vld [vmem:[%s9209_s1 + $0x20] sm:$0xff]  ;;  %v85_v6 = vld [vmem:[%s9209_s1 + $0x1a8] sm:$0xff] }
  0x67   :  { %1986 = vmatpush.msrb.mxu2 %v239_v8  ;;  %1909 = vmatmul.f32.vlgmr.msra.gmra.mxu0 %v4238_v10  ;;  %v144_v8 = vld [vmem:[%s9209_s1 + $0x380] sm:$0xff] }
  0x68   :  { %3949 = vmatmul.msk.f32.vlgmr.msrb.gmra.mxu1 %vm1689_vm0, %v4387_v57  ;;  %1949 = vmatmul.f32.vlgmr.msra.gmra.mxu3 %v4365_v51 }
  0x69   :  { %1965 = vmatpush.msra.mxu1 %v149_v9  ;;  %2013 = vmatpush.msrb.mxu3 %v126_v11  ;;  %v223_v9 = vld [vmem:[%s9209_s1 + $0x5f8] sm:$0xff]  ;;  %v246_v11 = vld [vmem:[%s9209_s1 + $0x6b0] sm:$0xff] }
  0x6a   :  { %1987 = vmatpush.msrb.mxu2 %v233_v12  ;;  %2007 = vmatpush.msrb.mxu0 %v329_v14  ;;  %v138_v12 = vld [vmem:[%s9209_s1 + $0x350] sm:$0xff]  ;;  %v217_v14 = vld [vmem:[%s9209_s1 + $0x5c8] sm:$0xff] }
  0x6b   :  { %1966 = vmatpush.msra.mxu1 %v143_v13  ;;  %2014 = vmatpush.msrb.mxu3 %v120_v15  ;;  %v79_v13 = vld [vmem:[%s9209_s1 + $0x178] sm:$0xff]  ;;  %v240_v15 = vld [vmem:[%s9209_s1 + $0x680] sm:$0xff] }
  0x6c   :  { %1988 = vmatpush.msrb.mxu2 %v227_v16  ;;  %2008 = vmatpush.msrb.mxu0 %v323_v19  ;;  %v132_v16 = vld [vmem:[%s9209_s1 + $0x320] sm:$0xff]  ;;  %v234_v19 = vld [vmem:[%s9209_s1 + $0x650] sm:$0xff] }
  0x6d   :  { %1989 = vmatmul.f32.vlgmr.msrb.gmra.mxu2 %v4238_v10  ;;  %1967 = vmatpush.msra.mxu1 %v137_v17  ;;  %v73_v17 = vld [vmem:[%s9209_s1 + $0x148] sm:$0xff] }
  0x6e   :  { %2015 = vmatpush.msrb.mxu3 %v114_v18  ;;  %2033 = vmatpush.msra.mxu0 %v222_v21  ;;  %v211_v18 = vld [vmem:[%s9209_s1 + $0x598] sm:$0xff]  ;;  %v205_v21 = vld [vmem:[%s9209_s1 + $0x568] sm:$0xff] }
  0x6f   :  { %1968 = vmatpush.msra.mxu1 %v131_v20  ;;  %3950 = vmatmul.msk.f32.vlgmr.msrb.gmra.mxu0 %vm1689_vm0, %v4387_v57  ;;  %v67_v20 = vld [vmem:[%s9209_s1 + $0x118] sm:$0xff] }
  0x70   :  { %2016 = vmatpush.msrb.mxu3 %v108_v22  ;;  %1969 = vmatmul.f32.vlgmr.msra.gmra.mxu1 %v4227_v7  ;;  %v319_v22 = vld [vmem:[%s9209_s1 + $0x8f8] sm:$0xff] }
  0x71   :  { %2034 = vmatpush.msra.mxu0 %v216_v23  ;;  %2053 = vmatpush.msrb.mxu1 %v318_v24  ;;  %v228_v23 = vld [vmem:[%s9209_s1 + $0x620] sm:$0xff]  ;;  %v61_v24 = vld [vmem:[%s9209_s1 + $0xe8] sm:$0xff] }
  0x72   :  { %2017 = vmatpush.msrb.mxu3 %v102_v25  ;;  %2087 = vmatpush.msra.mxu2 %v330_v29  ;;  %v199_v25 = vld [vmem:[%s9209_s1 + $0x538] sm:$0xff] }
  0x73   :  { %2035 = vmatpush.msra.mxu0 %v210_v26  ;;  %2054 = vmatpush.msrb.mxu1 %v312_v27  ;;  %v313_v26 = vld [vmem:[%s9209_s1 + $0x8c8] sm:$0xff]  ;;  %v55_v27 = vld [vmem:[%s9209_s1 + $0xb8] sm:$0xff] }
  0x74   :  { %2018 = vmatpush.msrb.mxu3 %v96_v28  ;;  %2088 = vmatpush.msra.mxu2 %v324_v33  ;;  %v331_v28 = vld [vmem:[%s9209_s1 + $0x958] sm:$0xff] }
  0x75   :  { %2036 = vmatpush.msra.mxu0 %v204_v30  ;;  %2055 = vmatpush.msrb.mxu1 %v306_v31  ;;  %v307_v29 = vld [vmem:[%s9209_s1 + $0x898] sm:$0xff]  ;;  %v49_v30 = vld [vmem:[%s9209_s1 + $0x88] sm:$0xff] }
  0x76   :  { %2019 = vmatpush.msrb.mxu3 %v90_v32  ;;  %2093 = vmatpush.msrb.mxu2 %v127_v37  ;;  %v187_v31 = vld [vmem:[%s9209_s1 + $0x4d8] sm:$0xff]  ;;  %v325_v32 = vld [vmem:[%s9209_s1 + $0x928] sm:$0xff] }
  0x77   :  { %2037 = vmatpush.msra.mxu0 %v198_v34  ;;  %2056 = vmatpush.msrb.mxu1 %v300_v35  ;;  %v43_v33 = vld [vmem:[%s9209_s1 + $0x58] sm:$0xff]  ;;  %v181_v34 = vld [vmem:[%s9209_s1 + $0x4a8] sm:$0xff]  ;;  %v512_v35 = vld [vmem:[%s9211_s3 + $0x5a0] sm:$0xff] }
  0x78   :  { %2020 = vmatpush.msrb.mxu3 %v84_v36  ;;  %2094 = vmatpush.msrb.mxu2 %v121_v41  ;;  %v295_v36 = vld [vmem:[%s9209_s1 + $0x838] sm:$0xff]  ;;  %v37_v37 = vld [vmem:[%s9209_s1 + $0x28] sm:$0xff]  ;;  %v500_v41 = vld [vmem:[%s9211_s3 + $0x540] sm:$0xff] }
  0x79   :  { %2038 = vmatpush.msra.mxu0 %v192_v38  ;;  %2057 = vmatpush.msrb.mxu1 %v294_v39  ;;  %v175_v38 = vld [vmem:[%s9209_s1 + $0x478] sm:$0xff]  ;;  %v289_v39 = vld [vmem:[%s9209_s1 + $0x808] sm:$0xff] }
  0x7a   :  { %2021 = vmatpush.msrb.mxu3 %v78_v40  ;;  %2095 = vmatpush.msrb.mxu2 %v115_v45  ;;  %v169_v40 = vld [vmem:[%s9209_s1 + $0x448] sm:$0xff]  ;;  %v488_v45 = vld [vmem:[%s9211_s3 + $0x4e0] sm:$0xff] }
  0x7b   :  { %2039 = vmatpush.msra.mxu0 %v186_v42  ;;  %2058 = vmatpush.msrb.mxu1 %v288_v43  ;;  %v283_v42 = vld [vmem:[%s9209_s1 + $0x7d8] sm:$0xff]  ;;  %v704_v43 = vld [vmem:[%s9211_s3 + $0xba0] sm:$0xff] }
  0x7c   :  { %2022 = vmatpush.msrb.mxu3 %v72_v44  ;;  %2096 = vmatpush.msrb.mxu2 %v109_v49  ;;  %v163_v44 = vld [vmem:[%s9209_s1 + $0x418] sm:$0xff]  ;;  %v680_v49 = vld [vmem:[%s9211_s3 + $0xae0] sm:$0xff] }
  0x7d   :  { %2040 = vmatpush.msra.mxu0 %v180_v46  ;;  %2059 = vmatpush.msrb.mxu1 %v282_v47  ;;  %v692_v46 = vld [vmem:[%s9211_s3 + $0xb40] sm:$0xff]  ;;  %v157_v47 = vld [vmem:[%s9209_s1 + $0x3e8] sm:$0xff] }
  0x7e   :  { %2023 = vmatpush.msrb.mxu3 %v66_v48  ;;  %3951 = vmatmul.msk.f32.vlgmr.msra.gmra.mxu2 %vm1689_vm0, %v4387_v57  ;;  %v271_v48 = vld [vmem:[%s9209_s1 + $0x778] sm:$0xff] }
  0x7f   :  { %2041 = vmatpush.msra.mxu0 %v174_v50  ;;  %2060 = vmatpush.msrb.mxu1 %v276_v52  ;;  %v151_v50 = vld [vmem:[%s9209_s1 + $0x3b8] sm:$0xff]  ;;  %v464_v52 = vld [vmem:[%s9211_s3 + $0x420] sm:$0xff] }
  0x80   :  { %2024 = vmatpush.msrb.mxu3 %v60_v53  ;;  %2097 = vmatpush.msrb.mxu2 %v103_v58  ;;  %v265_v53 = vld [vmem:[%s9209_s1 + $0x748] sm:$0xff]  ;;  %v259_v58 = vld [vmem:[%s9209_s1 + $0x718] sm:$0xff] }
  0x81   :  { %2042 = vmatpush.msra.mxu0 %v168_v54  ;;  %2061 = vmatpush.msrb.mxu1 %v270_v55  ;;  %v668_v54 = vld [vmem:[%s9211_s3 + $0xa80] sm:$0xff]  ;;  %v145_v55 = vld [vmem:[%s9209_s1 + $0x388] sm:$0xff] }
  0x82   :  { %2025 = vmatpush.msrb.mxu3 %v54_v56  ;;  %2098 = vmatpush.msrb.mxu2 %v97_v62  ;;  %v452_v56 = vld [vmem:[%s9211_s3 + $0x3c0] sm:$0xff]  ;;  %v253_v62 = vld [vmem:[%s9209_s1 + $0x6e8] sm:$0xff] }
  0x83   :  { %2043 = vmatpush.msra.mxu0 %v162_v59  ;;  %2062 = vmatpush.msrb.mxu1 %v264_v60  ;;  %v656_v59 = vld [vmem:[%s9211_s3 + $0xa20] sm:$0xff]  ;;  %v139_v60 = vld [vmem:[%s9209_s1 + $0x358] sm:$0xff] }
  0x84   :  { %2026 = vmatpush.msrb.mxu3 %v48_v61  ;;  %2099 = vmatpush.msrb.mxu2 %v91_v2  ;;  %v440_v61 = vld [vmem:[%s9211_s3 + $0x360] sm:$0xff]  ;;  %v247_v2 = vld [vmem:[%s9209_s1 + $0x6b8] sm:$0xff] }
  0x85   :  { %2044 = vmatpush.msra.mxu0 %v156_v63  ;;  %2063 = vmatpush.msrb.mxu1 %v258_v0  ;;  %v644_v63 = vld [vmem:[%s9211_s3 + $0x9c0] sm:$0xff]  ;;  %v133_v0 = vld [vmem:[%s9209_s1 + $0x328] sm:$0xff] }
  0x86   :  { %2027 = vmatpush.msrb.mxu3 %v42_v1  ;;  %2100 = vmatpush.msrb.mxu2 %v85_v6  ;;  %v428_v1 = vld [vmem:[%s9211_s3 + $0x300] sm:$0xff] }
  0x87   :  { %2045 = vmatpush.msra.mxu0 %v150_v3  ;;  %2064 = vmatpush.msrb.mxu1 %v252_v4  ;;  %v896_v3 = vld [vmem:[%s9211_s3 + $0x11a0] sm:$0xff] }
  0x88   :  { %2028 = vmatpush.msrb.mxu3 %v36_v5  ;;  %2101 = vmatpush.msrb.mxu2 %v79_v13  ;;  %v632_v4 = vld [vmem:[%s9211_s3 + $0x960] sm:$0xff]  ;;  %v241_v5 = vld [vmem:[%s9209_s1 + $0x688] sm:$0xff] }
  0x89   :  { %2029 = vmatmul.f32.vlgmr.msrb.gmra.mxu3 %v4365_v51  ;;  %2046 = vmatpush.msra.mxu0 %v144_v8  ;;  %v416_v6 = vld [vmem:[%s9211_s3 + $0x2a0] sm:$0xff]  ;;  %v3958_v8 = vld [vmem:[%s9210_s0 + $0x8] sm:$0xff] }
  0x8a   :  { %2113 = vmatpush.msra.mxu3 %v223_v9  ;;  %2065 = vmatpush.msrb.mxu1 %v246_v11  ;;  %v884_v9 = vld [vmem:[%s9211_s3 + $0x1140] sm:$0xff] }
  0x8b   :  { %2047 = vmatpush.msra.mxu0 %v138_v12  ;;  %2102 = vmatpush.msrb.mxu2 %v73_v17  ;;  %v620_v11 = vld [vmem:[%s9211_s3 + $0x900] sm:$0xff]  ;;  %v235_v12 = vld [vmem:[%s9209_s1 + $0x658] sm:$0xff] }
  0x8c   :  { %2114 = vmatpush.msra.mxu3 %v217_v14  ;;  %2066 = vmatpush.msrb.mxu1 %v240_v15  ;;  %v404_v13 = vld [vmem:[%s9211_s3 + $0x240] sm:$0xff] }
  0x8d   :  { %2048 = vmatpush.msra.mxu0 %v132_v16  ;;  %2103 = vmatpush.msrb.mxu2 %v67_v20  ;;  %v872_v14 = vld [vmem:[%s9211_s3 + $0x10e0] sm:$0xff]  ;;  %v229_v16 = vld [vmem:[%s9209_s1 + $0x628] sm:$0xff] }
  0x8e   :  { %2115 = vmatpush.msra.mxu3 %v211_v18  ;;  %2067 = vmatpush.msrb.mxu1 %v234_v19  ;;  %v608_v15 = vld [vmem:[%s9211_s3 + $0x8a0] sm:$0xff] }
  0x8f   :  { %2049 = vmatmul.f32.vlgmr.msra.gmra.mxu0 %v4227_v7  ;;  %v193_v7 = vld [vmem:[%s9209_s1 + $0x508] sm:$0xff]  ;;  %2104 = vmatpush.msrb.mxu2 %v61_v24  ;;  %v392_v17 = vld [vmem:[%s9211_s3 + $0x1e0] sm:$0xff] }
  0x90   :  { %2116 = vmatpush.msra.mxu3 %v205_v21  ;;  %2133 = vmatpush.msrb.mxu0 %v319_v22  ;;  %v860_v18 = vld [vmem:[%s9211_s3 + $0x1080] sm:$0xff] }
  0x91   :  { %2068 = vmatpush.msrb.mxu1 %v228_v23  ;;  %2105 = vmatpush.msrb.mxu2 %v55_v27  ;;  %v1088_v19 = vld [vmem:[%s9211_s3 + $0x17a0] sm:$0xff]  ;;  %v3959_v23 = vld [vmem:[%s9210_s0 + $0x10] sm:$0xff] }
  0x92   :  { %2117 = vmatpush.msra.mxu3 %v199_v25  ;;  %2069 = vmatmul.f32.vlgmr.msrb.gmra.mxu1 %v4238_v10  ;;  %v301_v10 = vld [vmem:[%s9209_s1 + $0x868] sm:$0xff]  ;;  %v596_v20 = vld [vmem:[%s9211_s3 + $0x840] sm:$0xff] }
  0x93   :  { %2134 = vmatpush.msrb.mxu0 %v313_v26  ;;  %2167 = vmatpush.msra.mxu1 %v331_v28  ;;  %v848_v21 = vld [vmem:[%s9211_s3 + $0x1020] sm:$0xff] }
  0x94   :  { %2118 = vmatpush.msra.mxu3 %v193_v7  ;;  %2106 = vmatpush.msrb.mxu2 %v49_v30  ;;  %v380_v22 = vld [vmem:[%s9211_s3 + $0x180] sm:$0xff] }
  0x95   :  { %2135 = vmatpush.msrb.mxu0 %v307_v29  ;;  %2168 = vmatpush.msra.mxu1 %v325_v32  ;;  %v1076_v24 = vld [vmem:[%s9211_s3 + $0x1740] sm:$0xff] }
  0x96   :  { %2119 = vmatpush.msra.mxu3 %v187_v31  ;;  %2107 = vmatpush.msrb.mxu2 %v43_v33  ;;  %v584_v25 = vld [vmem:[%s9211_s3 + $0x7e0] sm:$0xff] }
  0x97   :  { %2136 = vmatpush.msrb.mxu0 %v301_v10  ;;  %2207 = vmatpush.msrb.mxu1 %v512_v35  ;;  %v836_v26 = vld [vmem:[%s9211_s3 + $0xfc0] sm:$0xff] }
  0x98   :  { %2120 = vmatpush.msra.mxu3 %v181_v34  ;;  %2108 = vmatpush.msrb.mxu2 %v37_v37  ;;  %v368_v27 = vld [vmem:[%s9211_s3 + $0x120] sm:$0xff] }
  0x99   :  { %2137 = vmatpush.msrb.mxu0 %v295_v36  ;;  %2109 = vmatmul.f32.vlgmr.msrb.gmra.mxu2 %v4365_v51  ;;  %v277_v51 = vld [vmem:[%s9209_s1 + $0x7a8] sm:$0xff]  ;;  %v1064_v7 = vld [vmem:[%s9211_s3 + $0x16e0] sm:$0xff] }
  0x9a   :  { %2121 = vmatpush.msra.mxu3 %v175_v38  ;;  %3952 = vmatmul.msk.f32.vlgmr.msra.gmra.mxu1 %vm1689_vm0, %v4387_v57  ;;  %v476_v57 = vld [vmem:[%s9211_s3 + $0x480] sm:$0xff] }
  0x9b   :  { %2138 = vmatpush.msrb.mxu0 %v289_v39  ;;  %2208 = vmatpush.msrb.mxu1 %v500_v41  ;;  %v572_v28 = vld [vmem:[%s9211_s3 + $0x780] sm:$0xff] }
  0x9c   :  { %2122 = vmatpush.msra.mxu3 %v169_v40  ;;  %2227 = vmatpush.msra.mxu2 %v704_v43  ;;  %v824_v30 = vld [vmem:[%s9211_s3 + $0xf60] sm:$0xff] }
  0x9d   :  { %2139 = vmatpush.msrb.mxu0 %v283_v42  ;;  %2209 = vmatpush.msrb.mxu1 %v488_v45  ;;  %v5073_v31 = vld [vmem:[%s9212_s2] sm:$0x3f] }
  0x9e   :  { %2123 = vmatpush.msra.mxu3 %v163_v44  ;;  %2228 = vmatpush.msra.mxu2 %v692_v46  ;;  %v356_v32 = vld [vmem:[%s9211_s3 + $0xc0] sm:$0xff]  ;;  %v1677_v36 = vperm.slane %v5073_v31, 0 }
  0x9f   :  { %2140 = vmatpush.msrb.mxu0 %v277_v51  ;;  %2210 = vmatpush.msrb.mxu1 %v476_v57  ;;  %v1052_v10 = vld [vmem:[%s9211_s3 + $0x1680] sm:$0xff] }
  0xa0   :  { %2124 = vmatpush.msra.mxu3 %v157_v47  ;;  %2229 = vmatpush.msra.mxu2 %v680_v49  ;;  %v560_v33 = vld [vmem:[%s9211_s3 + $0x720] sm:$0xff] }
  0xa1   :  { %2141 = vmatpush.msrb.mxu0 %v271_v48  ;;  %2211 = vmatpush.msrb.mxu1 %v464_v52  ;;  %v812_v34 = vld [vmem:[%s9211_s3 + $0xf00] sm:$0xff] }
  0xa2   :  { %2125 = vmatpush.msra.mxu3 %v151_v50  ;;  %2230 = vmatpush.msra.mxu2 %v668_v54  ;;  %v344_v35 = vld [vmem:[%s9211_s3 + $0x60] sm:$0xff] }
  0xa3   :  { %2142 = vmatpush.msrb.mxu0 %v265_v53  ;;  %2212 = vmatpush.msrb.mxu1 %v452_v56  ;;  %v1730_v29 = vpop.f32.mrf.mxu1  ;;  %v1040_v37 = vld [vmem:[%s9211_s3 + $0x1620] sm:$0xff] }
  0xa4   :  { %2126 = vmatpush.msra.mxu3 %v145_v55  ;;  %2231 = vmatpush.msra.mxu2 %v656_v59  ;;  %v548_v38 = vld [vmem:[%s9211_s3 + $0x6c0] sm:$0xff]  ;;  %v1678_v55 = vperm.slane %v5073_v31, 1 }
  0xa5   :  { %2143 = vmatpush.msrb.mxu0 %v259_v58  ;;  %2213 = vmatpush.msrb.mxu1 %v440_v61  ;;  %v800_v39 = vld [vmem:[%s9211_s3 + $0xea0] sm:$0xff] }
  0xa6   :  { %2127 = vmatpush.msra.mxu3 %v139_v60  ;;  %2232 = vmatpush.msra.mxu2 %v644_v63  ;;  %v332_v40 = vld [vmem:[%s9211_s3] sm:$0xff] }
  0xa7   :  { %2144 = vmatpush.msrb.mxu0 %v253_v62  ;;  %2214 = vmatpush.msrb.mxu1 %v428_v1  ;;  %v1028_v41 = vld [vmem:[%s9211_s3 + $0x15c0] sm:$0xff] }
  0xa8   :  { %2128 = vmatpush.msra.mxu3 %v133_v0  ;;  %2233 = vmatpush.msra.mxu2 %v632_v4  ;;  %v536_v42 = vld [vmem:[%s9211_s3 + $0x660] sm:$0xff] }
  0xa9   :  { %2129 = vmatmul.f32.vlgmr.msra.gmra.mxu3 %v3958_v8  ;;  %2145 = vmatpush.msrb.mxu0 %v247_v2  ;;  %v788_v44 = vld [vmem:[%s9211_s3 + $0xe40] sm:$0xff] }
  0xaa   :  { %2247 = vmatpush.msrb.mxu3 %v896_v3  ;;  %2215 = vmatpush.msrb.mxu1 %v416_v6  ;;  %v1280_v45 = vld [vmem:[%s9211_s3 + $0x1da0] sm:$0xff]  ;;  %v1750_v53 = vpop.f32.mrf.mxu2 }
  0xab   :  { %2146 = vmatpush.msrb.mxu0 %v241_v5  ;;  %2234 = vmatpush.msra.mxu2 %v620_v11  ;;  %v1016_v46 = vld [vmem:[%s9211_s3 + $0x1560] sm:$0xff] }
  0xac   :  { %2248 = vmatpush.msrb.mxu3 %v884_v9  ;;  %2216 = vmatpush.msrb.mxu1 %v404_v13  ;;  %v524_v47 = vld [vmem:[%s9211_s3 + $0x600] sm:$0xff] }
  0xad   :  { %2147 = vmatpush.msrb.mxu0 %v235_v12  ;;  %2235 = vmatpush.msra.mxu2 %v608_v15  ;;  %v776_v57 = vld [vmem:[%s9211_s3 + $0xde0] sm:$0xff] }
  0xae   :  { %2249 = vmatpush.msrb.mxu3 %v872_v14  ;;  %2217 = vmatpush.msrb.mxu1 %v392_v17  ;;  %v1268_v48 = vld [vmem:[%s9211_s3 + $0x1d40] sm:$0xff]  ;;  %v513_v14 = vld [vmem:[%s9211_s3 + $0x5a8] sm:$0xff] }
  0xaf   :  { %2148 = vmatpush.msrb.mxu0 %v229_v16  ;;  %2236 = vmatpush.msra.mxu2 %v596_v20  ;;  %v1004_v50 = vld [vmem:[%s9211_s3 + $0x1500] sm:$0xff]  ;;  %v501_v20 = vld [vmem:[%s9211_s3 + $0x548] sm:$0xff] }
  0xb0   :  { %2149 = vmatmul.f32.vlgmr.msrb.gmra.mxu0 %v3959_v23  ;;  %2250 = vmatpush.msrb.mxu3 %v860_v18  ;;  %v764_v54 = vld [vmem:[%s9211_s3 + $0xd80] sm:$0xff] }
  0xb1   :  { %2267 = vmatpush.msra.mxu0 %v1088_v19  ;;  %2218 = vmatpush.msrb.mxu1 %v380_v22  ;;  %v1256_v56 = vld [vmem:[%s9211_s3 + $0x1ce0] sm:$0xff] }
  0xb2   :  { %2251 = vmatpush.msrb.mxu3 %v848_v21  ;;  %2237 = vmatpush.msra.mxu2 %v584_v25  ;;  %v992_v59 = vld [vmem:[%s9211_s3 + $0x14a0] sm:$0xff] }
  0xb3   :  { %2268 = vmatpush.msra.mxu0 %v1076_v24  ;;  %2219 = vmatpush.msrb.mxu1 %v368_v27  ;;  %v752_v60 = vld [vmem:[%s9211_s3 + $0xd20] sm:$0xff]  ;;  %v489_v24 = vld [vmem:[%s9211_s3 + $0x4e8] sm:$0xff] }
  0xb4   :  { %2252 = vmatpush.msrb.mxu3 %v836_v26  ;;  %2238 = vmatpush.msra.mxu2 %v572_v28  ;;  %v1244_v61 = vld [vmem:[%s9211_s3 + $0x1c80] sm:$0xff] }
  0xb5   :  { %2269 = vmatpush.msra.mxu0 %v1064_v7  ;;  %2220 = vmatpush.msrb.mxu1 %v356_v32  ;;  %v980_v0 = vld [vmem:[%s9211_s3 + $0x1440] sm:$0xff]  ;;  %v477_v7 = vld [vmem:[%s9211_s3 + $0x488] sm:$0xff] }
  0xb6   :  { %2253 = vmatpush.msrb.mxu3 %v824_v30  ;;  %2239 = vmatpush.msra.mxu2 %v560_v33  ;;  %v740_v2 = vld [vmem:[%s9211_s3 + $0xcc0] sm:$0xff]  ;;  %v465_v32 = vld [vmem:[%s9211_s3 + $0x428] sm:$0xff] }
  0xb7   :  { %2270 = vmatpush.msra.mxu0 %v1052_v10  ;;  %2221 = vmatpush.msrb.mxu1 %v344_v35  ;;  %v968_v4 = vld [vmem:[%s9211_s3 + $0x13e0] sm:$0xff]  ;;  %v693_v10 = vld [vmem:[%s9211_s3 + $0xb48] sm:$0xff] }
  0xb8   :  { %2254 = vmatpush.msrb.mxu3 %v812_v34  ;;  %2240 = vmatpush.msra.mxu2 %v548_v38  ;;  %v1232_v5 = vld [vmem:[%s9211_s3 + $0x1c20] sm:$0xff]  ;;  %v453_v34 = vld [vmem:[%s9211_s3 + $0x3c8] sm:$0xff] }
  0xb9   :  { %v1710_v43 = vpop.f32.mrf.mxu0  ;;  %2271 = vmatpush.msra.mxu0 %v1040_v37  ;;  %2222 = vmatpush.msrb.mxu1 %v332_v40  ;;  %v728_v6 = vld [vmem:[%s9211_s3 + $0xc60] sm:$0xff]  ;;  %v681_v35 = vld [vmem:[%s9211_s3 + $0xae8] sm:$0xff] }
  0xba   :  { %2255 = vmatpush.msrb.mxu3 %v800_v39  ;;  %v1711_v51 = vadd.f32 %v1710_v43, %v1677_v36  ;;  %2241 = vmatpush.msra.mxu2 %v536_v42  ;;  %v956_v9 = vld [vmem:[%s9211_s3 + $0x1380] sm:$0xff]  ;;  %v441_v37 = vld [vmem:[%s9211_s3 + $0x368] sm:$0xff] }
  0xbb   :  { %2272 = vmatpush.msra.mxu0 %v1028_v41  ;;  %2287 = vmatpush.msra.mxu1 %v1280_v45  ;;  %v1220_v11 = vld [vmem:[%s9211_s3 + $0x1bc0] sm:$0xff]  ;;  %v669_v38 = vld [vmem:[%s9211_s3 + $0xa88] sm:$0xff] }
  0xbc   :  { %2256 = vmatpush.msrb.mxu3 %v788_v44  ;;  %v1731_v49 = vadd.f32 %v1730_v29, %v1711_v51  ;;  %v1770_v52 = vpop.f32.mrf.mxu1  ;;  %2242 = vmatpush.msra.mxu2 %v524_v47  ;;  %v716_v13 = vld [vmem:[%s9211_s3 + $0xc00] sm:$0xff]  ;;  %v705_v29 = vld [vmem:[%s9211_s3 + $0xba8] sm:$0xff] }
  0xbd   :  { %2273 = vmatpush.msra.mxu0 %v1016_v46  ;;  %2288 = vmatpush.msra.mxu1 %v1268_v48  ;;  %v944_v15 = vld [vmem:[%s9211_s3 + $0x1320] sm:$0xff]  ;;  %v429_v40 = vld [vmem:[%s9211_s3 + $0x308] sm:$0xff] }
  0xbe   :  { %2257 = vmatpush.msrb.mxu3 %v776_v57  ;;  %v1751_v58 = vadd.f32 %v1750_v53, %v1731_v49  ;;  %v1208_v18 = vld [vmem:[%s9211_s3 + $0x1b60] sm:$0xff]  ;;  %v657_v41 = vld [vmem:[%s9211_s3 + $0xa28] sm:$0xff] }
  0xbf   :  { %2274 = vmatpush.msra.mxu0 %v1004_v50  ;;  %v1790_v63 = vpop.f32.mrf.mxu3  ;;  %2289 = vmatpush.msra.mxu1 %v1256_v56  ;;  %v932_v21 = vld [vmem:[%s9211_s3 + $0x12c0] sm:$0xff]  ;;  %v417_v44 = vld [vmem:[%s9211_s3 + $0x2a8] sm:$0xff] }
  0xc0   :  { %v1771_v62 = vadd.f32 %v1770_v52, %v1751_v58  ;;  %2258 = vmatpush.msrb.mxu3 %v764_v54  ;;  %v1791_v1 = vadd.f32 %v1790_v63, %v1678_v55  ;;  %v1196_v22 = vld [vmem:[%s9211_s3 + $0x1b00] sm:$0xff]  ;;  %v645_v45 = vld [vmem:[%s9211_s3 + $0x9c8] sm:$0xff]  ;;  %v1679_v58 = vperm.slane %v5073_v31, 2 }
  0xc1   :  { %2275 = vmatpush.msra.mxu0 %v992_v59  ;;  %2290 = vmatpush.msra.mxu1 %v1244_v61  ;;  %v920_v25 = vld [vmem:[%s9211_s3 + $0x1260] sm:$0xff]  ;;  %v405_v47 = vld [vmem:[%s9211_s3 + $0x248] sm:$0xff] }
  0xc2   :  { %v5152_v3 = vmax.f32 %v1771_v62, 0.0  ;;  %2259 = vmatpush.msrb.mxu3 %v752_v60  ;;  %v1184_v26 = vld [vmem:[%s9211_s3 + $0x1aa0] sm:$0xff]  ;;  %v633_v48 = vld [vmem:[%s9211_s3 + $0x968] sm:$0xff] }
  0xc3   :  { %2276 = vmatpush.msra.mxu0 %v980_v0  ;;  %2291 = vmatpush.msra.mxu1 %v1232_v5  ;;  %v908_v28 = vld [vmem:[%s9211_s3 + $0x1200] sm:$0xff]  ;;  %v393_v50 = vld [vmem:[%s9211_s3 + $0x1e8] sm:$0xff] }
  0xc4   :  { %v1810_v8 = vpop.f32.mrf.mxu0  ;;  %2260 = vmatpush.msrb.mxu3 %v740_v2  ;;  %2223 = vmatmul.f32.vlgmr.msrb.gmra.mxu1 %v5152_v3  ;;  %v1172_v30 = vld [vmem:[%s9211_s3 + $0x1a40] sm:$0xff]  ;;  %v897_v52 = vld [vmem:[%s9211_s3 + $0x11a8] sm:$0xff] }
  0xc5   :  { %v1811_v12 = vadd.f32 %v1810_v8, %v1791_v1  ;;  %2277 = vmatpush.msra.mxu0 %v968_v4  ;;  %2292 = vmatpush.msra.mxu1 %v1220_v11  ;;  %v1160_v33 = vld [vmem:[%s9211_s3 + $0x19e0] sm:$0xff]  ;;  %v621_v53 = vld [vmem:[%s9211_s3 + $0x908] sm:$0xff] }
  0xc6   :  { %2261 = vmatpush.msrb.mxu3 %v728_v6  ;;  %v1830_v16 = vpop.f32.mrf.mxu1  ;;  %v1148_v36 = vld [vmem:[%s9211_s3 + $0x1980] sm:$0xff]  ;;  %v381_v55 = vld [vmem:[%s9211_s3 + $0x188] sm:$0xff] }
  0xc7   :  { %v1850_v17 = vpop.f32.mrf.mxu2  ;;  %2278 = vmatpush.msra.mxu0 %v956_v9  ;;  %v1831_v19 = vadd.f32 %v1830_v16, %v1811_v12  ;;  %2293 = vmatpush.msra.mxu1 %v1208_v18  ;;  %v1136_v39 = vld [vmem:[%s9211_s3 + $0x1920] sm:$0xff]  ;;  %v885_v56 = vld [vmem:[%s9211_s3 + $0x1148] sm:$0xff] }
  0xc8   :  { %2262 = vmatpush.msrb.mxu3 %v716_v13  ;;  %v1124_v42 = vld [vmem:[%s9211_s3 + $0x18c0] sm:$0xff]  ;;  %v609_v59 = vld [vmem:[%s9211_s3 + $0x8a8] sm:$0xff] }
  0xc9   :  { %2279 = vmatpush.msra.mxu0 %v944_v15  ;;  %v1851_v23 = vadd.f32 %v1850_v17, %v1831_v19  ;;  %2294 = vmatpush.msra.mxu1 %v1196_v22  ;;  %v1472_v43 = vld [vmem:[%s9211_s3 + $0x23a0] sm:$0xff]  ;;  %v369_v61 = vld [vmem:[%s9211_s3 + $0x128] sm:$0xff] }
  0xca   :  { %2327 = vmatpush.msra.mxu3 %v513_v14  ;;  %v1112_v51 = vld [vmem:[%s9211_s3 + $0x1860] sm:$0xff]  ;;  %2307 = vmatpush.msrb.mxu2 %v1472_v43  ;;  %v873_v62 = vld [vmem:[%s9211_s3 + $0x10e8] sm:$0xff] }
  0xcb   :  { %2280 = vmatpush.msra.mxu0 %v932_v21  ;;  %v5200_v27 = vmax.f32 %v1851_v23, 0.0  ;;  %2295 = vmatpush.msra.mxu1 %v1184_v26  ;;  %v1460_v46 = vld [vmem:[%s9211_s3 + $0x2340] sm:$0xff]  ;;  %v597_v63 = vld [vmem:[%s9211_s3 + $0x848] sm:$0xff] }
  0xcc   :  { %2328 = vmatpush.msra.mxu3 %v501_v20  ;;  %v1448_v57 = vld [vmem:[%s9211_s3 + $0x22e0] sm:$0xff]  ;;  %2308 = vmatpush.msrb.mxu2 %v1460_v46  ;;  %v357_v2 = vld [vmem:[%s9211_s3 + $0xc8] sm:$0xff] }
  0xcd   :  { %2281 = vmatpush.msra.mxu0 %v920_v25  ;;  %2243 = vmatmul.f32.vlgmr.msra.gmra.mxu2 %v5200_v27  ;;  %v1100_v49 = vld [vmem:[%s9211_s3 + $0x1800] sm:$0xff]  ;;  %v861_v4 = vld [vmem:[%s9211_s3 + $0x1088] sm:$0xff] }
  0xce   :  { %2329 = vmatpush.msra.mxu3 %v489_v24  ;;  %2296 = vmatpush.msra.mxu1 %v1172_v30  ;;  %v1436_v54 = vld [vmem:[%s9211_s3 + $0x2280] sm:$0xff]  ;;  %v585_v6 = vld [vmem:[%s9211_s3 + $0x7e8] sm:$0xff] }
  0xcf   :  { %2282 = vmatpush.msra.mxu0 %v908_v28  ;;  %2309 = vmatpush.msrb.mxu2 %v1448_v57  ;;  %v1424_v60 = vld [vmem:[%s9211_s3 + $0x2220] sm:$0xff]  ;;  %v345_v9 = vld [vmem:[%s9211_s3 + $0x68] sm:$0xff]  ;;  %v1680_v28 = vperm.slane %v5073_v31, 3 }
  0xd0   :  { %2330 = vmatpush.msra.mxu3 %v477_v7  ;;  %2297 = vmatpush.msra.mxu1 %v1160_v33  ;;  %v1412_v0 = vld [vmem:[%s9211_s3 + $0x21c0] sm:$0xff]  ;;  %v849_v11 = vld [vmem:[%s9211_s3 + $0x1028] sm:$0xff] }
  0xd1   :  { %2347 = vmatpush.msrb.mxu0 %v705_v29  ;;  %2310 = vmatpush.msrb.mxu2 %v1436_v54  ;;  %v1400_v8 = vld [vmem:[%s9211_s3 + $0x2160] sm:$0xff]  ;;  %v573_v13 = vld [vmem:[%s9211_s3 + $0x788] sm:$0xff] }
  0xd2   :  { %2331 = vmatpush.msra.mxu3 %v465_v32  ;;  %2298 = vmatpush.msra.mxu1 %v1148_v36  ;;  %v1388_v14 = vld [vmem:[%s9211_s3 + $0x2100] sm:$0xff]  ;;  %v333_v16 = vld [vmem:[%s9211_s3 + $0x8] sm:$0xff] }
  0xd3   :  { %2348 = vmatpush.msrb.mxu0 %v693_v10  ;;  %2311 = vmatpush.msrb.mxu2 %v1424_v60  ;;  %v837_v17 = vld [vmem:[%s9211_s3 + $0xfc8] sm:$0xff]  ;;  %v1376_v21 = vld [vmem:[%s9211_s3 + $0x20a0] sm:$0xff] }
  0xd4   :  { %2332 = vmatpush.msra.mxu3 %v453_v34  ;;  %2299 = vmatpush.msra.mxu1 %v1136_v39  ;;  %v561_v20 = vld [vmem:[%s9211_s3 + $0x728] sm:$0xff]  ;;  %v1364_v25 = vld [vmem:[%s9211_s3 + $0x2040] sm:$0xff] }
  0xd5   :  { %2349 = vmatpush.msrb.mxu0 %v681_v35  ;;  %2312 = vmatpush.msrb.mxu2 %v1412_v0  ;;  %v825_v23 = vld [vmem:[%s9211_s3 + $0xf68] sm:$0xff]  ;;  %v1352_v34 = vld [vmem:[%s9211_s3 + $0x1fe0] sm:$0xff] }
  0xd6   :  { %2333 = vmatpush.msra.mxu3 %v441_v37  ;;  %2300 = vmatpush.msra.mxu1 %v1124_v42  ;;  %v549_v24 = vld [vmem:[%s9211_s3 + $0x6c8] sm:$0xff]  ;;  %v1292_v60 = vld [vmem:[%s9211_s3 + $0x1e00] sm:$0xff] }
  0xd7   :  { %2350 = vmatpush.msrb.mxu0 %v669_v38  ;;  %2313 = vmatpush.msrb.mxu2 %v1400_v8  ;;  %v813_v7 = vld [vmem:[%s9211_s3 + $0xf08] sm:$0xff] }
  0xd8   :  { %2334 = vmatpush.msra.mxu3 %v429_v40  ;;  %2301 = vmatpush.msra.mxu1 %v1112_v51  ;;  %v537_v29 = vld [vmem:[%s9211_s3 + $0x668] sm:$0xff]  ;;  %v1340_v40 = vld [vmem:[%s9211_s3 + $0x1f80] sm:$0xff] }
  0xd9   :  { %2351 = vmatpush.msrb.mxu0 %v657_v41  ;;  %2314 = vmatpush.msrb.mxu2 %v1388_v14  ;;  %v1281_v32 = vld [vmem:[%s9211_s3 + $0x1da8] sm:$0xff] }
  0xda   :  { %2335 = vmatpush.msra.mxu3 %v417_v44  ;;  %2302 = vmatpush.msra.mxu1 %v1100_v49  ;;  %v801_v10 = vld [vmem:[%s9211_s3 + $0xea8] sm:$0xff]  ;;  %v1328_v44 = vld [vmem:[%s9211_s3 + $0x1f20] sm:$0xff] }
  0xdb   :  { %2352 = vmatpush.msrb.mxu0 %v645_v45  ;;  %2315 = vmatpush.msrb.mxu2 %v1376_v21  ;;  %v525_v33 = vld [vmem:[%s9211_s3 + $0x608] sm:$0xff] }
  0xdc   :  { %2336 = vmatpush.msra.mxu3 %v405_v47  ;;  %2367 = vmatpush.msrb.mxu1 %v897_v52  ;;  %v1269_v36 = vld [vmem:[%s9211_s3 + $0x1d48] sm:$0xff] }
  0xdd   :  { %2353 = vmatpush.msrb.mxu0 %v633_v48  ;;  %2316 = vmatpush.msrb.mxu2 %v1364_v25  ;;  %v789_v37 = vld [vmem:[%s9211_s3 + $0xe48] sm:$0xff]  ;;  %v1316_v48 = vld [vmem:[%s9211_s3 + $0x1ec0] sm:$0xff] }
  0xde   :  { %2337 = vmatpush.msra.mxu3 %v393_v50  ;;  %2368 = vmatpush.msrb.mxu1 %v885_v56  ;;  %v1257_v41 = vld [vmem:[%s9211_s3 + $0x1ce8] sm:$0xff] }
  0xdf   :  { %2354 = vmatpush.msrb.mxu0 %v621_v53  ;;  %v1870_v1 = vpop.f32.mrf.mxu3  ;;  %2317 = vmatpush.msrb.mxu2 %v1352_v34  ;;  %v777_v42 = vld [vmem:[%s9211_s3 + $0xde8] sm:$0xff]  ;;  %v1304_v53 = vld [vmem:[%s9211_s3 + $0x1e60] sm:$0xff]  ;;  %v886_v34 = vld [vmem:[%s9211_s3 + $0x1150] sm:$0xff] }
  0xe0   :  { %2338 = vmatpush.msra.mxu3 %v381_v55  ;;  %v1871_v5 = vadd.f32 %v1870_v1, %v1679_v58  ;;  %2369 = vmatpush.msrb.mxu1 %v873_v62  ;;  %v1245_v46 = vld [vmem:[%s9211_s3 + $0x1c88] sm:$0xff] }
  0xe1   :  { %2355 = vmatpush.msrb.mxu0 %v609_v59  ;;  %2318 = vmatpush.msrb.mxu2 %v1340_v40  ;;  %v765_v47 = vld [vmem:[%s9211_s3 + $0xd88] sm:$0xff]  ;;  %v874_v40 = vld [vmem:[%s9211_s3 + $0x10f0] sm:$0xff] }
  0xe2   :  { %2339 = vmatpush.msra.mxu3 %v369_v61  ;;  %v1890_v12 = vpop.f32.mrf.mxu2  ;;  %2370 = vmatpush.msrb.mxu1 %v861_v4  ;;  %v1233_v49 = vld [vmem:[%s9211_s3 + $0x1c28] sm:$0xff] }
  0xe3   :  { %2356 = vmatpush.msrb.mxu0 %v597_v63  ;;  %v1891_v15 = vadd.f32 %v1890_v12, %v1871_v5  ;;  %2319 = vmatpush.msrb.mxu2 %v1328_v44  ;;  %v753_v50 = vld [vmem:[%s9211_s3 + $0xd28] sm:$0xff] }
  0xe4   :  { %2340 = vmatpush.msra.mxu3 %v357_v2  ;;  %v1910_v18 = vpop.f32.mrf.mxu0  ;;  %2371 = vmatpush.msrb.mxu1 %v849_v11  ;;  %v1221_v54 = vld [vmem:[%s9211_s3 + $0x1bc8] sm:$0xff] }
  0xe5   :  { %2357 = vmatpush.msrb.mxu0 %v585_v6  ;;  %v1930_v19 = vpop.f32.mrf.mxu1  ;;  %v1911_v22 = vadd.f32 %v1910_v18, %v1891_v15  ;;  %2320 = vmatpush.msrb.mxu2 %v1316_v48  ;;  %v1473_v56 = vld [vmem:[%s9211_s3 + $0x23a8] sm:$0xff]  ;;  %v850_v48 = vld [vmem:[%s9211_s3 + $0x1030] sm:$0xff] }
  0xe6   :  { %2341 = vmatpush.msra.mxu3 %v345_v9  ;;  %2372 = vmatpush.msrb.mxu1 %v837_v17  ;;  %v741_v58 = vld [vmem:[%s9211_s3 + $0xcc8] sm:$0xff] }
  0xe7   :  { %2358 = vmatpush.msrb.mxu0 %v573_v13  ;;  %v1931_v26 = vadd.f32 %v1930_v19, %v1911_v22  ;;  %v1209_v59 = vld [vmem:[%s9211_s3 + $0x1b68] sm:$0xff]  ;;  %2321 = vmatpush.msrb.mxu2 %v1304_v53  ;;  %v838_v53 = vld [vmem:[%s9211_s3 + $0xfd0] sm:$0xff] }
  0xe8   :  { %2342 = vmatpush.msra.mxu3 %v333_v16  ;;  %2373 = vmatpush.msrb.mxu1 %v825_v23  ;;  %v1461_v61 = vld [vmem:[%s9211_s3 + $0x2348] sm:$0xff] }
  0xe9   :  { %2359 = vmatpush.msrb.mxu0 %v561_v20  ;;  %v5367_v30 = vmax.f32 %v1931_v26, 0.0  ;;  %v729_v62 = vld [vmem:[%s9211_s3 + $0xc68] sm:$0xff]  ;;  %2322 = vmatpush.msrb.mxu2 %v1292_v60  ;;  %v1078_v60 = vld [vmem:[%s9211_s3 + $0x1750] sm:$0xff] }
  0xea   :  { %2374 = vmatpush.msrb.mxu1 %v813_v7  ;;  %v1197_v63 = vld [vmem:[%s9211_s3 + $0x1b08] sm:$0xff] }
  0xeb   :  { %2360 = vmatpush.msrb.mxu0 %v549_v24  ;;  %v1950_v35 = vpop.f32.mrf.mxu3  ;;  %2263 = vmatmul.f32.vlgmr.msrb.gmra.mxu3 %v5367_v30  ;;  %v1089_v0 = vld [vmem:[%s9211_s3 + $0x17a8] sm:$0xff] }
  0xec   :  { %v1951_v38 = vadd.f32 %v1950_v35, %v1680_v28  ;;  %2407 = vmatpush.msrb.mxu3 %v1281_v32  ;;  %2375 = vmatpush.msrb.mxu1 %v801_v10  ;;  %v2010_v51 = vpop.f32.mrf.mxu0  ;;  %v1449_v1 = vld [vmem:[%s9211_s3 + $0x22e8] sm:$0xff]  ;;  %v1681_v28 = vperm.slane %v5073_v31, 4  ;;  %v898_v32 = vld [vmem:[%s9211_s3 + $0x11b0] sm:$0xff] }
  0xed   :  { %2361 = vmatpush.msrb.mxu0 %v537_v29  ;;  %v1970_v39 = vpop.f32.mrf.mxu1  ;;  %v717_v2 = vld [vmem:[%s9211_s3 + $0xc08] sm:$0xff]  ;;  %2387 = vmatpush.msra.mxu2 %v1089_v0 }
  0xee   :  { %v1971_v43 = vadd.f32 %v1970_v39, %v1951_v38  ;;  %2408 = vmatpush.msrb.mxu3 %v1269_v36  ;;  %2376 = vmatpush.msrb.mxu1 %v789_v37  ;;  %v1185_v4 = vld [vmem:[%s9211_s3 + $0x1aa8] sm:$0xff] }
  0xef   :  { %2362 = vmatpush.msrb.mxu0 %v525_v33  ;;  %v1077_v5 = vld [vmem:[%s9211_s3 + $0x1748] sm:$0xff] }
  0xf0   :  { %v1990_v45 = vpop.f32.mrf.mxu2  ;;  %2409 = vmatpush.msrb.mxu3 %v1257_v41  ;;  %2377 = vmatpush.msrb.mxu1 %v777_v42  ;;  %v1437_v6 = vld [vmem:[%s9211_s3 + $0x2288] sm:$0xff] }
  0xf1   :  { %v1991_v57 = vadd.f32 %v1990_v45, %v1971_v43  ;;  %v1173_v8 = vld [vmem:[%s9211_s3 + $0x1a48] sm:$0xff]  ;;  %2388 = vmatpush.msra.mxu2 %v1077_v5  ;;  %v862_v45 = vld [vmem:[%s9211_s3 + $0x1090] sm:$0xff] }
  0xf2   :  { %2410 = vmatpush.msrb.mxu3 %v1245_v46  ;;  %2378 = vmatpush.msrb.mxu1 %v765_v47  ;;  %v1425_v9 = vld [vmem:[%s9211_s3 + $0x2228] sm:$0xff] }
  0xf3   :  { %v2011_v52 = vadd.f32 %v2010_v51, %v1991_v57  ;;  %2343 = vmatmul.f32.vlgmr.msra.gmra.mxu3 %v5152_v3  ;;  %v1065_v11 = vld [vmem:[%s9211_s3 + $0x16e8] sm:$0xff] }
  0xf4   :  { %2411 = vmatpush.msrb.mxu3 %v1233_v49  ;;  %2379 = vmatpush.msrb.mxu1 %v753_v50  ;;  %v1161_v12 = vld [vmem:[%s9211_s3 + $0x19e8] sm:$0xff] }
  0xf5   :  { %v5422_v55 = vmax.f32 %v2011_v52, 0.0  ;;  %v1413_v13 = vld [vmem:[%s9211_s3 + $0x21c8] sm:$0xff]  ;;  %2389 = vmatpush.msra.mxu2 %v1065_v11  ;;  %v466_v11 = vld [vmem:[%s9211_s3 + $0x430] sm:$0xff] }
  0xf6   :  { %2412 = vmatpush.msrb.mxu3 %v1221_v54  ;;  %2380 = vmatpush.msrb.mxu1 %v741_v58  ;;  %v1053_v14 = vld [vmem:[%s9211_s3 + $0x1688] sm:$0xff]  ;;  %v1090_v54 = vld [vmem:[%s9211_s3 + $0x17b0] sm:$0xff] }
  0xf7   :  { %2283 = vmatmul.f32.vlgmr.msra.gmra.mxu0 %v5422_v55  ;;  %v1149_v15 = vld [vmem:[%s9211_s3 + $0x1988] sm:$0xff]  ;;  %2390 = vmatpush.msra.mxu2 %v1053_v14  ;;  %v514_v58 = vld [vmem:[%s9211_s3 + $0x5b0] sm:$0xff] }
  0xf8   :  { %2427 = vmatpush.msra.mxu0 %v1473_v56  ;;  %2413 = vmatpush.msrb.mxu3 %v1209_v59  ;;  %v1401_v16 = vld [vmem:[%s9211_s3 + $0x2168] sm:$0xff]  ;;  %v826_v59 = vld [vmem:[%s9211_s3 + $0xf70] sm:$0xff] }
  0xf9   :  { %2381 = vmatpush.msrb.mxu1 %v729_v62  ;;  %v1041_v17 = vld [vmem:[%s9211_s3 + $0x1628] sm:$0xff]  ;;  %v814_v62 = vld [vmem:[%s9211_s3 + $0xf10] sm:$0xff] }
  0xfa   :  { %2428 = vmatpush.msra.mxu0 %v1461_v61  ;;  %2414 = vmatpush.msrb.mxu3 %v1197_v63  ;;  %v1137_v18 = vld [vmem:[%s9211_s3 + $0x1928] sm:$0xff]  ;;  %v502_v61 = vld [vmem:[%s9211_s3 + $0x550] sm:$0xff] }
  0xfb   :  { %2382 = vmatpush.msrb.mxu1 %v717_v2  ;;  %v1389_v19 = vld [vmem:[%s9211_s3 + $0x2108] sm:$0xff]  ;;  %2391 = vmatpush.msra.mxu2 %v1041_v17  ;;  %v1066_v63 = vld [vmem:[%s9211_s3 + $0x16f0] sm:$0xff] }
  0xfc   :  { %2429 = vmatpush.msra.mxu0 %v1449_v1  ;;  %2415 = vmatpush.msrb.mxu3 %v1185_v4  ;;  %v1029_v20 = vld [vmem:[%s9211_s3 + $0x15c8] sm:$0xff]  ;;  %v490_v1 = vld [vmem:[%s9211_s3 + $0x4f0] sm:$0xff] }
  0xfd   :  { %v1125_v21 = vld [vmem:[%s9211_s3 + $0x18c8] sm:$0xff]  ;;  %2392 = vmatpush.msra.mxu2 %v1029_v20  ;;  %v802_v2 = vld [vmem:[%s9211_s3 + $0xeb0] sm:$0xff] }
  0xfe   :  { %2430 = vmatpush.msra.mxu0 %v1437_v6  ;;  %2416 = vmatpush.msrb.mxu3 %v1173_v8  ;;  %v1377_v22 = vld [vmem:[%s9211_s3 + $0x20a8] sm:$0xff]  ;;  %v1054_v4 = vld [vmem:[%s9211_s3 + $0x1690] sm:$0xff] }
  0xff   :  { %2363 = vmatmul.f32.vlgmr.msrb.gmra.mxu0 %v5200_v27  ;;  %v1017_v23 = vld [vmem:[%s9211_s3 + $0x1568] sm:$0xff]  ;;  %v478_v6 = vld [vmem:[%s9211_s3 + $0x490] sm:$0xff] }
 0x100   :  { %2431 = vmatpush.msra.mxu0 %v1425_v9  ;;  %2417 = vmatpush.msrb.mxu3 %v1161_v12  ;;  %v1113_v24 = vld [vmem:[%s9211_s3 + $0x1868] sm:$0xff]  ;;  %v790_v8 = vld [vmem:[%s9211_s3 + $0xe50] sm:$0xff] }
 0x101   :  { %v1365_v25 = vld [vmem:[%s9211_s3 + $0x2048] sm:$0xff]  ;;  %2393 = vmatpush.msra.mxu2 %v1017_v23  ;;  %v2090_v51 = vpop.f32.mrf.mxu2  ;;  %v1042_v9 = vld [vmem:[%s9211_s3 + $0x1630] sm:$0xff] }
 0x102   :  { %2432 = vmatpush.msra.mxu0 %v1413_v13  ;;  %2418 = vmatpush.msrb.mxu3 %v1149_v15  ;;  %v1005_v26 = vld [vmem:[%s9211_s3 + $0x1508] sm:$0xff]  ;;  %v778_v12 = vld [vmem:[%s9211_s3 + $0xdf0] sm:$0xff] }
 0x103   :  { %v1101_v7 = vld [vmem:[%s9211_s3 + $0x1808] sm:$0xff]  ;;  %2394 = vmatpush.msra.mxu2 %v1005_v26  ;;  %v1030_v13 = vld [vmem:[%s9211_s3 + $0x15d0] sm:$0xff] }
 0x104   :  { %2433 = vmatpush.msra.mxu0 %v1401_v16  ;;  %2419 = vmatpush.msrb.mxu3 %v1137_v18  ;;  %v1353_v29 = vld [vmem:[%s9211_s3 + $0x1fe8] sm:$0xff]  ;;  %v454_v15 = vld [vmem:[%s9211_s3 + $0x3d0] sm:$0xff] }
 0x105   :  { %v993_v10 = vld [vmem:[%s9211_s3 + $0x14a8] sm:$0xff]  ;;  %v766_v16 = vld [vmem:[%s9211_s3 + $0xd90] sm:$0xff] }
 0x106   :  { %2434 = vmatpush.msra.mxu0 %v1389_v19  ;;  %2420 = vmatpush.msrb.mxu3 %v1125_v21  ;;  %v1341_v33 = vld [vmem:[%s9211_s3 + $0x1f88] sm:$0xff]  ;;  %v1018_v17 = vld [vmem:[%s9211_s3 + $0x1570] sm:$0xff] }
 0x107   :  { %v981_v37 = vld [vmem:[%s9211_s3 + $0x1448] sm:$0xff]  ;;  %2395 = vmatpush.msra.mxu2 %v993_v10  ;;  %v442_v18 = vld [vmem:[%s9211_s3 + $0x370] sm:$0xff] }
 0x108   :  { %2435 = vmatpush.msra.mxu0 %v1377_v22  ;;  %2421 = vmatpush.msrb.mxu3 %v1113_v24  ;;  %v1329_v39 = vld [vmem:[%s9211_s3 + $0x1f28] sm:$0xff]  ;;  %v754_v19 = vld [vmem:[%s9211_s3 + $0xd30] sm:$0xff] }
 0x109   :  { %v969_v41 = vld [vmem:[%s9211_s3 + $0x13e8] sm:$0xff]  ;;  %2396 = vmatpush.msra.mxu2 %v981_v37  ;;  %v1006_v20 = vld [vmem:[%s9211_s3 + $0x1510] sm:$0xff]  ;;  %v503_v37 = vld [vmem:[%s9211_s3 + $0x558] sm:$0xff] }
 0x10a   :  { %2436 = vmatpush.msra.mxu0 %v1365_v25  ;;  %2422 = vmatpush.msrb.mxu3 %v1101_v7  ;;  %v1317_v44 = vld [vmem:[%s9211_s3 + $0x1ec8] sm:$0xff]  ;;  %v430_v21 = vld [vmem:[%s9211_s3 + $0x310] sm:$0xff]  ;;  %v1682_v25 = vperm.slane %v5073_v31, 5 }
 0x10b   :  { %v957_v46 = vld [vmem:[%s9211_s3 + $0x1388] sm:$0xff]  ;;  %2397 = vmatpush.msra.mxu2 %v969_v41  ;;  %v742_v22 = vld [vmem:[%s9211_s3 + $0xcd0] sm:$0xff] }
 0x10c   :  { %v2030_v35 = vpop.f32.mrf.mxu3  ;;  %2437 = vmatpush.msra.mxu0 %v1353_v29  ;;  %2487 = vmatpush.msra.mxu3 %v898_v32  ;;  %v2050_v36 = vpop.f32.mrf.mxu0  ;;  %v1305_v57 = vld [vmem:[%s9211_s3 + $0x1e68] sm:$0xff]  ;;  %v994_v23 = vld [vmem:[%s9211_s3 + $0x14b0] sm:$0xff] }
 0x10d   :  { %v2031_v38 = vadd.f32 %v2030_v35, %v1681_v28  ;;  %v945_v49 = vld [vmem:[%s9211_s3 + $0x1328] sm:$0xff]  ;;  %2398 = vmatpush.msra.mxu2 %v957_v46  ;;  %v418_v24 = vld [vmem:[%s9211_s3 + $0x2b0] sm:$0xff] }
 0x10e   :  { %2438 = vmatpush.msra.mxu0 %v1341_v33  ;;  %2488 = vmatpush.msra.mxu3 %v886_v34  ;;  %v1293_v52 = vld [vmem:[%s9211_s3 + $0x1e08] sm:$0xff]  ;;  %v730_v26 = vld [vmem:[%s9211_s3 + $0xc70] sm:$0xff]  ;;  %v515_v34 = vld [vmem:[%s9211_s3 + $0x5b8] sm:$0xff] }
 0x10f   :  { %v2051_v42 = vadd.f32 %v2050_v36, %v2031_v38  ;;  %v2070_v43 = vpop.f32.mrf.mxu1  ;;  %2399 = vmatpush.msra.mxu2 %v945_v49  ;;  %v933_v0 = vld [vmem:[%s9211_s3 + $0x12c8] sm:$0xff]  ;;  %v982_v28 = vld [vmem:[%s9211_s3 + $0x1450] sm:$0xff] }
 0x110   :  { %2439 = vmatpush.msra.mxu0 %v1329_v39  ;;  %2489 = vmatpush.msra.mxu3 %v874_v40  ;;  %v921_v5 = vld [vmem:[%s9211_s3 + $0x1268] sm:$0xff]  ;;  %v406_v29 = vld [vmem:[%s9211_s3 + $0x250] sm:$0xff] }
 0x111   :  { %v2071_v47 = vadd.f32 %v2070_v43, %v2051_v42  ;;  %2400 = vmatpush.msra.mxu2 %v933_v0  ;;  %v909_v14 = vld [vmem:[%s9211_s3 + $0x1208] sm:$0xff]  ;;  %v718_v31 = vld [vmem:[%s9211_s3 + $0xc10] sm:$0xff]  ;;  %v491_v43 = vld [vmem:[%s9211_s3 + $0x4f8] sm:$0xff] }
 0x112   :  { %2440 = vmatpush.msra.mxu0 %v1317_v44  ;;  %2490 = vmatpush.msra.mxu3 %v862_v45  ;;  %v970_v32 = vld [vmem:[%s9211_s3 + $0x13f0] sm:$0xff] }
 0x113   :  { %v2091_v50 = vadd.f32 %v2090_v51, %v2071_v47  ;;  %2401 = vmatpush.msra.mxu2 %v921_v5  ;;  %v394_v33 = vld [vmem:[%s9211_s3 + $0x1f0] sm:$0xff]  ;;  %v479_v47 = vld [vmem:[%s9211_s3 + $0x498] sm:$0xff] }
 0x114   :  { %2441 = vmatpush.msra.mxu0 %v1305_v57  ;;  %2491 = vmatpush.msra.mxu3 %v850_v48  ;;  %v958_v35 = vld [vmem:[%s9211_s3 + $0x1390] sm:$0xff] }
 0x115   :  { %v5577_v56 = vmax.f32 %v2091_v50, 0.0  ;;  %2402 = vmatpush.msra.mxu2 %v909_v14  ;;  %v382_v36 = vld [vmem:[%s9211_s3 + $0x190] sm:$0xff]  ;;  %v467_v50 = vld [vmem:[%s9211_s3 + $0x438] sm:$0xff] }
 0x116   :  { %2442 = vmatpush.msra.mxu0 %v1293_v52  ;;  %2492 = vmatpush.msra.mxu3 %v838_v53  ;;  %v946_v39 = vld [vmem:[%s9211_s3 + $0x1330] sm:$0xff] }
 0x117   :  { %2303 = vmatmul.f32.vlgmr.msra.gmra.mxu1 %v5577_v56  ;;  %2423 = vmatmul.f32.vlgmr.msrb.gmra.mxu3 %v5577_v56  ;;  %v370_v42 = vld [vmem:[%s9211_s3 + $0x130] sm:$0xff]  ;;  %v2170_v44 = vpop.f32.mrf.mxu1 }
 0x118   :  { %2507 = vmatpush.msrb.mxu0 %v1090_v54  ;;  %2447 = vmatpush.msra.mxu1 %v514_v58  ;;  %v934_v45 = vld [vmem:[%s9211_s3 + $0x12d0] sm:$0xff] }
 0x119   :  { %2493 = vmatpush.msra.mxu3 %v826_v59  ;;  %v358_v46 = vld [vmem:[%s9211_s3 + $0xd0] sm:$0xff] }
 0x11a   :  { %2508 = vmatpush.msrb.mxu0 %v1078_v60  ;;  %2448 = vmatpush.msra.mxu1 %v502_v61  ;;  %v922_v57 = vld [vmem:[%s9211_s3 + $0x1270] sm:$0xff]  ;;  %v455_v61 = vld [vmem:[%s9211_s3 + $0x3d8] sm:$0xff] }
 0x11b   :  { %2494 = vmatpush.msra.mxu3 %v814_v62  ;;  %v346_v49 = vld [vmem:[%s9211_s3 + $0x70] sm:$0xff]  ;;  %v707_v62 = vld [vmem:[%s9211_s3 + $0xbb8] sm:$0xff] }
 0x11c   :  { %2509 = vmatpush.msrb.mxu0 %v1066_v63  ;;  %2449 = vmatpush.msra.mxu1 %v490_v1  ;;  %v2110_v7 = vpop.f32.mrf.mxu2  ;;  %v706_v53 = vld [vmem:[%s9211_s3 + $0xbb0] sm:$0xff]  ;;  %v443_v1 = vld [vmem:[%s9211_s3 + $0x378] sm:$0xff] }
 0x11d   :  { %2495 = vmatpush.msra.mxu3 %v802_v2  ;;  %v2111_v10 = vadd.f32 %v2110_v7, %v1682_v25  ;;  %v334_v54 = vld [vmem:[%s9211_s3 + $0x10] sm:$0xff]  ;;  %v695_v2 = vld [vmem:[%s9211_s3 + $0xb58] sm:$0xff] }
 0x11e   :  { %2510 = vmatpush.msrb.mxu0 %v1054_v4  ;;  %2450 = vmatpush.msra.mxu1 %v478_v6  ;;  %v910_v58 = vld [vmem:[%s9211_s3 + $0x1210] sm:$0xff]  ;;  %v431_v6 = vld [vmem:[%s9211_s3 + $0x318] sm:$0xff] }
 0x11f   :  { %2496 = vmatpush.msra.mxu3 %v790_v8  ;;  %2383 = vmatmul.f32.vlgmr.msrb.gmra.mxu1 %v5367_v30  ;;  %v694_v59 = vld [vmem:[%s9211_s3 + $0xb50] sm:$0xff]  ;;  %v683_v8 = vld [vmem:[%s9211_s3 + $0xaf8] sm:$0xff] }
 0x120   :  { %2511 = vmatpush.msrb.mxu0 %v1042_v9  ;;  %2451 = vmatpush.msra.mxu1 %v466_v11  ;;  %v1282_v60 = vld [vmem:[%s9211_s3 + $0x1db0] sm:$0xff]  ;;  %v635_v25 = vld [vmem:[%s9211_s3 + $0x978] sm:$0xff] }
 0x121   :  { %2497 = vmatpush.msra.mxu3 %v778_v12  ;;  %v682_v63 = vld [vmem:[%s9211_s3 + $0xaf0] sm:$0xff]  ;;  %v419_v12 = vld [vmem:[%s9211_s3 + $0x2b8] sm:$0xff] }
 0x122   :  { %2512 = vmatpush.msrb.mxu0 %v1030_v13  ;;  %2452 = vmatpush.msra.mxu1 %v454_v15  ;;  %v1270_v0 = vld [vmem:[%s9211_s3 + $0x1d50] sm:$0xff]  ;;  %v671_v13 = vld [vmem:[%s9211_s3 + $0xa98] sm:$0xff] }
 0x123   :  { %2498 = vmatpush.msra.mxu3 %v766_v16  ;;  %v670_v4 = vld [vmem:[%s9211_s3 + $0xa90] sm:$0xff]  ;;  %v407_v16 = vld [vmem:[%s9211_s3 + $0x258] sm:$0xff] }
 0x124   :  { %2513 = vmatpush.msrb.mxu0 %v1018_v17  ;;  %2453 = vmatpush.msra.mxu1 %v442_v18  ;;  %v1258_v5 = vld [vmem:[%s9211_s3 + $0x1cf0] sm:$0xff]  ;;  %v659_v17 = vld [vmem:[%s9211_s3 + $0xa38] sm:$0xff] }
 0x125   :  { %2499 = vmatpush.msra.mxu3 %v754_v19  ;;  %v658_v9 = vld [vmem:[%s9211_s3 + $0xa30] sm:$0xff] }
 0x126   :  { %2514 = vmatpush.msrb.mxu0 %v1006_v20  ;;  %2454 = vmatpush.msra.mxu1 %v430_v21  ;;  %v1246_v11 = vld [vmem:[%s9211_s3 + $0x1c90] sm:$0xff]  ;;  %v395_v20 = vld [vmem:[%s9211_s3 + $0x1f8] sm:$0xff] }
 0x127   :  { %2500 = vmatpush.msra.mxu3 %v742_v22  ;;  %v646_v14 = vld [vmem:[%s9211_s3 + $0x9d0] sm:$0xff]  ;;  %v647_v21 = vld [vmem:[%s9211_s3 + $0x9d8] sm:$0xff] }
 0x128   :  { %2515 = vmatpush.msrb.mxu0 %v994_v23  ;;  %2455 = vmatpush.msra.mxu1 %v418_v24  ;;  %v1234_v15 = vld [vmem:[%s9211_s3 + $0x1c30] sm:$0xff]  ;;  %v383_v24 = vld [vmem:[%s9211_s3 + $0x198] sm:$0xff] }
 0x129   :  { %2501 = vmatpush.msra.mxu3 %v730_v26  ;;  %v634_v18 = vld [vmem:[%s9211_s3 + $0x970] sm:$0xff] }
 0x12a   :  { %2516 = vmatpush.msrb.mxu0 %v982_v28  ;;  %2456 = vmatpush.msra.mxu1 %v406_v29  ;;  %v1222_v19 = vld [vmem:[%s9211_s3 + $0x1bd0] sm:$0xff]  ;;  %v371_v28 = vld [vmem:[%s9211_s3 + $0x138] sm:$0xff] }
 0x12b   :  { %2502 = vmatpush.msra.mxu3 %v718_v31  ;;  %v622_v22 = vld [vmem:[%s9211_s3 + $0x910] sm:$0xff]  ;;  %v623_v29 = vld [vmem:[%s9211_s3 + $0x918] sm:$0xff] }
 0x12c   :  { %2517 = vmatpush.msrb.mxu0 %v970_v32  ;;  %2503 = vmatmul.f32.vlgmr.msra.gmra.mxu3 %v5367_v30  ;;  %v2130_v38 = vpop.f32.mrf.mxu3  ;;  %v1210_v23 = vld [vmem:[%s9211_s3 + $0x1b70] sm:$0xff] }
 0x12d   :  { %2457 = vmatpush.msra.mxu1 %v394_v33  ;;  %2567 = vmatpush.msrb.mxu3 %v515_v34  ;;  %v2131_v40 = vadd.f32 %v2130_v38, %v2111_v10  ;;  %v2150_v41 = vpop.f32.mrf.mxu0  ;;  %v610_v26 = vld [vmem:[%s9211_s3 + $0x8b0] sm:$0xff]  ;;  %v359_v10 = vld [vmem:[%s9211_s3 + $0xd8] sm:$0xff] }
 0x12e   :  { %2518 = vmatpush.msrb.mxu0 %v958_v35  ;;  %v1198_v7 = vld [vmem:[%s9211_s3 + $0x1b10] sm:$0xff]  ;;  %v611_v33 = vld [vmem:[%s9211_s3 + $0x8b8] sm:$0xff] }
 0x12f   :  { %2458 = vmatpush.msra.mxu1 %v382_v36  ;;  %2568 = vmatpush.msrb.mxu3 %v503_v37  ;;  %v2151_v51 = vadd.f32 %v2150_v41, %v2131_v40  ;;  %v598_v31 = vld [vmem:[%s9211_s3 + $0x850] sm:$0xff]  ;;  %v347_v36 = vld [vmem:[%s9211_s3 + $0x78] sm:$0xff] }
 0x130   :  { %2519 = vmatpush.msrb.mxu0 %v946_v39  ;;  %v1186_v32 = vld [vmem:[%s9211_s3 + $0x1ab0] sm:$0xff]  ;;  %v599_v37 = vld [vmem:[%s9211_s3 + $0x858] sm:$0xff] }
 0x131   :  { %2459 = vmatpush.msra.mxu1 %v370_v42  ;;  %2569 = vmatpush.msrb.mxu3 %v491_v43  ;;  %v2171_v48 = vadd.f32 %v2170_v44, %v2151_v51  ;;  %v586_v34 = vld [vmem:[%s9211_s3 + $0x7f0] sm:$0xff]  ;;  %v335_v40 = vld [vmem:[%s9211_s3 + $0x18] sm:$0xff] }
 0x132   :  { %2520 = vmatpush.msrb.mxu0 %v934_v45  ;;  %v1174_v35 = vld [vmem:[%s9211_s3 + $0x1a50] sm:$0xff]  ;;  %v587_v41 = vld [vmem:[%s9211_s3 + $0x7f8] sm:$0xff] }
 0x133   :  { %2460 = vmatpush.msra.mxu1 %v358_v46  ;;  %2570 = vmatpush.msrb.mxu3 %v479_v47  ;;  %v5725_v52 = vmax.f32 %v2171_v48, 0.0  ;;  %v574_v38 = vld [vmem:[%s9211_s3 + $0x790] sm:$0xff]  ;;  %v1283_v43 = vld [vmem:[%s9211_s3 + $0x1db8] sm:$0xff] }
 0x134   :  { %2521 = vmatpush.msrb.mxu0 %v922_v57  ;;  %v1162_v39 = vld [vmem:[%s9211_s3 + $0x19f0] sm:$0xff]  ;;  %v575_v45 = vld [vmem:[%s9211_s3 + $0x798] sm:$0xff] }
 0x135   :  { %2461 = vmatpush.msra.mxu1 %v346_v49  ;;  %2571 = vmatpush.msrb.mxu3 %v467_v50  ;;  %v562_v42 = vld [vmem:[%s9211_s3 + $0x730] sm:$0xff]  ;;  %v1271_v46 = vld [vmem:[%s9211_s3 + $0x1d58] sm:$0xff] }
 0x136   :  { %2323 = vmatmul.f32.vlgmr.msrb.gmra.mxu2 %v5725_v52  ;;  %2443 = vmatmul.f32.vlgmr.msra.gmra.mxu0 %v5725_v52  ;;  %v1150_v44 = vld [vmem:[%s9211_s3 + $0x1990] sm:$0xff]  ;;  %v563_v57 = vld [vmem:[%s9211_s3 + $0x738] sm:$0xff] }
 0x137   :  { %2467 = vmatpush.msrb.mxu2 %v706_v53  ;;  %2462 = vmatpush.msra.mxu1 %v334_v54  ;;  %v550_v51 = vld [vmem:[%s9211_s3 + $0x6d0] sm:$0xff]  ;;  %v1259_v49 = vld [vmem:[%s9211_s3 + $0x1cf8] sm:$0xff] }
 0x138   :  { %2522 = vmatpush.msrb.mxu0 %v910_v58  ;;  %2463 = vmatmul.f32.vlgmr.msra.gmra.mxu1 %v5152_v3  ;;  %v1138_v47 = vld [vmem:[%s9211_s3 + $0x1930] sm:$0xff]  ;;  %v551_v53 = vld [vmem:[%s9211_s3 + $0x6d8] sm:$0xff] }
 0x139   :  { %2468 = vmatpush.msrb.mxu2 %v694_v59  ;;  %2527 = vmatpush.msrb.mxu1 %v1282_v60  ;;  %v538_v48 = vld [vmem:[%s9211_s3 + $0x670] sm:$0xff]  ;;  %v1247_v58 = vld [vmem:[%s9211_s3 + $0x1c98] sm:$0xff] }
 0x13a   :  { %2572 = vmatpush.msrb.mxu3 %v455_v61  ;;  %2587 = vmatpush.msra.mxu0 %v707_v62  ;;  %v1126_v50 = vld [vmem:[%s9211_s3 + $0x18d0] sm:$0xff]  ;;  %v539_v60 = vld [vmem:[%s9211_s3 + $0x678] sm:$0xff] }
 0x13b   :  { %2469 = vmatpush.msrb.mxu2 %v682_v63  ;;  %2528 = vmatpush.msrb.mxu1 %v1270_v0  ;;  %v526_v54 = vld [vmem:[%s9211_s3 + $0x610] sm:$0xff]  ;;  %v1235_v62 = vld [vmem:[%s9211_s3 + $0x1c38] sm:$0xff] }
 0x13c   :  { %2573 = vmatpush.msrb.mxu3 %v443_v1  ;;  %2588 = vmatpush.msra.mxu0 %v695_v2  ;;  %v1114_v59 = vld [vmem:[%s9211_s3 + $0x1870] sm:$0xff]  ;;  %v527_v0 = vld [vmem:[%s9211_s3 + $0x618] sm:$0xff] }
 0x13d   :  { %2470 = vmatpush.msrb.mxu2 %v670_v4  ;;  %2529 = vmatpush.msrb.mxu1 %v1258_v5  ;;  %v1474_v61 = vld [vmem:[%s9211_s3 + $0x23b0] sm:$0xff]  ;;  %v899_v2 = vld [vmem:[%s9211_s3 + $0x11b8] sm:$0xff] }
 0x13e   :  { %2574 = vmatpush.msrb.mxu3 %v431_v6  ;;  %2589 = vmatpush.msra.mxu0 %v683_v8  ;;  %v1102_v63 = vld [vmem:[%s9211_s3 + $0x1810] sm:$0xff]  ;;  %v1223_v4 = vld [vmem:[%s9211_s3 + $0x1bd8] sm:$0xff] }
 0x13f   :  { %2403 = vmatmul.f32.vlgmr.msra.gmra.mxu2 %v5422_v55  ;;  %2523 = vmatmul.f32.vlgmr.msrb.gmra.mxu0 %v5422_v55  ;;  %v1462_v1 = vld [vmem:[%s9211_s3 + $0x2350] sm:$0xff]  ;;  %v1475_v5 = vld [vmem:[%s9211_s3 + $0x23b8] sm:$0xff] }
 0x140   :  { %2471 = vmatpush.msrb.mxu2 %v658_v9  ;;  %2530 = vmatpush.msrb.mxu1 %v1246_v11  ;;  %v1450_v6 = vld [vmem:[%s9211_s3 + $0x22f0] sm:$0xff]  ;;  %v887_v8 = vld [vmem:[%s9211_s3 + $0x1158] sm:$0xff] }
 0x141   :  { %2575 = vmatpush.msrb.mxu3 %v419_v12  ;;  %2590 = vmatpush.msra.mxu0 %v671_v13  ;;  %v1211_v9 = vld [vmem:[%s9211_s3 + $0x1b78] sm:$0xff]  ;;  %v1438_v12 = vld [vmem:[%s9211_s3 + $0x2290] sm:$0xff] }
 0x142   :  { %2472 = vmatpush.msrb.mxu2 %v646_v14  ;;  %2531 = vmatpush.msrb.mxu1 %v1234_v15  ;;  %v1463_v11 = vld [vmem:[%s9211_s3 + $0x2358] sm:$0xff] }
 0x143   :  { %2576 = vmatpush.msrb.mxu3 %v407_v16  ;;  %2591 = vmatpush.msra.mxu0 %v659_v17  ;;  %v875_v13 = vld [vmem:[%s9211_s3 + $0x10f8] sm:$0xff]  ;;  %v1426_v16 = vld [vmem:[%s9211_s3 + $0x2230] sm:$0xff] }
 0x144   :  { %2473 = vmatpush.msrb.mxu2 %v634_v18  ;;  %2532 = vmatpush.msrb.mxu1 %v1222_v19  ;;  %v1199_v14 = vld [vmem:[%s9211_s3 + $0x1b18] sm:$0xff] }
 0x145   :  { %2577 = vmatpush.msrb.mxu3 %v395_v20  ;;  %2592 = vmatpush.msra.mxu0 %v647_v21  ;;  %v1451_v15 = vld [vmem:[%s9211_s3 + $0x22f8] sm:$0xff]  ;;  %v1414_v20 = vld [vmem:[%s9211_s3 + $0x21d0] sm:$0xff] }
 0x146   :  { %2474 = vmatpush.msrb.mxu2 %v622_v22  ;;  %2533 = vmatpush.msrb.mxu1 %v1210_v23  ;;  %v863_v17 = vld [vmem:[%s9211_s3 + $0x1098] sm:$0xff] }
 0x147   :  { %2578 = vmatpush.msrb.mxu3 %v383_v24  ;;  %2593 = vmatpush.msra.mxu0 %v635_v25  ;;  %v1187_v18 = vld [vmem:[%s9211_s3 + $0x1ab8] sm:$0xff]  ;;  %v1402_v24 = vld [vmem:[%s9211_s3 + $0x2170] sm:$0xff] }
 0x148   :  { %2475 = vmatpush.msrb.mxu2 %v610_v26  ;;  %2534 = vmatpush.msrb.mxu1 %v1198_v7  ;;  %v1439_v19 = vld [vmem:[%s9211_s3 + $0x2298] sm:$0xff] }
 0x149   :  { %2579 = vmatpush.msrb.mxu3 %v371_v28  ;;  %2594 = vmatpush.msra.mxu0 %v623_v29  ;;  %v851_v21 = vld [vmem:[%s9211_s3 + $0x1038] sm:$0xff]  ;;  %v1390_v28 = vld [vmem:[%s9211_s3 + $0x2110] sm:$0xff] }
 0x14a   :  { %2476 = vmatpush.msrb.mxu2 %v598_v31  ;;  %2535 = vmatpush.msrb.mxu1 %v1186_v32  ;;  %v1175_v22 = vld [vmem:[%s9211_s3 + $0x1a58] sm:$0xff] }
 0x14b   :  { %2580 = vmatpush.msrb.mxu3 %v359_v10  ;;  %2595 = vmatpush.msra.mxu0 %v611_v33  ;;  %v1427_v23 = vld [vmem:[%s9211_s3 + $0x2238] sm:$0xff]  ;;  %v1378_v10 = vld [vmem:[%s9211_s3 + $0x20b0] sm:$0xff] }
 0x14c   :  { %2477 = vmatpush.msrb.mxu2 %v586_v34  ;;  %2536 = vmatpush.msrb.mxu1 %v1174_v35  ;;  %v839_v25 = vld [vmem:[%s9211_s3 + $0xfd8] sm:$0xff] }
 0x14d   :  { %2581 = vmatpush.msrb.mxu3 %v347_v36  ;;  %2596 = vmatpush.msra.mxu0 %v599_v37  ;;  %v1163_v26 = vld [vmem:[%s9211_s3 + $0x19f8] sm:$0xff]  ;;  %v1366_v36 = vld [vmem:[%s9211_s3 + $0x2050] sm:$0xff] }
 0x14e   :  { %2478 = vmatpush.msrb.mxu2 %v574_v38  ;;  %2537 = vmatpush.msrb.mxu1 %v1162_v39  ;;  %v1415_v7 = vld [vmem:[%s9211_s3 + $0x21d8] sm:$0xff] }
 0x14f   :  { %2582 = vmatpush.msrb.mxu3 %v335_v40  ;;  %2597 = vmatpush.msra.mxu0 %v587_v41  ;;  %v827_v29 = vld [vmem:[%s9211_s3 + $0xf78] sm:$0xff]  ;;  %v1354_v40 = vld [vmem:[%s9211_s3 + $0x1ff0] sm:$0xff] }
 0x150   :  { %2583 = vmatmul.f32.vlgmr.msrb.gmra.mxu3 %v5152_v3  ;;  %2479 = vmatpush.msrb.mxu2 %v562_v42  ;;  %v1151_v31 = vld [vmem:[%s9211_s3 + $0x1998] sm:$0xff] }
 0x151   :  { %2647 = vmatpush.msra.mxu3 %v1283_v43  ;;  %2538 = vmatpush.msrb.mxu1 %v1150_v44  ;;  %v1403_v32 = vld [vmem:[%s9211_s3 + $0x2178] sm:$0xff]  ;;  %v1342_v44 = vld [vmem:[%s9211_s3 + $0x1f90] sm:$0xff] }
 0x152   :  { %2598 = vmatpush.msra.mxu0 %v575_v45  ;;  %2480 = vmatpush.msrb.mxu2 %v550_v51  ;;  %v815_v33 = vld [vmem:[%s9211_s3 + $0xf18] sm:$0xff] }
 0x153   :  { %2648 = vmatpush.msra.mxu3 %v1271_v46  ;;  %2539 = vmatpush.msrb.mxu1 %v1138_v47  ;;  %v1139_v34 = vld [vmem:[%s9211_s3 + $0x1938] sm:$0xff]  ;;  %v1330_v47 = vld [vmem:[%s9211_s3 + $0x1f30] sm:$0xff] }
 0x154   :  { %2599 = vmatpush.msra.mxu0 %v563_v57  ;;  %2481 = vmatpush.msrb.mxu2 %v538_v48  ;;  %v1391_v35 = vld [vmem:[%s9211_s3 + $0x2118] sm:$0xff]  ;;  %v900_v57 = vld [vmem:[%s9211_s3 + $0x11c0] sm:$0xff] }
 0x155   :  { %2649 = vmatpush.msra.mxu3 %v1259_v49  ;;  %2540 = vmatpush.msrb.mxu1 %v1126_v50  ;;  %v803_v37 = vld [vmem:[%s9211_s3 + $0xeb8] sm:$0xff] }
 0x156   :  { %2600 = vmatpush.msra.mxu0 %v551_v53  ;;  %2482 = vmatpush.msrb.mxu2 %v526_v54  ;;  %v1127_v38 = vld [vmem:[%s9211_s3 + $0x18d8] sm:$0xff]  ;;  %v1318_v53 = vld [vmem:[%s9211_s3 + $0x1ed0] sm:$0xff]  ;;  %v888_v54 = vld [vmem:[%s9211_s3 + $0x1160] sm:$0xff] }
 0x157   :  { %2650 = vmatpush.msra.mxu3 %v1247_v58  ;;  %2541 = vmatpush.msrb.mxu1 %v1114_v59  ;;  %v1379_v39 = vld [vmem:[%s9211_s3 + $0x20b8] sm:$0xff] }
 0x158   :  { %2601 = vmatpush.msra.mxu0 %v539_v60  ;;  %2483 = vmatmul.f32.vlgmr.msrb.gmra.mxu2 %v5200_v27  ;;  %v791_v41 = vld [vmem:[%s9211_s3 + $0xe58] sm:$0xff]  ;;  %v1306_v60 = vld [vmem:[%s9211_s3 + $0x1e70] sm:$0xff] }
 0x159   :  { %2547 = vmatpush.msra.mxu2 %v1474_v61  ;;  %2651 = vmatpush.msra.mxu3 %v1235_v62  ;;  %v1115_v42 = vld [vmem:[%s9211_s3 + $0x1878] sm:$0xff]  ;;  %v876_v61 = vld [vmem:[%s9211_s3 + $0x1100] sm:$0xff] }
 0x15a   :  { %2542 = vmatpush.msrb.mxu1 %v1102_v63  ;;  %2602 = vmatpush.msra.mxu0 %v527_v0  ;;  %v1367_v43 = vld [vmem:[%s9211_s3 + $0x2058] sm:$0xff]  ;;  %v1294_v0 = vld [vmem:[%s9211_s3 + $0x1e10] sm:$0xff] }
 0x15b   :  { %2543 = vmatmul.f32.vlgmr.msrb.gmra.mxu1 %v5577_v56  ;;  %2548 = vmatpush.msra.mxu2 %v1462_v1  ;;  %v779_v45 = vld [vmem:[%s9211_s3 + $0xdf8] sm:$0xff] }
 0x15c   :  { %2603 = vmatmul.f32.vlgmr.msra.gmra.mxu0 %v5200_v27  ;;  %2607 = vmatpush.msra.mxu1 %v899_v2  ;;  %v1103_v51 = vld [vmem:[%s9211_s3 + $0x1818] sm:$0xff]  ;;  %v864_v2 = vld [vmem:[%s9211_s3 + $0x10a0] sm:$0xff] }
 0x15d   :  { %2652 = vmatpush.msra.mxu3 %v1223_v4  ;;  %2667 = vmatpush.msrb.mxu0 %v1475_v5  ;;  %v1355_v46 = vld [vmem:[%s9211_s3 + $0x1ff8] sm:$0xff]  ;;  %v2179_v5 = vld [vmem:[%s9213_s4] sm:$0xff] }
 0x15e   :  { %2549 = vmatpush.msra.mxu2 %v1450_v6  ;;  %2608 = vmatpush.msra.mxu1 %v887_v8  ;;  %v767_v48 = vld [vmem:[%s9211_s3 + $0xd98] sm:$0xff] }
 0x15f   :  { %2653 = vmatpush.msra.mxu3 %v1211_v9  ;;  %2668 = vmatpush.msrb.mxu0 %v1463_v11  ;;  %v1343_v50 = vld [vmem:[%s9211_s3 + $0x1f98] sm:$0xff]  ;;  %v852_v9 = vld [vmem:[%s9211_s3 + $0x1040] sm:$0xff]  ;;  %v2184_v11 = vperm.slane %v2179_v5, 1 }
 0x160   :  { %2550 = vmatpush.msra.mxu2 %v1438_v12  ;;  %2609 = vmatpush.msra.mxu1 %v875_v13  ;;  %v755_v58 = vld [vmem:[%s9211_s3 + $0xd38] sm:$0xff] }
 0x161   :  { %2654 = vmatpush.msra.mxu3 %v1199_v14  ;;  %2669 = vmatpush.msrb.mxu0 %v1451_v15  ;;  %v1331_v59 = vld [vmem:[%s9211_s3 + $0x1f38] sm:$0xff] }
 0x162   :  { %2551 = vmatpush.msra.mxu2 %v1426_v16  ;;  %2610 = vmatpush.msra.mxu1 %v863_v17  ;;  %v743_v62 = vld [vmem:[%s9211_s3 + $0xcd8] sm:$0xff]  ;;  %v516_v16 = vld [vmem:[%s9211_s3 + $0x5c0] sm:$0xff] }
 0x163   :  { %2655 = vmatpush.msra.mxu3 %v1187_v18  ;;  %2670 = vmatpush.msrb.mxu0 %v1439_v19  ;;  %v1319_v63 = vld [vmem:[%s9211_s3 + $0x1ed8] sm:$0xff]  ;;  %v840_v17 = vld [vmem:[%s9211_s3 + $0xfe0] sm:$0xff] }
 0x164   :  { %2552 = vmatpush.msra.mxu2 %v1414_v20  ;;  %2611 = vmatpush.msra.mxu1 %v851_v21  ;;  %v731_v4 = vld [vmem:[%s9211_s3 + $0xc78] sm:$0xff]  ;;  %v1092_v18 = vld [vmem:[%s9211_s3 + $0x17c0] sm:$0xff] }
 0x165   :  { %2656 = vmatpush.msra.mxu3 %v1175_v22  ;;  %2671 = vmatpush.msrb.mxu0 %v1427_v23  ;;  %v1307_v6 = vld [vmem:[%s9211_s3 + $0x1e78] sm:$0xff]  ;;  %v504_v21 = vld [vmem:[%s9211_s3 + $0x560] sm:$0xff] }
 0x166   :  { %2553 = vmatpush.msra.mxu2 %v1402_v24  ;;  %2612 = vmatpush.msra.mxu1 %v839_v25  ;;  %v1091_v8 = vld [vmem:[%s9211_s3 + $0x17b8] sm:$0xff]  ;;  %v828_v23 = vld [vmem:[%s9211_s3 + $0xf80] sm:$0xff] }
 0x167   :  { %2657 = vmatpush.msra.mxu3 %v1163_v26  ;;  %2672 = vmatpush.msrb.mxu0 %v1415_v7  ;;  %v719_v12 = vld [vmem:[%s9211_s3 + $0xc18] sm:$0xff]  ;;  %v1080_v24 = vld [vmem:[%s9211_s3 + $0x1760] sm:$0xff] }
 0x168   :  { %2554 = vmatpush.msra.mxu2 %v1390_v28  ;;  %2613 = vmatpush.msra.mxu1 %v827_v29  ;;  %v1295_v13 = vld [vmem:[%s9211_s3 + $0x1e18] sm:$0xff]  ;;  %v492_v7 = vld [vmem:[%s9211_s3 + $0x500] sm:$0xff] }
 0x169   :  { %2658 = vmatpush.msra.mxu3 %v1151_v31  ;;  %2673 = vmatpush.msrb.mxu0 %v1403_v32  ;;  %v1079_v15 = vld [vmem:[%s9211_s3 + $0x1758] sm:$0xff]  ;;  %v816_v28 = vld [vmem:[%s9211_s3 + $0xf20] sm:$0xff] }
 0x16a   :  { %2555 = vmatpush.msra.mxu2 %v1378_v10  ;;  %2614 = vmatpush.msra.mxu1 %v815_v33  ;;  %v1067_v20 = vld [vmem:[%s9211_s3 + $0x16f8] sm:$0xff]  ;;  %v1068_v29 = vld [vmem:[%s9211_s3 + $0x1700] sm:$0xff] }
 0x16b   :  { %2659 = vmatpush.msra.mxu3 %v1139_v34  ;;  %2674 = vmatpush.msrb.mxu0 %v1391_v35  ;;  %v1055_v26 = vld [vmem:[%s9211_s3 + $0x1698] sm:$0xff]  ;;  %v480_v32 = vld [vmem:[%s9211_s3 + $0x4a0] sm:$0xff] }
 0x16c   :  { %2556 = vmatpush.msra.mxu2 %v1366_v36  ;;  %2615 = vmatpush.msra.mxu1 %v803_v37  ;;  %v1043_v31 = vld [vmem:[%s9211_s3 + $0x1638] sm:$0xff]  ;;  %v804_v10 = vld [vmem:[%s9211_s3 + $0xec0] sm:$0xff] }
 0x16d   :  { %2660 = vmatpush.msra.mxu3 %v1127_v38  ;;  %2675 = vmatpush.msrb.mxu0 %v1379_v39  ;;  %v1056_v33 = vld [vmem:[%s9211_s3 + $0x16a0] sm:$0xff]  ;;  %v1031_v34 = vld [vmem:[%s9211_s3 + $0x15d8] sm:$0xff] }
 0x16e   :  { %2557 = vmatpush.msra.mxu2 %v1354_v40  ;;  %2616 = vmatpush.msra.mxu1 %v791_v41  ;;  %v6078_v49 = vpop.f32.mrf.mxu3  ;;  %v468_v35 = vld [vmem:[%s9211_s3 + $0x440] sm:$0xff]  ;;  %v1019_v38 = vld [vmem:[%s9211_s3 + $0x1578] sm:$0xff] }
 0x16f   :  { %2661 = vmatpush.msra.mxu3 %v1115_v42  ;;  %2676 = vmatpush.msrb.mxu0 %v1367_v43  ;;  %v792_v36 = vld [vmem:[%s9211_s3 + $0xe60] sm:$0xff]  ;;  %v1007_v42 = vld [vmem:[%s9211_s3 + $0x1518] sm:$0xff] }
 0x170   :  { %2558 = vmatpush.msra.mxu2 %v1342_v44  ;;  %2617 = vmatpush.msra.mxu1 %v779_v45  ;;  %v1044_v37 = vld [vmem:[%s9211_s3 + $0x1640] sm:$0xff]  ;;  %v947_v5 = vld [vmem:[%s9211_s3 + $0x1338] sm:$0xff] }
 0x171   :  { %2662 = vmatpush.msra.mxu3 %v1103_v51  ;;  %2677 = vmatpush.msrb.mxu0 %v1355_v46  ;;  %v456_v39 = vld [vmem:[%s9211_s3 + $0x3e0] sm:$0xff]  ;;  %v995_v51 = vld [vmem:[%s9211_s3 + $0x14b8] sm:$0xff] }
 0x172   :  { %2663 = vmatmul.f32.vlgmr.msra.gmra.mxu3 %v5577_v56  ;;  %2559 = vmatpush.msra.mxu2 %v1330_v47  ;;  %v780_v40 = vld [vmem:[%s9211_s3 + $0xe00] sm:$0xff] }
 0x173   :  { %2727 = vmatpush.msrb.mxu3 %v900_v57  ;;  %2618 = vmatpush.msra.mxu1 %v767_v48  ;;  %v1032_v41 = vld [vmem:[%s9211_s3 + $0x15e0] sm:$0xff]  ;;  %v983_v48 = vld [vmem:[%s9211_s3 + $0x1458] sm:$0xff] }
 0x174   :  { %2678 = vmatpush.msrb.mxu0 %v1343_v50  ;;  %2560 = vmatpush.msra.mxu2 %v1318_v53  ;;  %v6111_v1 = vpop.f32.mrf.mxu0  ;;  %v444_v43 = vld [vmem:[%s9211_s3 + $0x380] sm:$0xff] }
 0x175   :  { %2728 = vmatpush.msrb.mxu3 %v888_v54  ;;  %2619 = vmatpush.msra.mxu1 %v755_v58  ;;  %v768_v44 = vld [vmem:[%s9211_s3 + $0xda0] sm:$0xff]  ;;  %v6250_v58 = vpop.f32.mrf.mxu1 }
 0x176   :  { %2679 = vmatpush.msrb.mxu0 %v1331_v59  ;;  %2561 = vmatpush.msra.mxu2 %v1306_v60  ;;  %v2344_v14 = vpop.f32.mrf.mxu3  ;;  %v1020_v45 = vld [vmem:[%s9211_s3 + $0x1580] sm:$0xff]  ;;  %v971_v59 = vld [vmem:[%s9211_s3 + $0x13f8] sm:$0xff] }
 0x177   :  { %2729 = vmatpush.msrb.mxu3 %v876_v61  ;;  %2620 = vmatpush.msra.mxu1 %v743_v62  ;;  %v2345_v19 = vadd.f32 %v2344_v14, %v2184_v11  ;;  %v432_v46 = vld [vmem:[%s9211_s3 + $0x320] sm:$0xff]  ;;  %v935_v11 = vld [vmem:[%s9211_s3 + $0x12d8] sm:$0xff] }
 0x178   :  { %2680 = vmatpush.msrb.mxu0 %v1319_v63  ;;  %2562 = vmatpush.msra.mxu2 %v1294_v0  ;;  %v756_v47 = vld [vmem:[%s9211_s3 + $0xd40] sm:$0xff]  ;;  %v959_v63 = vld [vmem:[%s9211_s3 + $0x1398] sm:$0xff] }
 0x179   :  { %2730 = vmatpush.msrb.mxu3 %v864_v2  ;;  %2621 = vmatpush.msra.mxu1 %v731_v4  ;;  %v1008_v57 = vld [vmem:[%s9211_s3 + $0x1520] sm:$0xff] }
 0x17a   :  { %2681 = vmatpush.msrb.mxu0 %v1307_v6  ;;  %2563 = vmatmul.f32.vlgmr.msra.gmra.mxu2 %v5725_v52  ;;  %v420_v50 = vld [vmem:[%s9211_s3 + $0x2c0] sm:$0xff]  ;;  %v517_v6 = vld [vmem:[%s9211_s3 + $0x5c8] sm:$0xff] }
 0x17b   :  { %2627 = vmatpush.msrb.mxu2 %v1091_v8  ;;  %2731 = vmatpush.msrb.mxu3 %v852_v9  ;;  %v744_v53 = vld [vmem:[%s9211_s3 + $0xce0] sm:$0xff] }
 0x17c   :  { %2622 = vmatpush.msra.mxu1 %v719_v12  ;;  %2682 = vmatpush.msrb.mxu0 %v1295_v13  ;;  %v2364_v22 = vpop.f32.mrf.mxu0  ;;  %v996_v54 = vld [vmem:[%s9211_s3 + $0x14c0] sm:$0xff]  ;;  %v505_v12 = vld [vmem:[%s9211_s3 + $0x568] sm:$0xff] }
 0x17d   :  { %2623 = vmatmul.f32.vlgmr.msra.gmra.mxu1 %v5367_v30  ;;  %2628 = vmatpush.msrb.mxu2 %v1079_v15  ;;  %v6164_v25 = vadd.f32 %v2364_v22, %v2345_v19  ;;  %v408_v60 = vld [vmem:[%s9211_s3 + $0x260] sm:$0xff]  ;;  %v923_v15 = vld [vmem:[%s9211_s3 + $0x1278] sm:$0xff] }
 0x17e   :  { %2683 = vmatmul.f32.vlgmr.msrb.gmra.mxu0 %v5725_v52  ;;  %2687 = vmatpush.msrb.mxu1 %v516_v16  ;;  %v732_v61 = vld [vmem:[%s9211_s3 + $0xc80] sm:$0xff] }
 0x17f   :  { %2732 = vmatpush.msrb.mxu3 %v840_v17  ;;  %2747 = vmatpush.msra.mxu0 %v1092_v18  ;;  %v984_v62 = vld [vmem:[%s9211_s3 + $0x1460] sm:$0xff]  ;;  %v493_v17 = vld [vmem:[%s9211_s3 + $0x508] sm:$0xff] }
 0x180   :  { %2629 = vmatpush.msrb.mxu2 %v1067_v20  ;;  %2688 = vmatpush.msrb.mxu1 %v504_v21  ;;  %v396_v0 = vld [vmem:[%s9211_s3 + $0x200] sm:$0xff]  ;;  %v911_v20 = vld [vmem:[%s9211_s3 + $0x1218] sm:$0xff]  ;;  %v481_v21 = vld [vmem:[%s9211_s3 + $0x4a8] sm:$0xff] }
 0x181   :  { %2733 = vmatpush.msrb.mxu3 %v828_v23  ;;  %2748 = vmatpush.msra.mxu0 %v1080_v24  ;;  %v720_v2 = vld [vmem:[%s9211_s3 + $0xc20] sm:$0xff] }
 0x182   :  { %2630 = vmatpush.msrb.mxu2 %v1055_v26  ;;  %2689 = vmatpush.msrb.mxu1 %v492_v7  ;;  %v972_v4 = vld [vmem:[%s9211_s3 + $0x1400] sm:$0xff]  ;;  %v469_v26 = vld [vmem:[%s9211_s3 + $0x448] sm:$0xff] }
 0x183   :  { %2734 = vmatpush.msrb.mxu3 %v816_v28  ;;  %2749 = vmatpush.msra.mxu0 %v1068_v29  ;;  %v384_v8 = vld [vmem:[%s9211_s3 + $0x1a0] sm:$0xff] }
 0x184   :  { %2631 = vmatpush.msrb.mxu2 %v1043_v31  ;;  %2690 = vmatpush.msrb.mxu1 %v480_v32  ;;  %v960_v9 = vld [vmem:[%s9211_s3 + $0x13a0] sm:$0xff] }
 0x185   :  { %2735 = vmatpush.msrb.mxu3 %v804_v10  ;;  %2750 = vmatpush.msra.mxu0 %v1056_v33  ;;  %v372_v13 = vld [vmem:[%s9211_s3 + $0x140] sm:$0xff]  ;;  %v457_v10 = vld [vmem:[%s9211_s3 + $0x3e8] sm:$0xff] }
 0x186   :  { %2632 = vmatpush.msrb.mxu2 %v1031_v34  ;;  %2691 = vmatpush.msrb.mxu1 %v468_v35  ;;  %v948_v14 = vld [vmem:[%s9211_s3 + $0x1340] sm:$0xff]  ;;  %v709_v33 = vld [vmem:[%s9211_s3 + $0xbc8] sm:$0xff] }
 0x187   :  { %2736 = vmatpush.msrb.mxu3 %v792_v36  ;;  %2751 = vmatpush.msra.mxu0 %v1044_v37  ;;  %v360_v18 = vld [vmem:[%s9211_s3 + $0xe0] sm:$0xff]  ;;  %v445_v37 = vld [vmem:[%s9211_s3 + $0x388] sm:$0xff] }
 0x188   :  { %2633 = vmatpush.msrb.mxu2 %v1019_v38  ;;  %2692 = vmatpush.msrb.mxu1 %v456_v39  ;;  %v936_v19 = vld [vmem:[%s9211_s3 + $0x12e0] sm:$0xff] }
 0x189   :  { %2737 = vmatpush.msrb.mxu3 %v780_v40  ;;  %2752 = vmatpush.msra.mxu0 %v1032_v41  ;;  %v348_v22 = vld [vmem:[%s9211_s3 + $0x80] sm:$0xff]  ;;  %v433_v40 = vld [vmem:[%s9211_s3 + $0x328] sm:$0xff] }
 0x18a   :  { %2634 = vmatpush.msrb.mxu2 %v1007_v42  ;;  %2693 = vmatpush.msrb.mxu1 %v444_v43  ;;  %v924_v23 = vld [vmem:[%s9211_s3 + $0x1280] sm:$0xff]  ;;  %v685_v41 = vld [vmem:[%s9211_s3 + $0xb08] sm:$0xff] }
 0x18b   :  { %2738 = vmatpush.msrb.mxu3 %v768_v44  ;;  %2753 = vmatpush.msra.mxu0 %v1020_v45  ;;  %v708_v24 = vld [vmem:[%s9211_s3 + $0xbc0] sm:$0xff]  ;;  %v421_v44 = vld [vmem:[%s9211_s3 + $0x2c8] sm:$0xff] }
 0x18c   :  { %2635 = vmatpush.msrb.mxu2 %v995_v51  ;;  %2694 = vmatpush.msrb.mxu1 %v432_v46  ;;  %v336_v7 = vld [vmem:[%s9211_s3 + $0x20] sm:$0xff]  ;;  %v673_v45 = vld [vmem:[%s9211_s3 + $0xaa8] sm:$0xff] }
 0x18d   :  { %2739 = vmatpush.msrb.mxu3 %v756_v47  ;;  %2754 = vmatpush.msra.mxu0 %v1008_v57  ;;  %v912_v28 = vld [vmem:[%s9211_s3 + $0x1220] sm:$0xff]  ;;  %v409_v47 = vld [vmem:[%s9211_s3 + $0x268] sm:$0xff] }
 0x18e   :  { %2636 = vmatpush.msrb.mxu2 %v983_v48  ;;  %2695 = vmatpush.msrb.mxu1 %v420_v50  ;;  %v696_v29 = vld [vmem:[%s9211_s3 + $0xb60] sm:$0xff]  ;;  %v661_v57 = vld [vmem:[%s9211_s3 + $0xa48] sm:$0xff] }
 0x18f   :  { %2740 = vmatpush.msrb.mxu3 %v744_v53  ;;  %2755 = vmatpush.msra.mxu0 %v996_v54  ;;  %v1284_v31 = vld [vmem:[%s9211_s3 + $0x1dc0] sm:$0xff]  ;;  %v397_v53 = vld [vmem:[%s9211_s3 + $0x208] sm:$0xff] }
 0x190   :  { %2637 = vmatpush.msrb.mxu2 %v971_v59  ;;  %2696 = vmatpush.msrb.mxu1 %v408_v60  ;;  %v684_v35 = vld [vmem:[%s9211_s3 + $0xb00] sm:$0xff]  ;;  %v649_v54 = vld [vmem:[%s9211_s3 + $0x9e8] sm:$0xff] }
 0x191   :  { %2741 = vmatpush.msrb.mxu3 %v732_v61  ;;  %2756 = vmatpush.msra.mxu0 %v984_v62  ;;  %v1272_v36 = vld [vmem:[%s9211_s3 + $0x1d60] sm:$0xff]  ;;  %v385_v61 = vld [vmem:[%s9211_s3 + $0x1a8] sm:$0xff] }
 0x192   :  { %2638 = vmatpush.msrb.mxu2 %v959_v63  ;;  %2697 = vmatpush.msrb.mxu1 %v396_v0  ;;  %v672_v38 = vld [vmem:[%s9211_s3 + $0xaa0] sm:$0xff]  ;;  %v637_v62 = vld [vmem:[%s9211_s3 + $0x988] sm:$0xff] }
 0x193   :  { %2742 = vmatpush.msrb.mxu3 %v720_v2  ;;  %2757 = vmatpush.msra.mxu0 %v972_v4  ;;  %v1260_v39 = vld [vmem:[%s9211_s3 + $0x1d00] sm:$0xff]  ;;  %v373_v2 = vld [vmem:[%s9211_s3 + $0x148] sm:$0xff] }
 0x194   :  { %2743 = vmatmul.f32.vlgmr.msrb.gmra.mxu3 %v5367_v30  ;;  %2639 = vmatpush.msrb.mxu2 %v947_v5  ;;  %v6304_v16 = vpop.f32.mrf.mxu1  ;;  %v660_v42 = vld [vmem:[%s9211_s3 + $0xa40] sm:$0xff]  ;;  %v625_v4 = vld [vmem:[%s9211_s3 + $0x928] sm:$0xff] }
 0x195   :  { %2807 = vmatpush.msra.mxu3 %v517_v6  ;;  %2698 = vmatpush.msrb.mxu1 %v384_v8  ;;  %v1248_v43 = vld [vmem:[%s9211_s3 + $0x1ca0] sm:$0xff]  ;;  %v361_v8 = vld [vmem:[%s9211_s3 + $0xe8] sm:$0xff] }
 0x196   :  { %2758 = vmatpush.msra.mxu0 %v960_v9  ;;  %2640 = vmatpush.msrb.mxu2 %v935_v11  ;;  %v648_v51 = vld [vmem:[%s9211_s3 + $0x9e0] sm:$0xff]  ;;  %v613_v9 = vld [vmem:[%s9211_s3 + $0x8c8] sm:$0xff] }
 0x197   :  { %2808 = vmatpush.msra.mxu3 %v505_v12  ;;  %2699 = vmatpush.msrb.mxu1 %v372_v13  ;;  %v1236_v46 = vld [vmem:[%s9211_s3 + $0x1c40] sm:$0xff]  ;;  %v349_v13 = vld [vmem:[%s9211_s3 + $0x88] sm:$0xff] }
 0x198   :  { %2759 = vmatpush.msra.mxu0 %v948_v14  ;;  %2641 = vmatpush.msrb.mxu2 %v923_v15  ;;  %v636_v48 = vld [vmem:[%s9211_s3 + $0x980] sm:$0xff]  ;;  %v601_v14 = vld [vmem:[%s9211_s3 + $0x868] sm:$0xff]  ;;  %v6465_v15 = vpop.f32.mrf.mxu2 }
 0x199   :  { %2809 = vmatpush.msra.mxu3 %v493_v17  ;;  %2700 = vmatpush.msrb.mxu1 %v360_v18  ;;  %v1224_v50 = vld [vmem:[%s9211_s3 + $0x1be0] sm:$0xff] }
 0x19a   :  { %2760 = vmatpush.msra.mxu0 %v936_v19  ;;  %2642 = vmatpush.msrb.mxu2 %v911_v20  ;;  %v624_v59 = vld [vmem:[%s9211_s3 + $0x920] sm:$0xff]  ;;  %v337_v19 = vld [vmem:[%s9211_s3 + $0x28] sm:$0xff] }
 0x19b   :  { %2810 = vmatpush.msra.mxu3 %v481_v21  ;;  %2701 = vmatpush.msrb.mxu1 %v348_v22  ;;  %v1212_v60 = vld [vmem:[%s9211_s3 + $0x1b80] sm:$0xff]  ;;  %v589_v20 = vld [vmem:[%s9211_s3 + $0x808] sm:$0xff] }
 0x19c   :  { %2761 = vmatpush.msra.mxu0 %v924_v23  ;;  %2643 = vmatmul.f32.vlgmr.msrb.gmra.mxu2 %v5422_v55  ;;  %v2384_v32 = vpop.f32.mrf.mxu1  ;;  %v612_v63 = vld [vmem:[%s9211_s3 + $0x8c0] sm:$0xff]  ;;  %v1285_v22 = vld [vmem:[%s9211_s3 + $0x1dc8] sm:$0xff] }
 0x19d   :  { %2707 = vmatpush.msra.mxu2 %v708_v24  ;;  %2811 = vmatpush.msra.mxu3 %v469_v26  ;;  %v6353_v34 = vadd.f32 %v2384_v32, %v6164_v25  ;;  %v697_v25 = vld [vmem:[%s9211_s3 + $0xb68] sm:$0xff]  ;;  %v1200_v0 = vld [vmem:[%s9211_s3 + $0x1b20] sm:$0xff] }
 0x19e   :  { %2702 = vmatpush.msrb.mxu1 %v336_v7  ;;  %2762 = vmatpush.msra.mxu0 %v912_v28  ;;  %v600_v5 = vld [vmem:[%s9211_s3 + $0x860] sm:$0xff]  ;;  %v577_v24 = vld [vmem:[%s9211_s3 + $0x7a8] sm:$0xff] }
 0x19f   :  { %2703 = vmatmul.f32.vlgmr.msrb.gmra.mxu1 %v5152_v3  ;;  %2708 = vmatpush.msra.mxu2 %v696_v29  ;;  %v1188_v6 = vld [vmem:[%s9211_s3 + $0x1ac0] sm:$0xff]  ;;  %v1273_v7 = vld [vmem:[%s9211_s3 + $0x1d68] sm:$0xff] }
 0x1a0   :  { %2763 = vmatmul.f32.vlgmr.msra.gmra.mxu0 %v5422_v55  ;;  %2767 = vmatpush.msra.mxu1 %v1284_v31  ;;  %v588_v11 = vld [vmem:[%s9211_s3 + $0x800] sm:$0xff]  ;;  %v565_v29 = vld [vmem:[%s9211_s3 + $0x748] sm:$0xff] }
 0x1a1   :  { %2812 = vmatpush.msra.mxu3 %v457_v10  ;;  %2827 = vmatpush.msrb.mxu0 %v709_v33  ;;  %v1176_v12 = vld [vmem:[%s9211_s3 + $0x1a60] sm:$0xff]  ;;  %v1261_v32 = vld [vmem:[%s9211_s3 + $0x1d08] sm:$0xff] }
 0x1a2   :  { %2709 = vmatpush.msra.mxu2 %v684_v35  ;;  %2768 = vmatpush.msra.mxu1 %v1272_v36  ;;  %v576_v17 = vld [vmem:[%s9211_s3 + $0x7a0] sm:$0xff]  ;;  %v553_v33 = vld [vmem:[%s9211_s3 + $0x6e8] sm:$0xff] }
 0x1a3   :  { %2813 = vmatpush.msra.mxu3 %v445_v37  ;;  %2828 = vmatpush.msrb.mxu0 %v697_v25  ;;  %v1164_v18 = vld [vmem:[%s9211_s3 + $0x1a00] sm:$0xff]  ;;  %v1249_v37 = vld [vmem:[%s9211_s3 + $0x1ca8] sm:$0xff] }
 0x1a4   :  { %2710 = vmatpush.msra.mxu2 %v672_v38  ;;  %2769 = vmatpush.msra.mxu1 %v1260_v39  ;;  %v564_v21 = vld [vmem:[%s9211_s3 + $0x740] sm:$0xff]  ;;  %v541_v38 = vld [vmem:[%s9211_s3 + $0x688] sm:$0xff] }
 0x1a5   :  { %2814 = vmatpush.msra.mxu3 %v433_v40  ;;  %2829 = vmatpush.msrb.mxu0 %v685_v41  ;;  %v1152_v23 = vld [vmem:[%s9211_s3 + $0x19a0] sm:$0xff]  ;;  %v1237_v40 = vld [vmem:[%s9211_s3 + $0x1c48] sm:$0xff] }
 0x1a6   :  { %2711 = vmatpush.msra.mxu2 %v660_v42  ;;  %2770 = vmatpush.msra.mxu1 %v1248_v43  ;;  %v552_v26 = vld [vmem:[%s9211_s3 + $0x6e0] sm:$0xff]  ;;  %v529_v42 = vld [vmem:[%s9211_s3 + $0x628] sm:$0xff] }
 0x1a7   :  { %2815 = vmatpush.msra.mxu3 %v421_v44  ;;  %2830 = vmatpush.msrb.mxu0 %v673_v45  ;;  %v1140_v28 = vld [vmem:[%s9211_s3 + $0x1940] sm:$0xff]  ;;  %v901_v44 = vld [vmem:[%s9211_s3 + $0x11c8] sm:$0xff] }
 0x1a8   :  { %2712 = vmatpush.msra.mxu2 %v648_v51  ;;  %2771 = vmatpush.msra.mxu1 %v1236_v46  ;;  %v540_v31 = vld [vmem:[%s9211_s3 + $0x680] sm:$0xff]  ;;  %v1225_v45 = vld [vmem:[%s9211_s3 + $0x1be8] sm:$0xff] }
 0x1a9   :  { %2816 = vmatpush.msra.mxu3 %v409_v47  ;;  %2831 = vmatpush.msrb.mxu0 %v661_v57  ;;  %v1128_v10 = vld [vmem:[%s9211_s3 + $0x18e0] sm:$0xff]  ;;  %v1477_v51 = vld [vmem:[%s9211_s3 + $0x23c8] sm:$0xff] }
 0x1aa   :  { %2713 = vmatpush.msra.mxu2 %v636_v48  ;;  %2772 = vmatpush.msra.mxu1 %v1224_v50  ;;  %v528_v35 = vld [vmem:[%s9211_s3 + $0x620] sm:$0xff]  ;;  %v889_v47 = vld [vmem:[%s9211_s3 + $0x1168] sm:$0xff] }
 0x1ab   :  { %2817 = vmatpush.msra.mxu3 %v397_v53  ;;  %2832 = vmatpush.msrb.mxu0 %v649_v54  ;;  %v1116_v25 = vld [vmem:[%s9211_s3 + $0x1880] sm:$0xff]  ;;  %v1213_v57 = vld [vmem:[%s9211_s3 + $0x1b88] sm:$0xff] }
 0x1ac   :  { %2714 = vmatpush.msra.mxu2 %v624_v59  ;;  %2773 = vmatpush.msra.mxu1 %v1212_v60  ;;  %v1476_v39 = vld [vmem:[%s9211_s3 + $0x23c0] sm:$0xff]  ;;  %v1465_v48 = vld [vmem:[%s9211_s3 + $0x2368] sm:$0xff]  ;;  %v2424_v60 = vpop.f32.mrf.mxu3 }
 0x1ad   :  { %2818 = vmatpush.msra.mxu3 %v385_v61  ;;  %2833 = vmatpush.msrb.mxu0 %v637_v62  ;;  %v1104_v41 = vld [vmem:[%s9211_s3 + $0x1820] sm:$0xff]  ;;  %v877_v54 = vld [vmem:[%s9211_s3 + $0x1108] sm:$0xff] }
 0x1ae   :  { %2715 = vmatpush.msra.mxu2 %v612_v63  ;;  %2774 = vmatpush.msra.mxu1 %v1200_v0  ;;  %v1464_v43 = vld [vmem:[%s9211_s3 + $0x2360] sm:$0xff]  ;;  %v1201_v61 = vld [vmem:[%s9211_s3 + $0x1b28] sm:$0xff] }
 0x1af   :  { %2819 = vmatpush.msra.mxu3 %v373_v2  ;;  %2834 = vmatpush.msrb.mxu0 %v625_v4  ;;  %v1452_v46 = vld [vmem:[%s9211_s3 + $0x2300] sm:$0xff]  ;;  %v1453_v62 = vld [vmem:[%s9211_s3 + $0x2308] sm:$0xff] }
 0x1b0   :  { %2716 = vmatpush.msra.mxu2 %v600_v5  ;;  %2775 = vmatpush.msra.mxu1 %v1188_v6  ;;  %v1440_v53 = vld [vmem:[%s9211_s3 + $0x22a0] sm:$0xff]  ;;  %v1189_v4 = vld [vmem:[%s9211_s3 + $0x1ac8] sm:$0xff] }
 0x1b1   :  { %2820 = vmatpush.msra.mxu3 %v361_v8  ;;  %2835 = vmatpush.msrb.mxu0 %v613_v9  ;;  %v1428_v63 = vld [vmem:[%s9211_s3 + $0x2240] sm:$0xff]  ;;  %v1441_v5 = vld [vmem:[%s9211_s3 + $0x22a8] sm:$0xff] }
 0x1b2   :  { %2717 = vmatpush.msra.mxu2 %v588_v11  ;;  %2776 = vmatpush.msra.mxu1 %v1176_v12  ;;  %v1416_v6 = vld [vmem:[%s9211_s3 + $0x21e0] sm:$0xff]  ;;  %v853_v8 = vld [vmem:[%s9211_s3 + $0x1048] sm:$0xff] }
 0x1b3   :  { %2821 = vmatpush.msra.mxu3 %v349_v13  ;;  %2836 = vmatpush.msrb.mxu0 %v601_v14  ;;  %v2444_v2 = vpop.f32.mrf.mxu0  ;;  %v1177_v11 = vld [vmem:[%s9211_s3 + $0x1a68] sm:$0xff]  ;;  %v1404_v13 = vld [vmem:[%s9211_s3 + $0x2180] sm:$0xff] }
 0x1b4   :  { %2718 = vmatpush.msra.mxu2 %v576_v17  ;;  %2777 = vmatpush.msra.mxu1 %v1164_v18  ;;  %v1429_v12 = vld [vmem:[%s9211_s3 + $0x2248] sm:$0xff] }
 0x1b5   :  { %2822 = vmatpush.msra.mxu3 %v337_v19  ;;  %2837 = vmatpush.msrb.mxu0 %v589_v20  ;;  %v841_v14 = vld [vmem:[%s9211_s3 + $0xfe8] sm:$0xff]  ;;  %v1392_v19 = vld [vmem:[%s9211_s3 + $0x2120] sm:$0xff] }
 0x1b6   :  { %2823 = vmatmul.f32.vlgmr.msra.gmra.mxu3 %v5152_v3  ;;  %2719 = vmatpush.msra.mxu2 %v564_v21  ;;  %v1165_v17 = vld [vmem:[%s9211_s3 + $0x1a08] sm:$0xff] }
 0x1b7   :  { %2887 = vmatpush.msrb.mxu3 %v1285_v22  ;;  %2778 = vmatpush.msra.mxu1 %v1152_v23  ;;  %v1417_v18 = vld [vmem:[%s9211_s3 + $0x21e8] sm:$0xff]  ;;  %v1380_v23 = vld [vmem:[%s9211_s3 + $0x20c0] sm:$0xff] }
 0x1b8   :  { %2838 = vmatpush.msrb.mxu0 %v577_v24  ;;  %2720 = vmatpush.msra.mxu2 %v552_v26  ;;  %v829_v20 = vld [vmem:[%s9211_s3 + $0xf88] sm:$0xff] }
 0x1b9   :  { %2888 = vmatpush.msrb.mxu3 %v1273_v7  ;;  %2779 = vmatpush.msra.mxu1 %v1140_v28  ;;  %v6519_v36 = vpop.f32.mrf.mxu2  ;;  %v1153_v21 = vld [vmem:[%s9211_s3 + $0x19a8] sm:$0xff]  ;;  %v1368_v28 = vld [vmem:[%s9211_s3 + $0x2060] sm:$0xff] }
 0x1ba   :  { %2839 = vmatpush.msrb.mxu0 %v565_v29  ;;  %2721 = vmatpush.msra.mxu2 %v540_v31  ;;  %v1405_v22 = vld [vmem:[%s9211_s3 + $0x2188] sm:$0xff] }
 0x1bb   :  { %2889 = vmatpush.msrb.mxu3 %v1261_v32  ;;  %2780 = vmatpush.msra.mxu1 %v1128_v10  ;;  %v817_v24 = vld [vmem:[%s9211_s3 + $0xf28] sm:$0xff]  ;;  %v1356_v10 = vld [vmem:[%s9211_s3 + $0x2000] sm:$0xff] }
 0x1bc   :  { %2840 = vmatpush.msrb.mxu0 %v553_v33  ;;  %2722 = vmatpush.msra.mxu2 %v528_v35  ;;  %v1141_v26 = vld [vmem:[%s9211_s3 + $0x1948] sm:$0xff] }
 0x1bd   :  { %2890 = vmatpush.msrb.mxu3 %v1249_v37  ;;  %2781 = vmatpush.msra.mxu1 %v1116_v25  ;;  %v1393_v7 = vld [vmem:[%s9211_s3 + $0x2128] sm:$0xff]  ;;  %v1344_v25 = vld [vmem:[%s9211_s3 + $0x1fa0] sm:$0xff] }
 0x1be   :  { %2841 = vmatpush.msrb.mxu0 %v541_v38  ;;  %2723 = vmatmul.f32.vlgmr.msra.gmra.mxu2 %v5200_v27  ;;  %v805_v29 = vld [vmem:[%s9211_s3 + $0xec8] sm:$0xff] }
 0x1bf   :  { %2787 = vmatpush.msrb.mxu2 %v1476_v39  ;;  %2891 = vmatpush.msrb.mxu3 %v1237_v40  ;;  %v1129_v31 = vld [vmem:[%s9211_s3 + $0x18e8] sm:$0xff] }
 0x1c0   :  { %2782 = vmatpush.msra.mxu1 %v1104_v41  ;;  %2842 = vmatpush.msrb.mxu0 %v529_v42  ;;  %v1381_v32 = vld [vmem:[%s9211_s3 + $0x20c8] sm:$0xff]  ;;  %v1332_v41 = vld [vmem:[%s9211_s3 + $0x1f40] sm:$0xff]  ;;  %v902_v42 = vld [vmem:[%s9211_s3 + $0x11d0] sm:$0xff] }
 0x1c1   :  { %2783 = vmatmul.f32.vlgmr.msra.gmra.mxu1 %v5577_v56  ;;  %2788 = vmatpush.msrb.mxu2 %v1464_v43  ;;  %v793_v33 = vld [vmem:[%s9211_s3 + $0xe68] sm:$0xff] }
 0x1c2   :  { %2843 = vmatmul.f32.vlgmr.msrb.gmra.mxu0 %v5200_v27  ;;  %2847 = vmatpush.msrb.mxu1 %v901_v44  ;;  %v2404_v50 = vpop.f32.mrf.mxu2  ;;  %v1117_v35 = vld [vmem:[%s9211_s3 + $0x1888] sm:$0xff] }
 0x1c3   :  { %2892 = vmatpush.msrb.mxu3 %v1225_v45  ;;  %2907 = vmatpush.msra.mxu0 %v1477_v51  ;;  %v2405_v59 = vadd.f32 %v2404_v50, %v6353_v34  ;;  %v865_v34 = vld [vmem:[%s9211_s3 + $0x10a8] sm:$0xff]  ;;  %v1320_v45 = vld [vmem:[%s9211_s3 + $0x1ee0] sm:$0xff]  ;;  %v890_v51 = vld [vmem:[%s9211_s3 + $0x1170] sm:$0xff] }
 0x1c4   :  { %2789 = vmatpush.msrb.mxu2 %v1452_v46  ;;  %2848 = vmatpush.msrb.mxu1 %v889_v47  ;;  %v1369_v37 = vld [vmem:[%s9211_s3 + $0x2068] sm:$0xff] }
 0x1c5   :  { %2893 = vmatpush.msrb.mxu3 %v1213_v57  ;;  %2908 = vmatpush.msra.mxu0 %v1465_v48  ;;  %v2425_v0 = vadd.f32 %v2424_v60, %v2405_v59  ;;  %v781_v38 = vld [vmem:[%s9211_s3 + $0xe08] sm:$0xff]  ;;  %v1308_v57 = vld [vmem:[%s9211_s3 + $0x1e80] sm:$0xff]  ;;  %v878_v48 = vld [vmem:[%s9211_s3 + $0x1110] sm:$0xff] }
 0x1c6   :  { %2790 = vmatpush.msrb.mxu2 %v1440_v53  ;;  %2849 = vmatpush.msrb.mxu1 %v877_v54  ;;  %v1105_v39 = vld [vmem:[%s9211_s3 + $0x1828] sm:$0xff]  ;;  %v1296_v54 = vld [vmem:[%s9211_s3 + $0x1e20] sm:$0xff]  ;;  %v866_v59 = vld [vmem:[%s9211_s3 + $0x10b0] sm:$0xff] }
 0x1c7   :  { %2894 = vmatpush.msrb.mxu3 %v1201_v61  ;;  %2909 = vmatpush.msra.mxu0 %v1453_v62  ;;  %v6600_v9 = vadd.f32 %v2444_v2, %v2425_v0  ;;  %v1357_v40 = vld [vmem:[%s9211_s3 + $0x2008] sm:$0xff] }
 0x1c8   :  { %2791 = vmatpush.msrb.mxu2 %v1428_v63  ;;  %2850 = vmatpush.msrb.mxu1 %v865_v34  ;;  %v769_v43 = vld [vmem:[%s9211_s3 + $0xda8] sm:$0xff]  ;;  %v854_v63 = vld [vmem:[%s9211_s3 + $0x1050] sm:$0xff] }
 0x1c9   :  { %2895 = vmatpush.msrb.mxu3 %v1189_v4  ;;  %2910 = vmatpush.msra.mxu0 %v1441_v5  ;;  %v1345_v44 = vld [vmem:[%s9211_s3 + $0x1fa8] sm:$0xff]  ;;  %v518_v4 = vld [vmem:[%s9211_s3 + $0x5d0] sm:$0xff] }
 0x1ca   :  { %2792 = vmatpush.msrb.mxu2 %v1416_v6  ;;  %2851 = vmatpush.msrb.mxu1 %v853_v8  ;;  %v757_v46 = vld [vmem:[%s9211_s3 + $0xd48] sm:$0xff]  ;;  %v842_v5 = vld [vmem:[%s9211_s3 + $0xff0] sm:$0xff] }
 0x1cb   :  { %2896 = vmatpush.msrb.mxu3 %v1177_v11  ;;  %2911 = vmatpush.msra.mxu0 %v1429_v12  ;;  %v1333_v47 = vld [vmem:[%s9211_s3 + $0x1f48] sm:$0xff]  ;;  %v1094_v6 = vld [vmem:[%s9211_s3 + $0x17d0] sm:$0xff] }
 0x1cc   :  { %2793 = vmatpush.msrb.mxu2 %v1404_v13  ;;  %2852 = vmatpush.msrb.mxu1 %v841_v14  ;;  %v745_v50 = vld [vmem:[%s9211_s3 + $0xce8] sm:$0xff]  ;;  %v506_v11 = vld [vmem:[%s9211_s3 + $0x570] sm:$0xff] }
 0x1cd   :  { %2897 = vmatpush.msrb.mxu3 %v1165_v17  ;;  %2912 = vmatpush.msra.mxu0 %v1417_v18  ;;  %v1321_v53 = vld [vmem:[%s9211_s3 + $0x1ee8] sm:$0xff]  ;;  %v830_v12 = vld [vmem:[%s9211_s3 + $0xf90] sm:$0xff] }
 0x1ce   :  { %2794 = vmatpush.msrb.mxu2 %v1392_v19  ;;  %2853 = vmatpush.msrb.mxu1 %v829_v20  ;;  %v733_v60 = vld [vmem:[%s9211_s3 + $0xc88] sm:$0xff]  ;;  %v1082_v13 = vld [vmem:[%s9211_s3 + $0x1770] sm:$0xff] }
 0x1cf   :  { %2898 = vmatpush.msrb.mxu3 %v1153_v21  ;;  %2913 = vmatpush.msra.mxu0 %v1405_v22  ;;  %v1309_v61 = vld [vmem:[%s9211_s3 + $0x1e88] sm:$0xff]  ;;  %v494_v17 = vld [vmem:[%s9211_s3 + $0x510] sm:$0xff] }
 0x1d0   :  { %2795 = vmatpush.msrb.mxu2 %v1380_v23  ;;  %2854 = vmatpush.msrb.mxu1 %v817_v24  ;;  %v1093_v62 = vld [vmem:[%s9211_s3 + $0x17c8] sm:$0xff]  ;;  %v818_v18 = vld [vmem:[%s9211_s3 + $0xf30] sm:$0xff] }
 0x1d1   :  { %2899 = vmatpush.msrb.mxu3 %v1141_v26  ;;  %2914 = vmatpush.msra.mxu0 %v1393_v7  ;;  %v721_v34 = vld [vmem:[%s9211_s3 + $0xc28] sm:$0xff]  ;;  %v1070_v19 = vld [vmem:[%s9211_s3 + $0x1710] sm:$0xff] }
 0x1d2   :  { %2796 = vmatpush.msrb.mxu2 %v1368_v28  ;;  %2855 = vmatpush.msrb.mxu1 %v805_v29  ;;  %v1297_v0 = vld [vmem:[%s9211_s3 + $0x1e28] sm:$0xff]  ;;  %v482_v21 = vld [vmem:[%s9211_s3 + $0x4b0] sm:$0xff] }
 0x1d3   :  { %2900 = vmatpush.msrb.mxu3 %v1129_v31  ;;  %2915 = vmatpush.msra.mxu0 %v1381_v32  ;;  %v1081_v2 = vld [vmem:[%s9211_s3 + $0x1768] sm:$0xff]  ;;  %v806_v22 = vld [vmem:[%s9211_s3 + $0xed0] sm:$0xff] }
 0x1d4   :  { %2797 = vmatpush.msrb.mxu2 %v1356_v10  ;;  %2856 = vmatpush.msrb.mxu1 %v793_v33  ;;  %v1069_v8 = vld [vmem:[%s9211_s3 + $0x1708] sm:$0xff]  ;;  %v1058_v23 = vld [vmem:[%s9211_s3 + $0x16b0] sm:$0xff] }
 0x1d5   :  { %2901 = vmatpush.msrb.mxu3 %v1117_v35  ;;  %2916 = vmatpush.msra.mxu0 %v1369_v37  ;;  %v1057_v14 = vld [vmem:[%s9211_s3 + $0x16a8] sm:$0xff]  ;;  %v470_v26 = vld [vmem:[%s9211_s3 + $0x450] sm:$0xff] }
 0x1d6   :  { %2798 = vmatpush.msrb.mxu2 %v1344_v25  ;;  %2857 = vmatpush.msrb.mxu1 %v781_v38  ;;  %v1045_v20 = vld [vmem:[%s9211_s3 + $0x1648] sm:$0xff]  ;;  %v794_v7 = vld [vmem:[%s9211_s3 + $0xe70] sm:$0xff] }
 0x1d7   :  { %2902 = vmatpush.msrb.mxu3 %v1105_v39  ;;  %2917 = vmatpush.msra.mxu0 %v1357_v40  ;;  %v1033_v24 = vld [vmem:[%s9211_s3 + $0x15e8] sm:$0xff]  ;;  %v1046_v28 = vld [vmem:[%s9211_s3 + $0x1650] sm:$0xff] }
 0x1d8   :  { %2903 = vmatmul.f32.vlgmr.msrb.gmra.mxu3 %v5577_v56  ;;  %2799 = vmatpush.msrb.mxu2 %v1332_v41  ;;  %v1021_v29 = vld [vmem:[%s9211_s3 + $0x1588] sm:$0xff]  ;;  %v458_v31 = vld [vmem:[%s9211_s3 + $0x3f0] sm:$0xff] }
 0x1d9   :  { %2967 = vmatpush.msra.mxu3 %v902_v42  ;;  %2858 = vmatpush.msrb.mxu1 %v769_v43  ;;  %v782_v32 = vld [vmem:[%s9211_s3 + $0xe10] sm:$0xff]  ;;  %v1009_v33 = vld [vmem:[%s9211_s3 + $0x1528] sm:$0xff] }
 0x1da   :  { %2918 = vmatpush.msra.mxu0 %v1345_v44  ;;  %2800 = vmatpush.msrb.mxu2 %v1320_v45  ;;  %v1034_v10 = vld [vmem:[%s9211_s3 + $0x15f0] sm:$0xff]  ;;  %v997_v38 = vld [vmem:[%s9211_s3 + $0x14c8] sm:$0xff] }
 0x1db   :  { %2968 = vmatpush.msra.mxu3 %v890_v51  ;;  %2859 = vmatpush.msrb.mxu1 %v757_v46  ;;  %v446_v35 = vld [vmem:[%s9211_s3 + $0x390] sm:$0xff]  ;;  %v985_v42 = vld [vmem:[%s9211_s3 + $0x1468] sm:$0xff] }
 0x1dc   :  { %2919 = vmatpush.msra.mxu0 %v1333_v47  ;;  %2801 = vmatpush.msrb.mxu2 %v1308_v57  ;;  %v770_v37 = vld [vmem:[%s9211_s3 + $0xdb0] sm:$0xff]  ;;  %v973_v51 = vld [vmem:[%s9211_s3 + $0x1408] sm:$0xff] }
 0x1dd   :  { %2969 = vmatpush.msra.mxu3 %v878_v48  ;;  %2860 = vmatpush.msrb.mxu1 %v745_v50  ;;  %v1022_v25 = vld [vmem:[%s9211_s3 + $0x1590] sm:$0xff]  ;;  %v961_v48 = vld [vmem:[%s9211_s3 + $0x13a8] sm:$0xff] }
 0x1de   :  { %2920 = vmatpush.msra.mxu0 %v1321_v53  ;;  %2802 = vmatpush.msrb.mxu2 %v1296_v54  ;;  %v434_v39 = vld [vmem:[%s9211_s3 + $0x330] sm:$0xff] }
 0x1df   :  { %2970 = vmatpush.msra.mxu3 %v866_v59  ;;  %2861 = vmatpush.msrb.mxu1 %v733_v60  ;;  %v758_v40 = vld [vmem:[%s9211_s3 + $0xd50] sm:$0xff]  ;;  %v949_v59 = vld [vmem:[%s9211_s3 + $0x1348] sm:$0xff]  ;;  %v519_v60 = vld [vmem:[%s9211_s3 + $0x5d8] sm:$0xff] }
 0x1e0   :  { %2921 = vmatpush.msra.mxu0 %v1309_v61  ;;  %2803 = vmatmul.f32.vlgmr.msrb.gmra.mxu2 %v5725_v52  ;;  %v1010_v41 = vld [vmem:[%s9211_s3 + $0x1530] sm:$0xff] }
 0x1e1   :  { %2867 = vmatpush.msra.mxu2 %v1093_v62  ;;  %2971 = vmatpush.msra.mxu3 %v854_v63  ;;  %v422_v43 = vld [vmem:[%s9211_s3 + $0x2d0] sm:$0xff]  ;;  %v937_v63 = vld [vmem:[%s9211_s3 + $0x12e8] sm:$0xff] }
 0x1e2   :  { %2862 = vmatpush.msrb.mxu1 %v721_v34  ;;  %2922 = vmatpush.msra.mxu0 %v1297_v0  ;;  %v746_v44 = vld [vmem:[%s9211_s3 + $0xcf0] sm:$0xff]  ;;  %v507_v34 = vld [vmem:[%s9211_s3 + $0x578] sm:$0xff] }
 0x1e3   :  { %2863 = vmatmul.f32.vlgmr.msrb.gmra.mxu1 %v5367_v30  ;;  %2868 = vmatpush.msra.mxu2 %v1081_v2  ;;  %v998_v45 = vld [vmem:[%s9211_s3 + $0x14d0] sm:$0xff] }
 0x1e4   :  { %2923 = vmatmul.f32.vlgmr.msra.gmra.mxu0 %v5725_v52  ;;  %2927 = vmatpush.msra.mxu1 %v518_v4  ;;  %v410_v46 = vld [vmem:[%s9211_s3 + $0x270] sm:$0xff]  ;;  %v925_v4 = vld [vmem:[%s9211_s3 + $0x1288] sm:$0xff] }
 0x1e5   :  { %2972 = vmatpush.msra.mxu3 %v842_v5  ;;  %2987 = vmatpush.msrb.mxu0 %v1094_v6  ;;  %v734_v47 = vld [vmem:[%s9211_s3 + $0xc90] sm:$0xff]  ;;  %v495_v5 = vld [vmem:[%s9211_s3 + $0x518] sm:$0xff] }
 0x1e6   :  { %2869 = vmatpush.msra.mxu2 %v1069_v8  ;;  %2928 = vmatpush.msra.mxu1 %v506_v11  ;;  %v986_v57 = vld [vmem:[%s9211_s3 + $0x1470] sm:$0xff]  ;;  %v913_v11 = vld [vmem:[%s9211_s3 + $0x1228] sm:$0xff] }
 0x1e7   :  { %2973 = vmatpush.msra.mxu3 %v830_v12  ;;  %2988 = vmatpush.msrb.mxu0 %v1082_v13  ;;  %v398_v50 = vld [vmem:[%s9211_s3 + $0x210] sm:$0xff]  ;;  %v483_v12 = vld [vmem:[%s9211_s3 + $0x4b8] sm:$0xff] }
 0x1e8   :  { %2870 = vmatpush.msra.mxu2 %v1057_v14  ;;  %2929 = vmatpush.msra.mxu1 %v494_v17  ;;  %v722_v53 = vld [vmem:[%s9211_s3 + $0xc30] sm:$0xff] }
 0x1e9   :  { %2974 = vmatpush.msra.mxu3 %v818_v18  ;;  %2989 = vmatpush.msrb.mxu0 %v1070_v19  ;;  %v974_v54 = vld [vmem:[%s9211_s3 + $0x1410] sm:$0xff]  ;;  %v471_v18 = vld [vmem:[%s9211_s3 + $0x458] sm:$0xff] }
 0x1ea   :  { %2871 = vmatpush.msra.mxu2 %v1045_v20  ;;  %2930 = vmatpush.msra.mxu1 %v482_v21  ;;  %v386_v61 = vld [vmem:[%s9211_s3 + $0x1b0] sm:$0xff] }
 0x1eb   :  { %2975 = vmatpush.msra.mxu3 %v806_v22  ;;  %2990 = vmatpush.msrb.mxu0 %v1058_v23  ;;  %v962_v62 = vld [vmem:[%s9211_s3 + $0x13b0] sm:$0xff]  ;;  %v459_v23 = vld [vmem:[%s9211_s3 + $0x3f8] sm:$0xff] }
 0x1ec   :  { %2872 = vmatpush.msra.mxu2 %v1033_v24  ;;  %2931 = vmatpush.msra.mxu1 %v470_v26  ;;  %v374_v0 = vld [vmem:[%s9211_s3 + $0x150] sm:$0xff]  ;;  %v711_v24 = vld [vmem:[%s9211_s3 + $0xbd8] sm:$0xff] }
 0x1ed   :  { %2976 = vmatpush.msra.mxu3 %v794_v7  ;;  %2991 = vmatpush.msrb.mxu0 %v1046_v28  ;;  %v950_v2 = vld [vmem:[%s9211_s3 + $0x1350] sm:$0xff]  ;;  %v447_v28 = vld [vmem:[%s9211_s3 + $0x398] sm:$0xff] }
 0x1ee   :  { %2873 = vmatpush.msra.mxu2 %v1021_v29  ;;  %2932 = vmatpush.msra.mxu1 %v458_v31  ;;  %v362_v6 = vld [vmem:[%s9211_s3 + $0xf0] sm:$0xff]  ;;  %v699_v29 = vld [vmem:[%s9211_s3 + $0xb78] sm:$0xff] }
 0x1ef   :  { %2977 = vmatpush.msra.mxu3 %v782_v32  ;;  %2992 = vmatpush.msrb.mxu0 %v1034_v10  ;;  %v938_v8 = vld [vmem:[%s9211_s3 + $0x12f0] sm:$0xff]  ;;  %v435_v10 = vld [vmem:[%s9211_s3 + $0x338] sm:$0xff] }
 0x1f0   :  { %2874 = vmatpush.msra.mxu2 %v1009_v33  ;;  %2933 = vmatpush.msra.mxu1 %v446_v35  ;;  %v350_v13 = vld [vmem:[%s9211_s3 + $0x90] sm:$0xff]  ;;  %v687_v33 = vld [vmem:[%s9211_s3 + $0xb18] sm:$0xff] }
 0x1f1   :  { %2978 = vmatpush.msra.mxu3 %v770_v37  ;;  %2993 = vmatpush.msrb.mxu0 %v1022_v25  ;;  %v926_v14 = vld [vmem:[%s9211_s3 + $0x1290] sm:$0xff]  ;;  %v423_v25 = vld [vmem:[%s9211_s3 + $0x2d8] sm:$0xff] }
 0x1f2   :  { %2875 = vmatpush.msra.mxu2 %v997_v38  ;;  %2934 = vmatpush.msra.mxu1 %v434_v39  ;;  %v710_v17 = vld [vmem:[%s9211_s3 + $0xbd0] sm:$0xff]  ;;  %v675_v38 = vld [vmem:[%s9211_s3 + $0xab8] sm:$0xff] }
 0x1f3   :  { %2979 = vmatpush.msra.mxu3 %v758_v40  ;;  %2994 = vmatpush.msrb.mxu0 %v1010_v41  ;;  %v338_v19 = vld [vmem:[%s9211_s3 + $0x30] sm:$0xff]  ;;  %v411_v41 = vld [vmem:[%s9211_s3 + $0x278] sm:$0xff] }
 0x1f4   :  { %2876 = vmatpush.msra.mxu2 %v985_v42  ;;  %2935 = vmatpush.msra.mxu1 %v422_v43  ;;  %v914_v20 = vld [vmem:[%s9211_s3 + $0x1230] sm:$0xff]  ;;  %v663_v42 = vld [vmem:[%s9211_s3 + $0xa58] sm:$0xff] }
 0x1f5   :  { %2980 = vmatpush.msra.mxu3 %v746_v44  ;;  %2995 = vmatpush.msrb.mxu0 %v998_v45  ;;  %v698_v21 = vld [vmem:[%s9211_s3 + $0xb70] sm:$0xff]  ;;  %v399_v45 = vld [vmem:[%s9211_s3 + $0x218] sm:$0xff] }
 0x1f6   :  { %2877 = vmatpush.msra.mxu2 %v973_v51  ;;  %2936 = vmatpush.msra.mxu1 %v410_v46  ;;  %v1286_v22 = vld [vmem:[%s9211_s3 + $0x1dd0] sm:$0xff]  ;;  %v651_v51 = vld [vmem:[%s9211_s3 + $0x9f8] sm:$0xff] }
 0x1f7   :  { %2981 = vmatpush.msra.mxu3 %v734_v47  ;;  %2996 = vmatpush.msrb.mxu0 %v986_v57  ;;  %v686_v26 = vld [vmem:[%s9211_s3 + $0xb10] sm:$0xff]  ;;  %v387_v57 = vld [vmem:[%s9211_s3 + $0x1b8] sm:$0xff] }
 0x1f8   :  { %2878 = vmatpush.msra.mxu2 %v961_v48  ;;  %2937 = vmatpush.msra.mxu1 %v398_v50  ;;  %v1274_v7 = vld [vmem:[%s9211_s3 + $0x1d70] sm:$0xff]  ;;  %v639_v48 = vld [vmem:[%s9211_s3 + $0x998] sm:$0xff] }
 0x1f9   :  { %2982 = vmatpush.msra.mxu3 %v722_v53  ;;  %2997 = vmatpush.msrb.mxu0 %v974_v54  ;;  %v674_v31 = vld [vmem:[%s9211_s3 + $0xab0] sm:$0xff]  ;;  %v375_v54 = vld [vmem:[%s9211_s3 + $0x158] sm:$0xff] }
 0x1fa   :  { %2983 = vmatmul.f32.vlgmr.msra.gmra.mxu3 %v5367_v30  ;;  %2879 = vmatpush.msra.mxu2 %v949_v59  ;;  %v1262_v32 = vld [vmem:[%s9211_s3 + $0x1d10] sm:$0xff]  ;;  %v627_v59 = vld [vmem:[%s9211_s3 + $0x938] sm:$0xff] }
 0x1fb   :  { %3047 = vmatpush.msrb.mxu3 %v519_v60  ;;  %2938 = vmatpush.msra.mxu1 %v386_v61  ;;  %v662_v35 = vld [vmem:[%s9211_s3 + $0xa50] sm:$0xff] }
 0x1fc   :  { %2998 = vmatpush.msrb.mxu0 %v962_v62  ;;  %2880 = vmatpush.msra.mxu2 %v937_v63  ;;  %v1250_v37 = vld [vmem:[%s9211_s3 + $0x1cb0] sm:$0xff]  ;;  %v363_v62 = vld [vmem:[%s9211_s3 + $0xf8] sm:$0xff] }
 0x1fd   :  { %3048 = vmatpush.msrb.mxu3 %v507_v34  ;;  %2939 = vmatpush.msra.mxu1 %v374_v0  ;;  %v650_v39 = vld [vmem:[%s9211_s3 + $0x9f0] sm:$0xff]  ;;  %v615_v63 = vld [vmem:[%s9211_s3 + $0x8d8] sm:$0xff] }
 0x1fe   :  { %2999 = vmatpush.msrb.mxu0 %v950_v2  ;;  %2881 = vmatpush.msra.mxu2 %v925_v4  ;;  %v1238_v40 = vld [vmem:[%s9211_s3 + $0x1c50] sm:$0xff]  ;;  %v351_v2 = vld [vmem:[%s9211_s3 + $0x98] sm:$0xff] }
 0x1ff   :  { %3049 = vmatpush.msrb.mxu3 %v495_v5  ;;  %2940 = vmatpush.msra.mxu1 %v362_v6  ;;  %v638_v43 = vld [vmem:[%s9211_s3 + $0x990] sm:$0xff]  ;;  %v603_v4 = vld [vmem:[%s9211_s3 + $0x878] sm:$0xff] }
 0x200   :  { %3000 = vmatpush.msrb.mxu0 %v938_v8  ;;  %2882 = vmatpush.msra.mxu2 %v913_v11  ;;  %v1226_v44 = vld [vmem:[%s9211_s3 + $0x1bf0] sm:$0xff]  ;;  %v339_v8 = vld [vmem:[%s9211_s3 + $0x38] sm:$0xff] }
 0x201   :  { %3050 = vmatpush.msrb.mxu3 %v483_v12  ;;  %2941 = vmatpush.msra.mxu1 %v350_v13  ;;  %v626_v46 = vld [vmem:[%s9211_s3 + $0x930] sm:$0xff]  ;;  %v591_v11 = vld [vmem:[%s9211_s3 + $0x818] sm:$0xff] }
 0x202   :  { %3001 = vmatpush.msrb.mxu0 %v926_v14  ;;  %2883 = vmatmul.f32.vlgmr.msra.gmra.mxu2 %v5422_v55  ;;  %v1214_v47 = vld [vmem:[%s9211_s3 + $0x1b90] sm:$0xff]  ;;  %v1287_v13 = vld [vmem:[%s9211_s3 + $0x1dd8] sm:$0xff] }
 0x203   :  { %2947 = vmatpush.msrb.mxu2 %v710_v17  ;;  %3051 = vmatpush.msrb.mxu3 %v471_v18  ;;  %v614_v50 = vld [vmem:[%s9211_s3 + $0x8d0] sm:$0xff]  ;;  %v579_v17 = vld [vmem:[%s9211_s3 + $0x7b8] sm:$0xff] }
 0x204   :  { %2942 = vmatpush.msra.mxu1 %v338_v19  ;;  %3002 = vmatpush.msrb.mxu0 %v914_v20  ;;  %v1202_v53 = vld [vmem:[%s9211_s3 + $0x1b30] sm:$0xff]  ;;  %v1275_v19 = vld [vmem:[%s9211_s3 + $0x1d78] sm:$0xff] }
 0x205   :  { %2943 = vmatmul.f32.vlgmr.msra.gmra.mxu1 %v5152_v3  ;;  %2948 = vmatpush.msrb.mxu2 %v698_v21  ;;  %v602_v60 = vld [vmem:[%s9211_s3 + $0x870] sm:$0xff]  ;;  %v567_v21 = vld [vmem:[%s9211_s3 + $0x758] sm:$0xff] }
 0x206   :  { %3003 = vmatmul.f32.vlgmr.msrb.gmra.mxu0 %v5422_v55  ;;  %3007 = vmatpush.msrb.mxu1 %v1286_v22  ;;  %v1190_v61 = vld [vmem:[%s9211_s3 + $0x1ad0] sm:$0xff] }
 0x207   :  { %3052 = vmatpush.msrb.mxu3 %v459_v23  ;;  %3067 = vmatpush.msra.mxu0 %v711_v24  ;;  %v590_v34 = vld [vmem:[%s9211_s3 + $0x810] sm:$0xff]  ;;  %v1263_v23 = vld [vmem:[%s9211_s3 + $0x1d18] sm:$0xff] }
 0x208   :  { %2949 = vmatpush.msrb.mxu2 %v686_v26  ;;  %3008 = vmatpush.msrb.mxu1 %v1274_v7  ;;  %v1178_v0 = vld [vmem:[%s9211_s3 + $0x1a70] sm:$0xff]  ;;  %v555_v26 = vld [vmem:[%s9211_s3 + $0x6f8] sm:$0xff] }
 0x209   :  { %3053 = vmatpush.msrb.mxu3 %v447_v28  ;;  %3068 = vmatpush.msra.mxu0 %v699_v29  ;;  %v578_v5 = vld [vmem:[%s9211_s3 + $0x7b0] sm:$0xff]  ;;  %v1251_v28 = vld [vmem:[%s9211_s3 + $0x1cb8] sm:$0xff] }
 0x20a   :  { %2950 = vmatpush.msrb.mxu2 %v674_v31  ;;  %3009 = vmatpush.msrb.mxu1 %v1262_v32  ;;  %v1166_v6 = vld [vmem:[%s9211_s3 + $0x1a10] sm:$0xff]  ;;  %v543_v31 = vld [vmem:[%s9211_s3 + $0x698] sm:$0xff] }
 0x20b   :  { %3054 = vmatpush.msrb.mxu3 %v435_v10  ;;  %3069 = vmatpush.msra.mxu0 %v687_v33  ;;  %v566_v12 = vld [vmem:[%s9211_s3 + $0x750] sm:$0xff]  ;;  %v1239_v10 = vld [vmem:[%s9211_s3 + $0x1c58] sm:$0xff] }
 0x20c   :  { %2951 = vmatpush.msrb.mxu2 %v662_v35  ;;  %3010 = vmatpush.msrb.mxu1 %v1250_v37  ;;  %v1154_v14 = vld [vmem:[%s9211_s3 + $0x19b0] sm:$0xff]  ;;  %v531_v35 = vld [vmem:[%s9211_s3 + $0x638] sm:$0xff] }
 0x20d   :  { %3055 = vmatpush.msrb.mxu3 %v423_v25  ;;  %3070 = vmatpush.msra.mxu0 %v675_v38  ;;  %v554_v18 = vld [vmem:[%s9211_s3 + $0x6f0] sm:$0xff]  ;;  %v903_v25 = vld [vmem:[%s9211_s3 + $0x11d8] sm:$0xff] }
 0x20e   :  { %2952 = vmatpush.msrb.mxu2 %v650_v39  ;;  %3011 = vmatpush.msrb.mxu1 %v1238_v40  ;;  %v1142_v20 = vld [vmem:[%s9211_s3 + $0x1950] sm:$0xff]  ;;  %v1227_v38 = vld [vmem:[%s9211_s3 + $0x1bf8] sm:$0xff] }
 0x20f   :  { %3056 = vmatpush.msrb.mxu3 %v411_v41  ;;  %3071 = vmatpush.msra.mxu0 %v663_v42  ;;  %v542_v22 = vld [vmem:[%s9211_s3 + $0x690] sm:$0xff]  ;;  %v1479_v39 = vld [vmem:[%s9211_s3 + $0x23d8] sm:$0xff] }
 0x210   :  { %2953 = vmatpush.msrb.mxu2 %v638_v43  ;;  %3012 = vmatpush.msrb.mxu1 %v1226_v44  ;;  %v1130_v24 = vld [vmem:[%s9211_s3 + $0x18f0] sm:$0xff]  ;;  %v891_v41 = vld [vmem:[%s9211_s3 + $0x1178] sm:$0xff] }
 0x211   :  { %3057 = vmatpush.msrb.mxu3 %v399_v45  ;;  %3072 = vmatpush.msra.mxu0 %v651_v51  ;;  %v530_v7 = vld [vmem:[%s9211_s3 + $0x630] sm:$0xff]  ;;  %v1215_v42 = vld [vmem:[%s9211_s3 + $0x1b98] sm:$0xff] }
 0x212   :  { %2954 = vmatpush.msrb.mxu2 %v626_v46  ;;  %3013 = vmatpush.msrb.mxu1 %v1214_v47  ;;  %v1118_v29 = vld [vmem:[%s9211_s3 + $0x1890] sm:$0xff]  ;;  %v1467_v43 = vld [vmem:[%s9211_s3 + $0x2378] sm:$0xff] }
 0x213   :  { %3058 = vmatpush.msrb.mxu3 %v387_v57  ;;  %3073 = vmatpush.msra.mxu0 %v639_v48  ;;  %v1478_v32 = vld [vmem:[%s9211_s3 + $0x23d0] sm:$0xff]  ;;  %v879_v45 = vld [vmem:[%s9211_s3 + $0x1118] sm:$0xff] }
 0x214   :  { %2955 = vmatpush.msrb.mxu2 %v614_v50  ;;  %3014 = vmatpush.msrb.mxu1 %v1202_v53  ;;  %v1106_v33 = vld [vmem:[%s9211_s3 + $0x1830] sm:$0xff]  ;;  %v1203_v51 = vld [vmem:[%s9211_s3 + $0x1b38] sm:$0xff] }
 0x215   :  { %3059 = vmatpush.msrb.mxu3 %v375_v54  ;;  %3074 = vmatpush.msra.mxu0 %v627_v59  ;;  %v1466_v37 = vld [vmem:[%s9211_s3 + $0x2370] sm:$0xff]  ;;  %v1455_v46 = vld [vmem:[%s9211_s3 + $0x2318] sm:$0xff] }
 0x216   :  { %2956 = vmatpush.msrb.mxu2 %v602_v60  ;;  %3015 = vmatpush.msrb.mxu1 %v1190_v61  ;;  %v1454_v40 = vld [vmem:[%s9211_s3 + $0x2310] sm:$0xff]  ;;  %v867_v57 = vld [vmem:[%s9211_s3 + $0x10b8] sm:$0xff] }
 0x217   :  { %3060 = vmatpush.msrb.mxu3 %v363_v62  ;;  %3075 = vmatpush.msra.mxu0 %v615_v63  ;;  %v1442_v44 = vld [vmem:[%s9211_s3 + $0x22b0] sm:$0xff]  ;;  %v1191_v48 = vld [vmem:[%s9211_s3 + $0x1ad8] sm:$0xff] }
 0x218   :  { %2957 = vmatpush.msrb.mxu2 %v590_v34  ;;  %3016 = vmatpush.msrb.mxu1 %v1178_v0  ;;  %v1430_v47 = vld [vmem:[%s9211_s3 + $0x2250] sm:$0xff]  ;;  %v1443_v50 = vld [vmem:[%s9211_s3 + $0x22b8] sm:$0xff] }
 0x219   :  { %3061 = vmatpush.msrb.mxu3 %v351_v2  ;;  %3076 = vmatpush.msra.mxu0 %v603_v4  ;;  %v1418_v53 = vld [vmem:[%s9211_s3 + $0x21f0] sm:$0xff]  ;;  %v855_v54 = vld [vmem:[%s9211_s3 + $0x1058] sm:$0xff] }
 0x21a   :  { %2958 = vmatpush.msrb.mxu2 %v578_v5  ;;  %3017 = vmatpush.msrb.mxu1 %v1166_v6  ;;  %v1179_v59 = vld [vmem:[%s9211_s3 + $0x1a78] sm:$0xff]  ;;  %v1406_v61 = vld [vmem:[%s9211_s3 + $0x2190] sm:$0xff] }
 0x21b   :  { %3062 = vmatpush.msrb.mxu3 %v339_v8  ;;  %3077 = vmatpush.msra.mxu0 %v591_v11  ;;  %v1431_v60 = vld [vmem:[%s9211_s3 + $0x2258] sm:$0xff]  ;;  %v1394_v0 = vld [vmem:[%s9211_s3 + $0x2130] sm:$0xff] }
 0x21c   :  { %3063 = vmatmul.f32.vlgmr.msrb.gmra.mxu3 %v5152_v3  ;;  %2959 = vmatpush.msrb.mxu2 %v566_v12  ;;  %v843_v62 = vld [vmem:[%s9211_s3 + $0xff8] sm:$0xff]  ;;  %v1382_v6 = vld [vmem:[%s9211_s3 + $0x20d0] sm:$0xff] }
 0x21d   :  { %3127 = vmatpush.msra.mxu3 %v1287_v13  ;;  %3018 = vmatpush.msrb.mxu1 %v1154_v14  ;;  %v1167_v63 = vld [vmem:[%s9211_s3 + $0x1a18] sm:$0xff]  ;;  %v1370_v13 = vld [vmem:[%s9211_s3 + $0x2070] sm:$0xff] }
 0x21e   :  { %3078 = vmatpush.msra.mxu0 %v579_v17  ;;  %2960 = vmatpush.msrb.mxu2 %v554_v18  ;;  %v1419_v34 = vld [vmem:[%s9211_s3 + $0x21f8] sm:$0xff] }
 0x21f   :  { %3128 = vmatpush.msra.mxu3 %v1275_v19  ;;  %3019 = vmatpush.msrb.mxu1 %v1142_v20  ;;  %v831_v2 = vld [vmem:[%s9211_s3 + $0xf98] sm:$0xff]  ;;  %v1358_v19 = vld [vmem:[%s9211_s3 + $0x2010] sm:$0xff] }
 0x220   :  { %3079 = vmatpush.msra.mxu0 %v567_v21  ;;  %2961 = vmatpush.msrb.mxu2 %v542_v22  ;;  %v1155_v4 = vld [vmem:[%s9211_s3 + $0x19b8] sm:$0xff] }
 0x221   :  { %3129 = vmatpush.msra.mxu3 %v1263_v23  ;;  %3020 = vmatpush.msrb.mxu1 %v1130_v24  ;;  %v1407_v5 = vld [vmem:[%s9211_s3 + $0x2198] sm:$0xff]  ;;  %v1346_v23 = vld [vmem:[%s9211_s3 + $0x1fb0] sm:$0xff] }
 0x222   :  { %3080 = vmatpush.msra.mxu0 %v555_v26  ;;  %2962 = vmatpush.msrb.mxu2 %v530_v7  ;;  %v819_v8 = vld [vmem:[%s9211_s3 + $0xf38] sm:$0xff] }
 0x223   :  { %3130 = vmatpush.msra.mxu3 %v1251_v28  ;;  %3021 = vmatpush.msrb.mxu1 %v1118_v29  ;;  %v1143_v11 = vld [vmem:[%s9211_s3 + $0x1958] sm:$0xff]  ;;  %v1334_v28 = vld [vmem:[%s9211_s3 + $0x1f50] sm:$0xff]  ;;  %v904_v29 = vld [vmem:[%s9211_s3 + $0x11e0] sm:$0xff] }
 0x224   :  { %3081 = vmatpush.msra.mxu0 %v543_v31  ;;  %2963 = vmatmul.f32.vlgmr.msrb.gmra.mxu2 %v5200_v27  ;;  %v1395_v12 = vld [vmem:[%s9211_s3 + $0x2138] sm:$0xff] }
 0x225   :  { %3027 = vmatpush.msra.mxu2 %v1478_v32  ;;  %3131 = vmatpush.msra.mxu3 %v1239_v10  ;;  %v807_v14 = vld [vmem:[%s9211_s3 + $0xed8] sm:$0xff]  ;;  %v1322_v10 = vld [vmem:[%s9211_s3 + $0x1ef0] sm:$0xff] }
 0x226   :  { %3022 = vmatpush.msrb.mxu1 %v1106_v33  ;;  %3082 = vmatpush.msra.mxu0 %v531_v35  ;;  %v1131_v17 = vld [vmem:[%s9211_s3 + $0x18f8] sm:$0xff]  ;;  %v892_v33 = vld [vmem:[%s9211_s3 + $0x1180] sm:$0xff] }
 0x227   :  { %3023 = vmatmul.f32.vlgmr.msrb.gmra.mxu1 %v5577_v56  ;;  %3028 = vmatpush.msra.mxu2 %v1466_v37  ;;  %v1383_v18 = vld [vmem:[%s9211_s3 + $0x20d8] sm:$0xff] }
 0x228   :  { %3083 = vmatmul.f32.vlgmr.msra.gmra.mxu0 %v5200_v27  ;;  %3087 = vmatpush.msra.mxu1 %v903_v25  ;;  %v795_v20 = vld [vmem:[%s9211_s3 + $0xe78] sm:$0xff]  ;;  %v1310_v25 = vld [vmem:[%s9211_s3 + $0x1e90] sm:$0xff] }
 0x229   :  { %3132 = vmatpush.msra.mxu3 %v1227_v38  ;;  %3147 = vmatpush.msrb.mxu0 %v1479_v39  ;;  %v1119_v21 = vld [vmem:[%s9211_s3 + $0x1898] sm:$0xff]  ;;  %v880_v38 = vld [vmem:[%s9211_s3 + $0x1120] sm:$0xff] }
 0x22a   :  { %3029 = vmatpush.msra.mxu2 %v1454_v40  ;;  %3088 = vmatpush.msra.mxu1 %v891_v41  ;;  %v1371_v22 = vld [vmem:[%s9211_s3 + $0x2078] sm:$0xff]  ;;  %v1298_v41 = vld [vmem:[%s9211_s3 + $0x1e30] sm:$0xff] }
 0x22b   :  { %3133 = vmatpush.msra.mxu3 %v1215_v42  ;;  %3148 = vmatpush.msrb.mxu0 %v1467_v43  ;;  %v783_v24 = vld [vmem:[%s9211_s3 + $0xe18] sm:$0xff]  ;;  %v868_v42 = vld [vmem:[%s9211_s3 + $0x10c0] sm:$0xff] }
 0x22c   :  { %3030 = vmatpush.msra.mxu2 %v1442_v44  ;;  %3089 = vmatpush.msra.mxu1 %v879_v45  ;;  %v1107_v26 = vld [vmem:[%s9211_s3 + $0x1838] sm:$0xff] }
 0x22d   :  { %3134 = vmatpush.msra.mxu3 %v1203_v51  ;;  %3149 = vmatpush.msrb.mxu0 %v1455_v46  ;;  %v1359_v7 = vld [vmem:[%s9211_s3 + $0x2018] sm:$0xff]  ;;  %v856_v51 = vld [vmem:[%s9211_s3 + $0x1060] sm:$0xff] }
 0x22e   :  { %3031 = vmatpush.msra.mxu2 %v1430_v47  ;;  %3090 = vmatpush.msra.mxu1 %v867_v57  ;;  %v771_v31 = vld [vmem:[%s9211_s3 + $0xdb8] sm:$0xff] }
 0x22f   :  { %3135 = vmatpush.msra.mxu3 %v1191_v48  ;;  %3150 = vmatpush.msrb.mxu0 %v1443_v50  ;;  %v1347_v32 = vld [vmem:[%s9211_s3 + $0x1fb8] sm:$0xff]  ;;  %v520_v48 = vld [vmem:[%s9211_s3 + $0x5e0] sm:$0xff] }
 0x230   :  { %3032 = vmatpush.msra.mxu2 %v1418_v53  ;;  %3091 = vmatpush.msra.mxu1 %v855_v54  ;;  %v759_v35 = vld [vmem:[%s9211_s3 + $0xd58] sm:$0xff]  ;;  %v844_v50 = vld [vmem:[%s9211_s3 + $0x1000] sm:$0xff] }
 0x231   :  { %3136 = vmatpush.msra.mxu3 %v1179_v59  ;;  %3151 = vmatpush.msrb.mxu0 %v1431_v60  ;;  %v1335_v37 = vld [vmem:[%s9211_s3 + $0x1f58] sm:$0xff]  ;;  %v1096_v53 = vld [vmem:[%s9211_s3 + $0x17e0] sm:$0xff] }
 0x232   :  { %3033 = vmatpush.msra.mxu2 %v1406_v61  ;;  %3092 = vmatpush.msra.mxu1 %v843_v62  ;;  %v747_v39 = vld [vmem:[%s9211_s3 + $0xcf8] sm:$0xff]  ;;  %v508_v59 = vld [vmem:[%s9211_s3 + $0x580] sm:$0xff] }
 0x233   :  { %3137 = vmatpush.msra.mxu3 %v1167_v63  ;;  %3152 = vmatpush.msrb.mxu0 %v1419_v34  ;;  %v1323_v40 = vld [vmem:[%s9211_s3 + $0x1ef8] sm:$0xff]  ;;  %v832_v60 = vld [vmem:[%s9211_s3 + $0xfa0] sm:$0xff] }
 0x234   :  { %3034 = vmatpush.msra.mxu2 %v1394_v0  ;;  %3093 = vmatpush.msra.mxu1 %v831_v2  ;;  %v735_v43 = vld [vmem:[%s9211_s3 + $0xc98] sm:$0xff]  ;;  %v1084_v61 = vld [vmem:[%s9211_s3 + $0x1780] sm:$0xff] }
 0x235   :  { %3138 = vmatpush.msra.mxu3 %v1155_v4  ;;  %3153 = vmatpush.msrb.mxu0 %v1407_v5  ;;  %v1311_v44 = vld [vmem:[%s9211_s3 + $0x1e98] sm:$0xff]  ;;  %v496_v63 = vld [vmem:[%s9211_s3 + $0x520] sm:$0xff] }
 0x236   :  { %3035 = vmatpush.msra.mxu2 %v1382_v6  ;;  %3094 = vmatpush.msra.mxu1 %v819_v8  ;;  %v1095_v45 = vld [vmem:[%s9211_s3 + $0x17d8] sm:$0xff]  ;;  %v820_v34 = vld [vmem:[%s9211_s3 + $0xf40] sm:$0xff] }
 0x237   :  { %3139 = vmatpush.msra.mxu3 %v1143_v11  ;;  %3154 = vmatpush.msrb.mxu0 %v1395_v12  ;;  %v723_v46 = vld [vmem:[%s9211_s3 + $0xc38] sm:$0xff]  ;;  %v1072_v0 = vld [vmem:[%s9211_s3 + $0x1720] sm:$0xff] }
 0x238   :  { %3036 = vmatpush.msra.mxu2 %v1370_v13  ;;  %3095 = vmatpush.msra.mxu1 %v807_v14  ;;  %v1299_v47 = vld [vmem:[%s9211_s3 + $0x1e38] sm:$0xff]  ;;  %v484_v4 = vld [vmem:[%s9211_s3 + $0x4c0] sm:$0xff] }
 0x239   :  { %3140 = vmatpush.msra.mxu3 %v1131_v17  ;;  %3155 = vmatpush.msrb.mxu0 %v1383_v18  ;;  %v1083_v57 = vld [vmem:[%s9211_s3 + $0x1778] sm:$0xff]  ;;  %v808_v5 = vld [vmem:[%s9211_s3 + $0xee0] sm:$0xff] }
 0x23a   :  { %3037 = vmatpush.msra.mxu2 %v1358_v19  ;;  %3096 = vmatpush.msra.mxu1 %v795_v20  ;;  %v1071_v54 = vld [vmem:[%s9211_s3 + $0x1718] sm:$0xff]  ;;  %v1060_v6 = vld [vmem:[%s9211_s3 + $0x16c0] sm:$0xff] }
 0x23b   :  { %3141 = vmatpush.msra.mxu3 %v1119_v21  ;;  %3156 = vmatpush.msrb.mxu0 %v1371_v22  ;;  %v1059_v62 = vld [vmem:[%s9211_s3 + $0x16b8] sm:$0xff]  ;;  %v472_v11 = vld [vmem:[%s9211_s3 + $0x460] sm:$0xff] }
 0x23c   :  { %3038 = vmatpush.msra.mxu2 %v1346_v23  ;;  %3097 = vmatpush.msra.mxu1 %v783_v24  ;;  %v1047_v2 = vld [vmem:[%s9211_s3 + $0x1658] sm:$0xff]  ;;  %v796_v12 = vld [vmem:[%s9211_s3 + $0xe80] sm:$0xff] }
 0x23d   :  { %3142 = vmatpush.msra.mxu3 %v1107_v26  ;;  %3157 = vmatpush.msrb.mxu0 %v1359_v7  ;;  %v1035_v8 = vld [vmem:[%s9211_s3 + $0x15f8] sm:$0xff]  ;;  %v1048_v13 = vld [vmem:[%s9211_s3 + $0x1660] sm:$0xff] }
 0x23e   :  { %3143 = vmatmul.f32.vlgmr.msra.gmra.mxu3 %v5577_v56  ;;  %3039 = vmatpush.msra.mxu2 %v1334_v28  ;;  %v1023_v14 = vld [vmem:[%s9211_s3 + $0x1598] sm:$0xff]  ;;  %v460_v17 = vld [vmem:[%s9211_s3 + $0x400] sm:$0xff] }
 0x23f   :  { %3207 = vmatpush.msrb.mxu3 %v904_v29  ;;  %3098 = vmatpush.msra.mxu1 %v771_v31  ;;  %v784_v18 = vld [vmem:[%s9211_s3 + $0xe20] sm:$0xff]  ;;  %v1011_v20 = vld [vmem:[%s9211_s3 + $0x1538] sm:$0xff] }
 0x240   :  { %3158 = vmatpush.msrb.mxu0 %v1347_v32  ;;  %3040 = vmatpush.msra.mxu2 %v1322_v10  ;;  %v1036_v19 = vld [vmem:[%s9211_s3 + $0x1600] sm:$0xff]  ;;  %v999_v24 = vld [vmem:[%s9211_s3 + $0x14d8] sm:$0xff] }
 0x241   :  { %3208 = vmatpush.msrb.mxu3 %v892_v33  ;;  %3099 = vmatpush.msra.mxu1 %v759_v35  ;;  %v448_v21 = vld [vmem:[%s9211_s3 + $0x3a0] sm:$0xff]  ;;  %v987_v29 = vld [vmem:[%s9211_s3 + $0x1478] sm:$0xff] }
 0x242   :  { %3159 = vmatpush.msrb.mxu0 %v1335_v37  ;;  %3041 = vmatpush.msra.mxu2 %v1310_v25  ;;  %v772_v22 = vld [vmem:[%s9211_s3 + $0xdc0] sm:$0xff]  ;;  %v975_v33 = vld [vmem:[%s9211_s3 + $0x1418] sm:$0xff] }
 0x243   :  { %3209 = vmatpush.msrb.mxu3 %v880_v38  ;;  %3100 = vmatpush.msra.mxu1 %v747_v39  ;;  %v1024_v23 = vld [vmem:[%s9211_s3 + $0x15a0] sm:$0xff]  ;;  %v963_v38 = vld [vmem:[%s9211_s3 + $0x13b8] sm:$0xff] }
 0x244   :  { %3160 = vmatpush.msrb.mxu0 %v1323_v40  ;;  %3042 = vmatpush.msra.mxu2 %v1298_v41  ;;  %v436_v26 = vld [vmem:[%s9211_s3 + $0x340] sm:$0xff] }
 0x245   :  { %3210 = vmatpush.msrb.mxu3 %v868_v42  ;;  %3101 = vmatpush.msra.mxu1 %v735_v43  ;;  %v760_v7 = vld [vmem:[%s9211_s3 + $0xd60] sm:$0xff]  ;;  %v951_v42 = vld [vmem:[%s9211_s3 + $0x1358] sm:$0xff]  ;;  %v521_v43 = vld [vmem:[%s9211_s3 + $0x5e8] sm:$0xff] }
 0x246   :  { %3161 = vmatpush.msrb.mxu0 %v1311_v44  ;;  %3043 = vmatmul.f32.vlgmr.msra.gmra.mxu2 %v5725_v52  ;;  %v1012_v28 = vld [vmem:[%s9211_s3 + $0x1540] sm:$0xff] }
 0x247   :  { %3107 = vmatpush.msrb.mxu2 %v1095_v45  ;;  %3211 = vmatpush.msrb.mxu3 %v856_v51  ;;  %v424_v31 = vld [vmem:[%s9211_s3 + $0x2e0] sm:$0xff]  ;;  %v939_v51 = vld [vmem:[%s9211_s3 + $0x12f8] sm:$0xff] }
 0x248   :  { %3102 = vmatpush.msra.mxu1 %v723_v46  ;;  %3162 = vmatpush.msrb.mxu0 %v1299_v47  ;;  %v748_v32 = vld [vmem:[%s9211_s3 + $0xd00] sm:$0xff]  ;;  %v509_v46 = vld [vmem:[%s9211_s3 + $0x588] sm:$0xff] }
 0x249   :  { %3103 = vmatmul.f32.vlgmr.msra.gmra.mxu1 %v5367_v30  ;;  %3108 = vmatpush.msrb.mxu2 %v1083_v57  ;;  %v1000_v10 = vld [vmem:[%s9211_s3 + $0x14e0] sm:$0xff] }
 0x24a   :  { %3163 = vmatmul.f32.vlgmr.msrb.gmra.mxu0 %v5725_v52  ;;  %3167 = vmatpush.msrb.mxu1 %v520_v48  ;;  %v412_v35 = vld [vmem:[%s9211_s3 + $0x280] sm:$0xff]  ;;  %v927_v48 = vld [vmem:[%s9211_s3 + $0x1298] sm:$0xff] }
 0x24b   :  { %3212 = vmatpush.msrb.mxu3 %v844_v50  ;;  %3227 = vmatpush.msra.mxu0 %v1096_v53  ;;  %v736_v37 = vld [vmem:[%s9211_s3 + $0xca0] sm:$0xff]  ;;  %v497_v50 = vld [vmem:[%s9211_s3 + $0x528] sm:$0xff] }
 0x24c   :  { %3109 = vmatpush.msrb.mxu2 %v1071_v54  ;;  %3168 = vmatpush.msrb.mxu1 %v508_v59  ;;  %v988_v25 = vld [vmem:[%s9211_s3 + $0x1480] sm:$0xff]  ;;  %v915_v59 = vld [vmem:[%s9211_s3 + $0x1238] sm:$0xff] }
 0x24d   :  { %3213 = vmatpush.msrb.mxu3 %v832_v60  ;;  %3228 = vmatpush.msra.mxu0 %v1084_v61  ;;  %v400_v39 = vld [vmem:[%s9211_s3 + $0x220] sm:$0xff]  ;;  %v485_v60 = vld [vmem:[%s9211_s3 + $0x4c8] sm:$0xff] }
 0x24e   :  { %3110 = vmatpush.msrb.mxu2 %v1059_v62  ;;  %3169 = vmatpush.msrb.mxu1 %v496_v63  ;;  %v724_v40 = vld [vmem:[%s9211_s3 + $0xc40] sm:$0xff] }
 0x24f   :  { %3214 = vmatpush.msrb.mxu3 %v820_v34  ;;  %3229 = vmatpush.msra.mxu0 %v1072_v0  ;;  %v976_v41 = vld [vmem:[%s9211_s3 + $0x1420] sm:$0xff]  ;;  %v473_v34 = vld [vmem:[%s9211_s3 + $0x468] sm:$0xff] }
 0x250   :  { %3111 = vmatpush.msrb.mxu2 %v1047_v2  ;;  %3170 = vmatpush.msrb.mxu1 %v484_v4  ;;  %v388_v44 = vld [vmem:[%s9211_s3 + $0x1c0] sm:$0xff] }
 0x251   :  { %3215 = vmatpush.msrb.mxu3 %v808_v5  ;;  %3230 = vmatpush.msra.mxu0 %v1060_v6  ;;  %v964_v45 = vld [vmem:[%s9211_s3 + $0x13c0] sm:$0xff]  ;;  %v461_v6 = vld [vmem:[%s9211_s3 + $0x408] sm:$0xff] }
 0x252   :  { %3112 = vmatpush.msrb.mxu2 %v1035_v8  ;;  %3171 = vmatpush.msrb.mxu1 %v472_v11  ;;  %v376_v47 = vld [vmem:[%s9211_s3 + $0x160] sm:$0xff]  ;;  %v713_v8 = vld [vmem:[%s9211_s3 + $0xbe8] sm:$0xff] }
 0x253   :  { %3216 = vmatpush.msrb.mxu3 %v796_v12  ;;  %3231 = vmatpush.msra.mxu0 %v1048_v13  ;;  %v952_v57 = vld [vmem:[%s9211_s3 + $0x1360] sm:$0xff]  ;;  %v449_v13 = vld [vmem:[%s9211_s3 + $0x3a8] sm:$0xff] }
 0x254   :  { %3113 = vmatpush.msrb.mxu2 %v1023_v14  ;;  %3172 = vmatpush.msrb.mxu1 %v460_v17  ;;  %v364_v53 = vld [vmem:[%s9211_s3 + $0x100] sm:$0xff]  ;;  %v701_v14 = vld [vmem:[%s9211_s3 + $0xb88] sm:$0xff] }
 0x255   :  { %3217 = vmatpush.msrb.mxu3 %v784_v18  ;;  %3232 = vmatpush.msra.mxu0 %v1036_v19  ;;  %v940_v54 = vld [vmem:[%s9211_s3 + $0x1300] sm:$0xff]  ;;  %v437_v19 = vld [vmem:[%s9211_s3 + $0x348] sm:$0xff] }
 0x256   :  { %3114 = vmatpush.msrb.mxu2 %v1011_v20  ;;  %3173 = vmatpush.msrb.mxu1 %v448_v21  ;;  %v352_v61 = vld [vmem:[%s9211_s3 + $0xa0] sm:$0xff]  ;;  %v689_v20 = vld [vmem:[%s9211_s3 + $0xb28] sm:$0xff] }
 0x257   :  { %3218 = vmatpush.msrb.mxu3 %v772_v22  ;;  %3233 = vmatpush.msra.mxu0 %v1024_v23  ;;  %v928_v62 = vld [vmem:[%s9211_s3 + $0x12a0] sm:$0xff]  ;;  %v425_v23 = vld [vmem:[%s9211_s3 + $0x2e8] sm:$0xff] }
 0x258   :  { %3115 = vmatpush.msrb.mxu2 %v999_v24  ;;  %3174 = vmatpush.msrb.mxu1 %v436_v26  ;;  %v712_v63 = vld [vmem:[%s9211_s3 + $0xbe0] sm:$0xff]  ;;  %v677_v24 = vld [vmem:[%s9211_s3 + $0xac8] sm:$0xff] }
 0x259   :  { %3219 = vmatpush.msrb.mxu3 %v760_v7  ;;  %3234 = vmatpush.msra.mxu0 %v1012_v28  ;;  %v340_v0 = vld [vmem:[%s9211_s3 + $0x40] sm:$0xff]  ;;  %v413_v28 = vld [vmem:[%s9211_s3 + $0x288] sm:$0xff] }
 0x25a   :  { %3116 = vmatpush.msrb.mxu2 %v987_v29  ;;  %3175 = vmatpush.msrb.mxu1 %v424_v31  ;;  %v916_v2 = vld [vmem:[%s9211_s3 + $0x1240] sm:$0xff]  ;;  %v665_v29 = vld [vmem:[%s9211_s3 + $0xa68] sm:$0xff] }
 0x25b   :  { %3220 = vmatpush.msrb.mxu3 %v748_v32  ;;  %3235 = vmatpush.msra.mxu0 %v1000_v10  ;;  %v700_v4 = vld [vmem:[%s9211_s3 + $0xb80] sm:$0xff]  ;;  %v401_v10 = vld [vmem:[%s9211_s3 + $0x228] sm:$0xff] }
 0x25c   :  { %3117 = vmatpush.msrb.mxu2 %v975_v33  ;;  %3176 = vmatpush.msrb.mxu1 %v412_v35  ;;  %v1288_v5 = vld [vmem:[%s9211_s3 + $0x1de0] sm:$0xff]  ;;  %v653_v33 = vld [vmem:[%s9211_s3 + $0xa08] sm:$0xff] }
 0x25d   :  { %3221 = vmatpush.msrb.mxu3 %v736_v37  ;;  %3236 = vmatpush.msra.mxu0 %v988_v25  ;;  %v688_v11 = vld [vmem:[%s9211_s3 + $0xb20] sm:$0xff]  ;;  %v389_v25 = vld [vmem:[%s9211_s3 + $0x1c8] sm:$0xff] }
 0x25e   :  { %3118 = vmatpush.msrb.mxu2 %v963_v38  ;;  %3177 = vmatpush.msrb.mxu1 %v400_v39  ;;  %v1276_v12 = vld [vmem:[%s9211_s3 + $0x1d80] sm:$0xff]  ;;  %v641_v38 = vld [vmem:[%s9211_s3 + $0x9a8] sm:$0xff] }
 0x25f   :  { %3222 = vmatpush.msrb.mxu3 %v724_v40  ;;  %3237 = vmatpush.msra.mxu0 %v976_v41  ;;  %v676_v17 = vld [vmem:[%s9211_s3 + $0xac0] sm:$0xff]  ;;  %v377_v41 = vld [vmem:[%s9211_s3 + $0x168] sm:$0xff] }
 0x260   :  { %3223 = vmatmul.f32.vlgmr.msrb.gmra.mxu3 %v5367_v30  ;;  %3119 = vmatpush.msrb.mxu2 %v951_v42  ;;  %v1264_v18 = vld [vmem:[%s9211_s3 + $0x1d20] sm:$0xff]  ;;  %v629_v42 = vld [vmem:[%s9211_s3 + $0x948] sm:$0xff] }
 0x261   :  { %3287 = vmatpush.msra.mxu3 %v521_v43  ;;  %3178 = vmatpush.msrb.mxu1 %v388_v44  ;;  %v664_v21 = vld [vmem:[%s9211_s3 + $0xa60] sm:$0xff] }
 0x262   :  { %3238 = vmatpush.msra.mxu0 %v964_v45  ;;  %3120 = vmatpush.msrb.mxu2 %v939_v51  ;;  %v1252_v22 = vld [vmem:[%s9211_s3 + $0x1cc0] sm:$0xff]  ;;  %v365_v45 = vld [vmem:[%s9211_s3 + $0x108] sm:$0xff] }
 0x263   :  { %3288 = vmatpush.msra.mxu3 %v509_v46  ;;  %3179 = vmatpush.msrb.mxu1 %v376_v47  ;;  %v652_v26 = vld [vmem:[%s9211_s3 + $0xa00] sm:$0xff]  ;;  %v617_v51 = vld [vmem:[%s9211_s3 + $0x8e8] sm:$0xff] }
 0x264   :  { %3239 = vmatpush.msra.mxu0 %v952_v57  ;;  %3121 = vmatpush.msrb.mxu2 %v927_v48  ;;  %v1240_v7 = vld [vmem:[%s9211_s3 + $0x1c60] sm:$0xff]  ;;  %v353_v57 = vld [vmem:[%s9211_s3 + $0xa8] sm:$0xff] }
 0x265   :  { %3289 = vmatpush.msra.mxu3 %v497_v50  ;;  %3180 = vmatpush.msrb.mxu1 %v364_v53  ;;  %v640_v31 = vld [vmem:[%s9211_s3 + $0x9a0] sm:$0xff]  ;;  %v605_v48 = vld [vmem:[%s9211_s3 + $0x888] sm:$0xff] }
 0x266   :  { %3240 = vmatpush.msra.mxu0 %v940_v54  ;;  %3122 = vmatpush.msrb.mxu2 %v915_v59  ;;  %v1228_v32 = vld [vmem:[%s9211_s3 + $0x1c00] sm:$0xff]  ;;  %v341_v54 = vld [vmem:[%s9211_s3 + $0x48] sm:$0xff] }
 0x267   :  { %3290 = vmatpush.msra.mxu3 %v485_v60  ;;  %3181 = vmatpush.msrb.mxu1 %v352_v61  ;;  %v628_v35 = vld [vmem:[%s9211_s3 + $0x940] sm:$0xff]  ;;  %v593_v59 = vld [vmem:[%s9211_s3 + $0x828] sm:$0xff] }
 0x268   :  { %3241 = vmatpush.msra.mxu0 %v928_v62  ;;  %3123 = vmatmul.f32.vlgmr.msrb.gmra.mxu2 %v5422_v55  ;;  %v1216_v37 = vld [vmem:[%s9211_s3 + $0x1ba0] sm:$0xff]  ;;  %v1289_v61 = vld [vmem:[%s9211_s3 + $0x1de8] sm:$0xff] }
 0x269   :  { %3187 = vmatpush.msra.mxu2 %v712_v63  ;;  %3291 = vmatpush.msra.mxu3 %v473_v34  ;;  %v616_v39 = vld [vmem:[%s9211_s3 + $0x8e0] sm:$0xff]  ;;  %v581_v63 = vld [vmem:[%s9211_s3 + $0x7c8] sm:$0xff] }
 0x26a   :  { %3182 = vmatpush.msrb.mxu1 %v340_v0  ;;  %3242 = vmatpush.msra.mxu0 %v916_v2  ;;  %v1204_v40 = vld [vmem:[%s9211_s3 + $0x1b40] sm:$0xff]  ;;  %v1277_v0 = vld [vmem:[%s9211_s3 + $0x1d88] sm:$0xff] }
 0x26b   :  { %3183 = vmatmul.f32.vlgmr.msrb.gmra.mxu1 %v5152_v3  ;;  %3188 = vmatpush.msra.mxu2 %v700_v4  ;;  %v604_v43 = vld [vmem:[%s9211_s3 + $0x880] sm:$0xff]  ;;  %v569_v4 = vld [vmem:[%s9211_s3 + $0x768] sm:$0xff] }
 0x26c   :  { %3243 = vmatmul.f32.vlgmr.msra.gmra.mxu0 %v5422_v55  ;;  %3247 = vmatpush.msra.mxu1 %v1288_v5  ;;  %v1192_v44 = vld [vmem:[%s9211_s3 + $0x1ae0] sm:$0xff] }
 0x26d   :  { %3292 = vmatpush.msra.mxu3 %v461_v6  ;;  %3307 = vmatpush.msrb.mxu0 %v713_v8  ;;  %v592_v46 = vld [vmem:[%s9211_s3 + $0x820] sm:$0xff]  ;;  %v1265_v6 = vld [vmem:[%s9211_s3 + $0x1d28] sm:$0xff] }
 0x26e   :  { %3189 = vmatpush.msra.mxu2 %v688_v11  ;;  %3248 = vmatpush.msra.mxu1 %v1276_v12  ;;  %v1180_v47 = vld [vmem:[%s9211_s3 + $0x1a80] sm:$0xff]  ;;  %v557_v11 = vld [vmem:[%s9211_s3 + $0x708] sm:$0xff] }
 0x26f   :  { %3293 = vmatpush.msra.mxu3 %v449_v13  ;;  %3308 = vmatpush.msrb.mxu0 %v701_v14  ;;  %v580_v50 = vld [vmem:[%s9211_s3 + $0x7c0] sm:$0xff]  ;;  %v1253_v13 = vld [vmem:[%s9211_s3 + $0x1cc8] sm:$0xff] }
 0x270   :  { %3190 = vmatpush.msra.mxu2 %v676_v17  ;;  %3249 = vmatpush.msra.mxu1 %v1264_v18  ;;  %v1168_v53 = vld [vmem:[%s9211_s3 + $0x1a20] sm:$0xff]  ;;  %v545_v17 = vld [vmem:[%s9211_s3 + $0x6a8] sm:$0xff] }
 0x271   :  { %3294 = vmatpush.msra.mxu3 %v437_v19  ;;  %3309 = vmatpush.msrb.mxu0 %v689_v20  ;;  %v568_v60 = vld [vmem:[%s9211_s3 + $0x760] sm:$0xff]  ;;  %v1241_v19 = vld [vmem:[%s9211_s3 + $0x1c68] sm:$0xff] }
 0x272   :  { %3191 = vmatpush.msra.mxu2 %v664_v21  ;;  %3250 = vmatpush.msra.mxu1 %v1252_v22  ;;  %v1156_v62 = vld [vmem:[%s9211_s3 + $0x19c0] sm:$0xff]  ;;  %v533_v21 = vld [vmem:[%s9211_s3 + $0x648] sm:$0xff] }
 0x273   :  { %3295 = vmatpush.msra.mxu3 %v425_v23  ;;  %3310 = vmatpush.msrb.mxu0 %v677_v24  ;;  %v556_v34 = vld [vmem:[%s9211_s3 + $0x700] sm:$0xff]  ;;  %v905_v23 = vld [vmem:[%s9211_s3 + $0x11e8] sm:$0xff] }
 0x274   :  { %3192 = vmatpush.msra.mxu2 %v652_v26  ;;  %3251 = vmatpush.msra.mxu1 %v1240_v7  ;;  %v1144_v2 = vld [vmem:[%s9211_s3 + $0x1960] sm:$0xff]  ;;  %v1229_v24 = vld [vmem:[%s9211_s3 + $0x1c08] sm:$0xff] }
 0x275   :  { %3296 = vmatpush.msra.mxu3 %v413_v28  ;;  %3311 = vmatpush.msrb.mxu0 %v665_v29  ;;  %v544_v5 = vld [vmem:[%s9211_s3 + $0x6a0] sm:$0xff]  ;;  %v1481_v26 = vld [vmem:[%s9211_s3 + $0x23e8] sm:$0xff] }
 0x276   :  { %3193 = vmatpush.msra.mxu2 %v640_v31  ;;  %3252 = vmatpush.msra.mxu1 %v1228_v32  ;;  %v1132_v8 = vld [vmem:[%s9211_s3 + $0x1900] sm:$0xff]  ;;  %v893_v28 = vld [vmem:[%s9211_s3 + $0x1188] sm:$0xff] }
 0x277   :  { %3297 = vmatpush.msra.mxu3 %v401_v10  ;;  %3312 = vmatpush.msrb.mxu0 %v653_v33  ;;  %v532_v12 = vld [vmem:[%s9211_s3 + $0x640] sm:$0xff]  ;;  %v1217_v29 = vld [vmem:[%s9211_s3 + $0x1ba8] sm:$0xff] }
 0x278   :  { %3194 = vmatpush.msra.mxu2 %v628_v35  ;;  %3253 = vmatpush.msra.mxu1 %v1216_v37  ;;  %v1120_v14 = vld [vmem:[%s9211_s3 + $0x18a0] sm:$0xff]  ;;  %v1469_v31 = vld [vmem:[%s9211_s3 + $0x2388] sm:$0xff] }
 0x279   :  { %3298 = vmatpush.msra.mxu3 %v389_v25  ;;  %3313 = vmatpush.msrb.mxu0 %v641_v38  ;;  %v1480_v18 = vld [vmem:[%s9211_s3 + $0x23e0] sm:$0xff]  ;;  %v881_v10 = vld [vmem:[%s9211_s3 + $0x1128] sm:$0xff] }
 0x27a   :  { %3195 = vmatpush.msra.mxu2 %v616_v39  ;;  %3254 = vmatpush.msra.mxu1 %v1204_v40  ;;  %v1108_v20 = vld [vmem:[%s9211_s3 + $0x1840] sm:$0xff]  ;;  %v1205_v33 = vld [vmem:[%s9211_s3 + $0x1b48] sm:$0xff] }
 0x27b   :  { %3299 = vmatpush.msra.mxu3 %v377_v41  ;;  %3314 = vmatpush.msrb.mxu0 %v629_v42  ;;  %v1468_v22 = vld [vmem:[%s9211_s3 + $0x2380] sm:$0xff]  ;;  %v1457_v35 = vld [vmem:[%s9211_s3 + $0x2328] sm:$0xff] }
 0x27c   :  { %3196 = vmatpush.msra.mxu2 %v604_v43  ;;  %3255 = vmatpush.msra.mxu1 %v1192_v44  ;;  %v1456_v7 = vld [vmem:[%s9211_s3 + $0x2320] sm:$0xff]  ;;  %v869_v25 = vld [vmem:[%s9211_s3 + $0x10c8] sm:$0xff] }
 0x27d   :  { %3300 = vmatpush.msra.mxu3 %v365_v45  ;;  %3315 = vmatpush.msrb.mxu0 %v617_v51  ;;  %v1444_v32 = vld [vmem:[%s9211_s3 + $0x22c0] sm:$0xff]  ;;  %v1193_v38 = vld [vmem:[%s9211_s3 + $0x1ae8] sm:$0xff] }
 0x27e   :  { %3197 = vmatpush.msra.mxu2 %v592_v46  ;;  %3256 = vmatpush.msra.mxu1 %v1180_v47  ;;  %v1432_v37 = vld [vmem:[%s9211_s3 + $0x2260] sm:$0xff]  ;;  %v1445_v39 = vld [vmem:[%s9211_s3 + $0x22c8] sm:$0xff] }
 0x27f   :  { %3301 = vmatpush.msra.mxu3 %v353_v57  ;;  %3316 = vmatpush.msrb.mxu0 %v605_v48  ;;  %v1420_v40 = vld [vmem:[%s9211_s3 + $0x2200] sm:$0xff]  ;;  %v857_v41 = vld [vmem:[%s9211_s3 + $0x1068] sm:$0xff] }
 0x280   :  { %3198 = vmatpush.msra.mxu2 %v580_v50  ;;  %3257 = vmatpush.msra.mxu1 %v1168_v53  ;;  %v1181_v42 = vld [vmem:[%s9211_s3 + $0x1a88] sm:$0xff]  ;;  %v1408_v44 = vld [vmem:[%s9211_s3 + $0x21a0] sm:$0xff] }
 0x281   :  { %3302 = vmatpush.msra.mxu3 %v341_v54  ;;  %3317 = vmatpush.msrb.mxu0 %v593_v59  ;;  %v1433_v43 = vld [vmem:[%s9211_s3 + $0x2268] sm:$0xff]  ;;  %v1396_v47 = vld [vmem:[%s9211_s3 + $0x2140] sm:$0xff] }
 0x282   :  { %3303 = vmatmul.f32.vlgmr.msra.gmra.mxu3 %v5152_v3  ;;  %3199 = vmatpush.msra.mxu2 %v568_v60  ;;  %v845_v45 = vld [vmem:[%s9211_s3 + $0x1008] sm:$0xff]  ;;  %v1384_v53 = vld [vmem:[%s9211_s3 + $0x20e0] sm:$0xff] }
 0x283   :  { %3367 = vmatpush.msrb.mxu3 %v1289_v61  ;;  %3258 = vmatpush.msra.mxu1 %v1156_v62  ;;  %v1169_v51 = vld [vmem:[%s9211_s3 + $0x1a28] sm:$0xff]  ;;  %v1372_v61 = vld [vmem:[%s9211_s3 + $0x2080] sm:$0xff] }
 0x284   :  { %3318 = vmatpush.msrb.mxu0 %v581_v63  ;;  %3200 = vmatpush.msra.mxu2 %v556_v34  ;;  %v1421_v46 = vld [vmem:[%s9211_s3 + $0x2208] sm:$0xff] }
 0x285   :  { %3368 = vmatpush.msrb.mxu3 %v1277_v0  ;;  %3259 = vmatpush.msra.mxu1 %v1144_v2  ;;  %v833_v57 = vld [vmem:[%s9211_s3 + $0xfa8] sm:$0xff]  ;;  %v1360_v0 = vld [vmem:[%s9211_s3 + $0x2020] sm:$0xff] }
 0x286   :  { %3319 = vmatpush.msrb.mxu0 %v569_v4  ;;  %3201 = vmatpush.msra.mxu2 %v544_v5  ;;  %v1157_v48 = vld [vmem:[%s9211_s3 + $0x19c8] sm:$0xff] }
 0x287   :  { %3369 = vmatpush.msrb.mxu3 %v1265_v6  ;;  %3260 = vmatpush.msra.mxu1 %v1132_v8  ;;  %v1409_v50 = vld [vmem:[%s9211_s3 + $0x21a8] sm:$0xff]  ;;  %v1348_v6 = vld [vmem:[%s9211_s3 + $0x1fc0] sm:$0xff] }
 0x288   :  { %3320 = vmatpush.msrb.mxu0 %v557_v11  ;;  %3202 = vmatpush.msra.mxu2 %v532_v12  ;;  %v821_v54 = vld [vmem:[%s9211_s3 + $0xf48] sm:$0xff] }
 0x289   :  { %3370 = vmatpush.msrb.mxu3 %v1253_v13  ;;  %3261 = vmatpush.msra.mxu1 %v1120_v14  ;;  %v1145_v59 = vld [vmem:[%s9211_s3 + $0x1968] sm:$0xff]  ;;  %v1336_v13 = vld [vmem:[%s9211_s3 + $0x1f60] sm:$0xff]  ;;  %v906_v14 = vld [vmem:[%s9211_s3 + $0x11f0] sm:$0xff] }
 0x28a   :  { %3321 = vmatpush.msrb.mxu0 %v545_v17  ;;  %3203 = vmatmul.f32.vlgmr.msra.gmra.mxu2 %v5200_v27  ;;  %v1397_v60 = vld [vmem:[%s9211_s3 + $0x2148] sm:$0xff] }
 0x28b   :  { %3267 = vmatpush.msrb.mxu2 %v1480_v18  ;;  %3371 = vmatpush.msrb.mxu3 %v1241_v19  ;;  %v809_v62 = vld [vmem:[%s9211_s3 + $0xee8] sm:$0xff]  ;;  %v1324_v19 = vld [vmem:[%s9211_s3 + $0x1f00] sm:$0xff] }
 0x28c   :  { %3262 = vmatpush.msra.mxu1 %v1108_v20  ;;  %3322 = vmatpush.msrb.mxu0 %v533_v21  ;;  %v1133_v63 = vld [vmem:[%s9211_s3 + $0x1908] sm:$0xff]  ;;  %v894_v20 = vld [vmem:[%s9211_s3 + $0x1190] sm:$0xff] }
 0x28d   :  { %3263 = vmatmul.f32.vlgmr.msra.gmra.mxu1 %v5577_v56  ;;  %3268 = vmatpush.msrb.mxu2 %v1468_v22  ;;  %v1385_v34 = vld [vmem:[%s9211_s3 + $0x20e8] sm:$0xff] }
 0x28e   :  { %3323 = vmatmul.f32.vlgmr.msrb.gmra.mxu0 %v5200_v27  ;;  %3327 = vmatpush.msrb.mxu1 %v905_v23  ;;  %v797_v2 = vld [vmem:[%s9211_s3 + $0xe88] sm:$0xff]  ;;  %v1312_v23 = vld [vmem:[%s9211_s3 + $0x1ea0] sm:$0xff] }
 0x28f   :  { %3372 = vmatpush.msrb.mxu3 %v1229_v24  ;;  %3387 = vmatpush.msra.mxu0 %v1481_v26  ;;  %v1121_v4 = vld [vmem:[%s9211_s3 + $0x18a8] sm:$0xff]  ;;  %v882_v24 = vld [vmem:[%s9211_s3 + $0x1130] sm:$0xff] }
 0x290   :  { %3269 = vmatpush.msrb.mxu2 %v1456_v7  ;;  %3328 = vmatpush.msrb.mxu1 %v893_v28  ;;  %v1373_v5 = vld [vmem:[%s9211_s3 + $0x2088] sm:$0xff]  ;;  %v1300_v28 = vld [vmem:[%s9211_s3 + $0x1e40] sm:$0xff] }
 0x291   :  { %3373 = vmatpush.msrb.mxu3 %v1217_v29  ;;  %3388 = vmatpush.msra.mxu0 %v1469_v31  ;;  %v785_v8 = vld [vmem:[%s9211_s3 + $0xe28] sm:$0xff]  ;;  %v870_v29 = vld [vmem:[%s9211_s3 + $0x10d0] sm:$0xff] }
 0x292   :  { %3270 = vmatpush.msrb.mxu2 %v1444_v32  ;;  %3329 = vmatpush.msrb.mxu1 %v881_v10  ;;  %v1109_v11 = vld [vmem:[%s9211_s3 + $0x1848] sm:$0xff] }
 0x293   :  { %3374 = vmatpush.msrb.mxu3 %v1205_v33  ;;  %3389 = vmatpush.msra.mxu0 %v1457_v35  ;;  %v1361_v12 = vld [vmem:[%s9211_s3 + $0x2028] sm:$0xff]  ;;  %v858_v33 = vld [vmem:[%s9211_s3 + $0x1070] sm:$0xff] }
 0x294   :  { %3271 = vmatpush.msrb.mxu2 %v1432_v37  ;;  %3330 = vmatpush.msrb.mxu1 %v869_v25  ;;  %v773_v17 = vld [vmem:[%s9211_s3 + $0xdc8] sm:$0xff] }
 0x295   :  { %3375 = vmatpush.msrb.mxu3 %v1193_v38  ;;  %3390 = vmatpush.msra.mxu0 %v1445_v39  ;;  %v1349_v18 = vld [vmem:[%s9211_s3 + $0x1fc8] sm:$0xff]  ;;  %v522_v38 = vld [vmem:[%s9211_s3 + $0x5f0] sm:$0xff] }
 0x296   :  { %3272 = vmatpush.msrb.mxu2 %v1420_v40  ;;  %3331 = vmatpush.msrb.mxu1 %v857_v41  ;;  %v761_v21 = vld [vmem:[%s9211_s3 + $0xd68] sm:$0xff]  ;;  %v846_v39 = vld [vmem:[%s9211_s3 + $0x1010] sm:$0xff] }
 0x297   :  { %3376 = vmatpush.msrb.mxu3 %v1181_v42  ;;  %3391 = vmatpush.msra.mxu0 %v1433_v43  ;;  %v1337_v22 = vld [vmem:[%s9211_s3 + $0x1f68] sm:$0xff]  ;;  %v1098_v40 = vld [vmem:[%s9211_s3 + $0x17f0] sm:$0xff] }
 0x298   :  { %3273 = vmatpush.msrb.mxu2 %v1408_v44  ;;  %3332 = vmatpush.msrb.mxu1 %v845_v45  ;;  %v749_v26 = vld [vmem:[%s9211_s3 + $0xd08] sm:$0xff]  ;;  %v510_v42 = vld [vmem:[%s9211_s3 + $0x590] sm:$0xff] }
 0x299   :  { %3377 = vmatpush.msrb.mxu3 %v1169_v51  ;;  %3392 = vmatpush.msra.mxu0 %v1421_v46  ;;  %v1325_v7 = vld [vmem:[%s9211_s3 + $0x1f08] sm:$0xff]  ;;  %v834_v43 = vld [vmem:[%s9211_s3 + $0xfb0] sm:$0xff] }
 0x29a   :  { %3274 = vmatpush.msrb.mxu2 %v1396_v47  ;;  %3333 = vmatpush.msrb.mxu1 %v833_v57  ;;  %v737_v31 = vld [vmem:[%s9211_s3 + $0xca8] sm:$0xff]  ;;  %v1086_v44 = vld [vmem:[%s9211_s3 + $0x1790] sm:$0xff] }
 0x29b   :  { %3378 = vmatpush.msrb.mxu3 %v1157_v48  ;;  %3393 = vmatpush.msra.mxu0 %v1409_v50  ;;  %v1313_v32 = vld [vmem:[%s9211_s3 + $0x1ea8] sm:$0xff]  ;;  %v498_v51 = vld [vmem:[%s9211_s3 + $0x530] sm:$0xff] }
 0x29c   :  { %3275 = vmatpush.msrb.mxu2 %v1384_v53  ;;  %3334 = vmatpush.msrb.mxu1 %v821_v54  ;;  %v1097_v10 = vld [vmem:[%s9211_s3 + $0x17e8] sm:$0xff]  ;;  %v822_v46 = vld [vmem:[%s9211_s3 + $0xf50] sm:$0xff] }
 0x29d   :  { %3379 = vmatpush.msrb.mxu3 %v1145_v59  ;;  %3394 = vmatpush.msra.mxu0 %v1397_v60  ;;  %v725_v35 = vld [vmem:[%s9211_s3 + $0xc48] sm:$0xff]  ;;  %v1074_v47 = vld [vmem:[%s9211_s3 + $0x1730] sm:$0xff] }
 0x29e   :  { %3276 = vmatpush.msrb.mxu2 %v1372_v61  ;;  %3335 = vmatpush.msrb.mxu1 %v809_v62  ;;  %v1301_v37 = vld [vmem:[%s9211_s3 + $0x1e48] sm:$0xff]  ;;  %v486_v48 = vld [vmem:[%s9211_s3 + $0x4d0] sm:$0xff] }
 0x29f   :  { %3380 = vmatpush.msrb.mxu3 %v1133_v63  ;;  %3395 = vmatpush.msra.mxu0 %v1385_v34  ;;  %v1085_v25 = vld [vmem:[%s9211_s3 + $0x1788] sm:$0xff]  ;;  %v810_v50 = vld [vmem:[%s9211_s3 + $0xef0] sm:$0xff] }
 0x2a0   :  { %3277 = vmatpush.msrb.mxu2 %v1360_v0  ;;  %3336 = vmatpush.msrb.mxu1 %v797_v2  ;;  %v1073_v41 = vld [vmem:[%s9211_s3 + $0x1728] sm:$0xff]  ;;  %v1062_v53 = vld [vmem:[%s9211_s3 + $0x16d0] sm:$0xff] }
 0x2a1   :  { %3381 = vmatpush.msrb.mxu3 %v1121_v4  ;;  %3396 = vmatpush.msra.mxu0 %v1373_v5  ;;  %v1061_v45 = vld [vmem:[%s9211_s3 + $0x16c8] sm:$0xff]  ;;  %v474_v59 = vld [vmem:[%s9211_s3 + $0x470] sm:$0xff] }
 0x2a2   :  { %3278 = vmatpush.msrb.mxu2 %v1348_v6  ;;  %3337 = vmatpush.msrb.mxu1 %v785_v8  ;;  %v1049_v57 = vld [vmem:[%s9211_s3 + $0x1668] sm:$0xff]  ;;  %v798_v60 = vld [vmem:[%s9211_s3 + $0xe90] sm:$0xff] }
 0x2a3   :  { %3382 = vmatpush.msrb.mxu3 %v1109_v11  ;;  %3397 = vmatpush.msra.mxu0 %v1361_v12  ;;  %v1037_v54 = vld [vmem:[%s9211_s3 + $0x1608] sm:$0xff]  ;;  %v1050_v61 = vld [vmem:[%s9211_s3 + $0x1670] sm:$0xff] }
 0x2a4   :  { %3383 = vmatmul.f32.vlgmr.msrb.gmra.mxu3 %v5577_v56  ;;  %3279 = vmatpush.msrb.mxu2 %v1336_v13  ;;  %v1025_v62 = vld [vmem:[%s9211_s3 + $0x15a8] sm:$0xff]  ;;  %v462_v63 = vld [vmem:[%s9211_s3 + $0x410] sm:$0xff] }
 0x2a5   :  { %3447 = vmatpush.msra.mxu3 %v906_v14  ;;  %3338 = vmatpush.msrb.mxu1 %v773_v17  ;;  %v786_v34 = vld [vmem:[%s9211_s3 + $0xe30] sm:$0xff]  ;;  %v1013_v2 = vld [vmem:[%s9211_s3 + $0x1548] sm:$0xff] }
 0x2a6   :  { %3398 = vmatpush.msra.mxu0 %v1349_v18  ;;  %3280 = vmatpush.msrb.mxu2 %v1324_v19  ;;  %v1038_v0 = vld [vmem:[%s9211_s3 + $0x1610] sm:$0xff]  ;;  %v1001_v8 = vld [vmem:[%s9211_s3 + $0x14e8] sm:$0xff] }
 0x2a7   :  { %3448 = vmatpush.msra.mxu3 %v894_v20  ;;  %3339 = vmatpush.msrb.mxu1 %v761_v21  ;;  %v450_v4 = vld [vmem:[%s9211_s3 + $0x3b0] sm:$0xff]  ;;  %v989_v14 = vld [vmem:[%s9211_s3 + $0x1488] sm:$0xff] }
 0x2a8   :  { %3399 = vmatpush.msra.mxu0 %v1337_v22  ;;  %3281 = vmatpush.msrb.mxu2 %v1312_v23  ;;  %v774_v5 = vld [vmem:[%s9211_s3 + $0xdd0] sm:$0xff]  ;;  %v977_v20 = vld [vmem:[%s9211_s3 + $0x1428] sm:$0xff] }
 0x2a9   :  { %3449 = vmatpush.msra.mxu3 %v882_v24  ;;  %3340 = vmatpush.msrb.mxu1 %v749_v26  ;;  %v1026_v6 = vld [vmem:[%s9211_s3 + $0x15b0] sm:$0xff]  ;;  %v965_v24 = vld [vmem:[%s9211_s3 + $0x13c8] sm:$0xff] }
 0x2aa   :  { %3400 = vmatpush.msra.mxu0 %v1325_v7  ;;  %3282 = vmatpush.msrb.mxu2 %v1300_v28  ;;  %v438_v11 = vld [vmem:[%s9211_s3 + $0x350] sm:$0xff] }
 0x2ab   :  { %3450 = vmatpush.msra.mxu3 %v870_v29  ;;  %3341 = vmatpush.msrb.mxu1 %v737_v31  ;;  %v762_v12 = vld [vmem:[%s9211_s3 + $0xd70] sm:$0xff]  ;;  %v953_v29 = vld [vmem:[%s9211_s3 + $0x1368] sm:$0xff]  ;;  %v523_v31 = vld [vmem:[%s9211_s3 + $0x5f8] sm:$0xff] }
 0x2ac   :  { %3401 = vmatpush.msra.mxu0 %v1313_v32  ;;  %3283 = vmatmul.f32.vlgmr.msrb.gmra.mxu2 %v5725_v52  ;;  %v1014_v13 = vld [vmem:[%s9211_s3 + $0x1550] sm:$0xff] }
 0x2ad   :  { %3347 = vmatpush.msra.mxu2 %v1097_v10  ;;  %3451 = vmatpush.msra.mxu3 %v858_v33  ;;  %v426_v17 = vld [vmem:[%s9211_s3 + $0x2f0] sm:$0xff]  ;;  %v941_v33 = vld [vmem:[%s9211_s3 + $0x1308] sm:$0xff] }
 0x2ae   :  { %3342 = vmatpush.msrb.mxu1 %v725_v35  ;;  %3402 = vmatpush.msra.mxu0 %v1301_v37  ;;  %v750_v18 = vld [vmem:[%s9211_s3 + $0xd10] sm:$0xff]  ;;  %v511_v35 = vld [vmem:[%s9211_s3 + $0x598] sm:$0xff] }
 0x2af   :  { %3343 = vmatmul.f32.vlgmr.msrb.gmra.mxu1 %v5367_v30  ;;  %3348 = vmatpush.msra.mxu2 %v1085_v25  ;;  %v1002_v19 = vld [vmem:[%s9211_s3 + $0x14f0] sm:$0xff] }
 0x2b0   :  { %3403 = vmatmul.f32.vlgmr.msra.gmra.mxu0 %v5725_v52  ;;  %3407 = vmatpush.msra.mxu1 %v522_v38  ;;  %v414_v21 = vld [vmem:[%s9211_s3 + $0x290] sm:$0xff]  ;;  %v929_v38 = vld [vmem:[%s9211_s3 + $0x12a8] sm:$0xff] }
 0x2b1   :  { %3452 = vmatpush.msra.mxu3 %v846_v39  ;;  %3467 = vmatpush.msrb.mxu0 %v1098_v40  ;;  %v738_v22 = vld [vmem:[%s9211_s3 + $0xcb0] sm:$0xff]  ;;  %v499_v39 = vld [vmem:[%s9211_s3 + $0x538] sm:$0xff] }
 0x2b2   :  { %3349 = vmatpush.msra.mxu2 %v1073_v41  ;;  %3408 = vmatpush.msra.mxu1 %v510_v42  ;;  %v990_v23 = vld [vmem:[%s9211_s3 + $0x1490] sm:$0xff]  ;;  %v917_v42 = vld [vmem:[%s9211_s3 + $0x1248] sm:$0xff] }
 0x2b3   :  { %3453 = vmatpush.msra.mxu3 %v834_v43  ;;  %3468 = vmatpush.msrb.mxu0 %v1086_v44  ;;  %v402_v26 = vld [vmem:[%s9211_s3 + $0x230] sm:$0xff]  ;;  %v487_v43 = vld [vmem:[%s9211_s3 + $0x4d8] sm:$0xff] }
 0x2b4   :  { %3350 = vmatpush.msra.mxu2 %v1061_v45  ;;  %3409 = vmatpush.msra.mxu1 %v498_v51  ;;  %v726_v7 = vld [vmem:[%s9211_s3 + $0xc50] sm:$0xff] }
 0x2b5   :  { %3454 = vmatpush.msra.mxu3 %v822_v46  ;;  %3469 = vmatpush.msrb.mxu0 %v1074_v47  ;;  %v978_v28 = vld [vmem:[%s9211_s3 + $0x1430] sm:$0xff]  ;;  %v475_v46 = vld [vmem:[%s9211_s3 + $0x478] sm:$0xff] }
 0x2b6   :  { %3351 = vmatpush.msra.mxu2 %v1049_v57  ;;  %3410 = vmatpush.msra.mxu1 %v486_v48  ;;  %v390_v32 = vld [vmem:[%s9211_s3 + $0x1d0] sm:$0xff] }
 0x2b7   :  { %3455 = vmatpush.msra.mxu3 %v810_v50  ;;  %3470 = vmatpush.msrb.mxu0 %v1062_v53  ;;  %v966_v10 = vld [vmem:[%s9211_s3 + $0x13d0] sm:$0xff]  ;;  %v463_v53 = vld [vmem:[%s9211_s3 + $0x418] sm:$0xff] }
 0x2b8   :  { %3352 = vmatpush.msra.mxu2 %v1037_v54  ;;  %3411 = vmatpush.msra.mxu1 %v474_v59  ;;  %v378_v37 = vld [vmem:[%s9211_s3 + $0x170] sm:$0xff]  ;;  %v715_v54 = vld [vmem:[%s9211_s3 + $0xbf8] sm:$0xff] }
 0x2b9   :  { %3456 = vmatpush.msra.mxu3 %v798_v60  ;;  %3471 = vmatpush.msrb.mxu0 %v1050_v61  ;;  %v954_v25 = vld [vmem:[%s9211_s3 + $0x1370] sm:$0xff]  ;;  %v451_v61 = vld [vmem:[%s9211_s3 + $0x3b8] sm:$0xff] }
 0x2ba   :  { %3353 = vmatpush.msra.mxu2 %v1025_v62  ;;  %3412 = vmatpush.msra.mxu1 %v462_v63  ;;  %v366_v40 = vld [vmem:[%s9211_s3 + $0x110] sm:$0xff]  ;;  %v703_v62 = vld [vmem:[%s9211_s3 + $0xb98] sm:$0xff] }
 0x2bb   :  { %3457 = vmatpush.msra.mxu3 %v786_v34  ;;  %3472 = vmatpush.msrb.mxu0 %v1038_v0  ;;  %v942_v41 = vld [vmem:[%s9211_s3 + $0x1310] sm:$0xff]  ;;  %v439_v0 = vld [vmem:[%s9211_s3 + $0x358] sm:$0xff] }
 0x2bc   :  { %3354 = vmatpush.msra.mxu2 %v1013_v2  ;;  %3413 = vmatpush.msra.mxu1 %v450_v4  ;;  %v354_v44 = vld [vmem:[%s9211_s3 + $0xb0] sm:$0xff]  ;;  %v691_v2 = vld [vmem:[%s9211_s3 + $0xb38] sm:$0xff] }
 0x2bd   :  { %3458 = vmatpush.msra.mxu3 %v774_v5  ;;  %3473 = vmatpush.msrb.mxu0 %v1026_v6  ;;  %v930_v45 = vld [vmem:[%s9211_s3 + $0x12b0] sm:$0xff]  ;;  %v427_v6 = vld [vmem:[%s9211_s3 + $0x2f8] sm:$0xff] }
 0x2be   :  { %3355 = vmatpush.msra.mxu2 %v1001_v8  ;;  %3414 = vmatpush.msra.mxu1 %v438_v11  ;;  %v714_v51 = vld [vmem:[%s9211_s3 + $0xbf0] sm:$0xff]  ;;  %v679_v8 = vld [vmem:[%s9211_s3 + $0xad8] sm:$0xff] }
 0x2bf   :  { %3459 = vmatpush.msra.mxu3 %v762_v12  ;;  %3474 = vmatpush.msrb.mxu0 %v1014_v13  ;;  %v342_v47 = vld [vmem:[%s9211_s3 + $0x50] sm:$0xff]  ;;  %v415_v13 = vld [vmem:[%s9211_s3 + $0x298] sm:$0xff] }
 0x2c0   :  { %3356 = vmatpush.msra.mxu2 %v989_v14  ;;  %3415 = vmatpush.msra.mxu1 %v426_v17  ;;  %v918_v57 = vld [vmem:[%s9211_s3 + $0x1250] sm:$0xff]  ;;  %v667_v14 = vld [vmem:[%s9211_s3 + $0xa78] sm:$0xff] }
 0x2c1   :  { %3460 = vmatpush.msra.mxu3 %v750_v18  ;;  %3475 = vmatpush.msrb.mxu0 %v1002_v19  ;;  %v702_v48 = vld [vmem:[%s9211_s3 + $0xb90] sm:$0xff]  ;;  %v403_v19 = vld [vmem:[%s9211_s3 + $0x238] sm:$0xff] }
 0x2c2   :  { %3357 = vmatpush.msra.mxu2 %v977_v20  ;;  %3416 = vmatpush.msra.mxu1 %v414_v21  ;;  %v1290_v50 = vld [vmem:[%s9211_s3 + $0x1df0] sm:$0xff]  ;;  %v655_v20 = vld [vmem:[%s9211_s3 + $0xa18] sm:$0xff] }
 0x2c3   :  { %3461 = vmatpush.msra.mxu3 %v738_v22  ;;  %3476 = vmatpush.msrb.mxu0 %v990_v23  ;;  %v690_v59 = vld [vmem:[%s9211_s3 + $0xb30] sm:$0xff]  ;;  %v391_v23 = vld [vmem:[%s9211_s3 + $0x1d8] sm:$0xff] }
 0x2c4   :  { %3358 = vmatpush.msra.mxu2 %v965_v24  ;;  %3417 = vmatpush.msra.mxu1 %v402_v26  ;;  %v1278_v60 = vld [vmem:[%s9211_s3 + $0x1d90] sm:$0xff]  ;;  %v643_v24 = vld [vmem:[%s9211_s3 + $0x9b8] sm:$0xff] }
 0x2c5   :  { %3462 = vmatpush.msra.mxu3 %v726_v7  ;;  %3477 = vmatpush.msrb.mxu0 %v978_v28  ;;  %v678_v63 = vld [vmem:[%s9211_s3 + $0xad0] sm:$0xff]  ;;  %v379_v28 = vld [vmem:[%s9211_s3 + $0x178] sm:$0xff] }
 0x2c6   :  { %3463 = vmatmul.f32.vlgmr.msra.gmra.mxu3 %v5367_v30  ;;  %3359 = vmatpush.msra.mxu2 %v953_v29  ;;  %v1266_v34 = vld [vmem:[%s9211_s3 + $0x1d30] sm:$0xff]  ;;  %v631_v29 = vld [vmem:[%s9211_s3 + $0x958] sm:$0xff] }
 0x2c7   :  { %3527 = vmatpush.msrb.mxu3 %v523_v31  ;;  %3418 = vmatpush.msra.mxu1 %v390_v32  ;;  %v666_v4 = vld [vmem:[%s9211_s3 + $0xa70] sm:$0xff] }
 0x2c8   :  { %3478 = vmatpush.msrb.mxu0 %v966_v10  ;;  %3360 = vmatpush.msra.mxu2 %v941_v33  ;;  %v1254_v5 = vld [vmem:[%s9211_s3 + $0x1cd0] sm:$0xff]  ;;  %v367_v10 = vld [vmem:[%s9211_s3 + $0x118] sm:$0xff] }
 0x2c9   :  { %3528 = vmatpush.msrb.mxu3 %v511_v35  ;;  %3419 = vmatpush.msra.mxu1 %v378_v37  ;;  %v654_v11 = vld [vmem:[%s9211_s3 + $0xa10] sm:$0xff]  ;;  %v619_v33 = vld [vmem:[%s9211_s3 + $0x8f8] sm:$0xff] }
 0x2ca   :  { %3479 = vmatpush.msrb.mxu0 %v954_v25  ;;  %3361 = vmatpush.msra.mxu2 %v929_v38  ;;  %v1242_v12 = vld [vmem:[%s9211_s3 + $0x1c70] sm:$0xff]  ;;  %v355_v25 = vld [vmem:[%s9211_s3 + $0xb8] sm:$0xff] }
 0x2cb   :  { %3529 = vmatpush.msrb.mxu3 %v499_v39  ;;  %3420 = vmatpush.msra.mxu1 %v366_v40  ;;  %v642_v17 = vld [vmem:[%s9211_s3 + $0x9b0] sm:$0xff]  ;;  %v607_v38 = vld [vmem:[%s9211_s3 + $0x898] sm:$0xff] }
 0x2cc   :  { %3480 = vmatpush.msrb.mxu0 %v942_v41  ;;  %3362 = vmatpush.msra.mxu2 %v917_v42  ;;  %v1230_v18 = vld [vmem:[%s9211_s3 + $0x1c10] sm:$0xff]  ;;  %v343_v41 = vld [vmem:[%s9211_s3 + $0x58] sm:$0xff] }
 0x2cd   :  { %3530 = vmatpush.msrb.mxu3 %v487_v43  ;;  %3421 = vmatpush.msra.mxu1 %v354_v44  ;;  %v630_v21 = vld [vmem:[%s9211_s3 + $0x950] sm:$0xff]  ;;  %v595_v42 = vld [vmem:[%s9211_s3 + $0x838] sm:$0xff] }
 0x2ce   :  { %3481 = vmatpush.msrb.mxu0 %v930_v45  ;;  %3363 = vmatmul.f32.vlgmr.msra.gmra.mxu2 %v5422_v55  ;;  %v1218_v22 = vld [vmem:[%s9211_s3 + $0x1bb0] sm:$0xff]  ;;  %v1291_v44 = vld [vmem:[%s9211_s3 + $0x1df8] sm:$0xff] }
 0x2cf   :  { %3427 = vmatpush.msrb.mxu2 %v714_v51  ;;  %3531 = vmatpush.msrb.mxu3 %v475_v46  ;;  %v618_v26 = vld [vmem:[%s9211_s3 + $0x8f0] sm:$0xff]  ;;  %v583_v51 = vld [vmem:[%s9211_s3 + $0x7d8] sm:$0xff] }
 0x2d0   :  { %3422 = vmatpush.msra.mxu1 %v342_v47  ;;  %3482 = vmatpush.msrb.mxu0 %v918_v57  ;;  %v1206_v7 = vld [vmem:[%s9211_s3 + $0x1b50] sm:$0xff]  ;;  %v1279_v47 = vld [vmem:[%s9211_s3 + $0x1d98] sm:$0xff] }
 0x2d1   :  { %3423 = vmatmul.f32.vlgmr.msra.gmra.mxu1 %v5152_v3  ;;  %3428 = vmatpush.msrb.mxu2 %v702_v48  ;;  %v606_v31 = vld [vmem:[%s9211_s3 + $0x890] sm:$0xff]  ;;  %v571_v48 = vld [vmem:[%s9211_s3 + $0x778] sm:$0xff] }
 0x2d2   :  { %3483 = vmatmul.f32.vlgmr.msrb.gmra.mxu0 %v5422_v55  ;;  %3487 = vmatpush.msrb.mxu1 %v1290_v50  ;;  %v1194_v32 = vld [vmem:[%s9211_s3 + $0x1af0] sm:$0xff] }
 0x2d3   :  { %3532 = vmatpush.msrb.mxu3 %v463_v53  ;;  %3547 = vmatpush.msra.mxu0 %v715_v54  ;;  %v594_v35 = vld [vmem:[%s9211_s3 + $0x830] sm:$0xff]  ;;  %v559_v54 = vld [vmem:[%s9211_s3 + $0x718] sm:$0xff] }
 0x2d4   :  { %3429 = vmatpush.msrb.mxu2 %v690_v59  ;;  %3488 = vmatpush.msrb.mxu1 %v1278_v60  ;;  %v1182_v37 = vld [vmem:[%s9211_s3 + $0x1a90] sm:$0xff]  ;;  %v1255_v60 = vld [vmem:[%s9211_s3 + $0x1cd8] sm:$0xff] }
 0x2d5   :  { %3533 = vmatpush.msrb.mxu3 %v451_v61  ;;  %3548 = vmatpush.msra.mxu0 %v703_v62  ;;  %v582_v39 = vld [vmem:[%s9211_s3 + $0x7d0] sm:$0xff]  ;;  %v547_v62 = vld [vmem:[%s9211_s3 + $0x6b8] sm:$0xff] }
 0x2d6   :  { %3430 = vmatpush.msrb.mxu2 %v678_v63  ;;  %3489 = vmatpush.msrb.mxu1 %v1266_v34  ;;  %v1170_v40 = vld [vmem:[%s9211_s3 + $0x1a30] sm:$0xff]  ;;  %v1243_v34 = vld [vmem:[%s9211_s3 + $0x1c78] sm:$0xff] }
 0x2d7   :  { %3534 = vmatpush.msrb.mxu3 %v439_v0  ;;  %3549 = vmatpush.msra.mxu0 %v691_v2  ;;  %v570_v43 = vld [vmem:[%s9211_s3 + $0x770] sm:$0xff]  ;;  %v535_v2 = vld [vmem:[%s9211_s3 + $0x658] sm:$0xff] }
 0x2d8   :  { %3431 = vmatpush.msrb.mxu2 %v666_v4  ;;  %3490 = vmatpush.msrb.mxu1 %v1254_v5  ;;  %v1158_v45 = vld [vmem:[%s9211_s3 + $0x19d0] sm:$0xff]  ;;  %v907_v5 = vld [vmem:[%s9211_s3 + $0x11f8] sm:$0xff] }
 0x2d9   :  { %3535 = vmatpush.msrb.mxu3 %v427_v6  ;;  %3550 = vmatpush.msra.mxu0 %v679_v8  ;;  %v558_v46 = vld [vmem:[%s9211_s3 + $0x710] sm:$0xff]  ;;  %v1231_v6 = vld [vmem:[%s9211_s3 + $0x1c18] sm:$0xff] }
 0x2da   :  { %3432 = vmatpush.msrb.mxu2 %v654_v11  ;;  %3491 = vmatpush.msrb.mxu1 %v1242_v12  ;;  %v1146_v57 = vld [vmem:[%s9211_s3 + $0x1970] sm:$0xff]  ;;  %v1483_v8 = vld [vmem:[%s9211_s3 + $0x23f8] sm:$0xff] }
 0x2db   :  { %3536 = vmatpush.msrb.mxu3 %v415_v13  ;;  %3551 = vmatpush.msra.mxu0 %v667_v14  ;;  %v546_v50 = vld [vmem:[%s9211_s3 + $0x6b0] sm:$0xff]  ;;  %v895_v12 = vld [vmem:[%s9211_s3 + $0x1198] sm:$0xff] }
 0x2dc   :  { %3433 = vmatpush.msrb.mxu2 %v642_v17  ;;  %3492 = vmatpush.msrb.mxu1 %v1230_v18  ;;  %v1134_v53 = vld [vmem:[%s9211_s3 + $0x1910] sm:$0xff]  ;;  %v1219_v13 = vld [vmem:[%s9211_s3 + $0x1bb8] sm:$0xff] }
 0x2dd   :  { %3537 = vmatpush.msrb.mxu3 %v403_v19  ;;  %3552 = vmatpush.msra.mxu0 %v655_v20  ;;  %v534_v59 = vld [vmem:[%s9211_s3 + $0x650] sm:$0xff]  ;;  %v1471_v14 = vld [vmem:[%s9211_s3 + $0x2398] sm:$0xff] }
 0x2de   :  { %3434 = vmatpush.msrb.mxu2 %v630_v21  ;;  %3493 = vmatpush.msrb.mxu1 %v1218_v22  ;;  %v1122_v61 = vld [vmem:[%s9211_s3 + $0x18b0] sm:$0xff]  ;;  %v883_v18 = vld [vmem:[%s9211_s3 + $0x1138] sm:$0xff] }
 0x2df   :  { %3538 = vmatpush.msrb.mxu3 %v391_v23  ;;  %3553 = vmatpush.msra.mxu0 %v643_v24  ;;  %v1482_v63 = vld [vmem:[%s9211_s3 + $0x23f0] sm:$0xff]  ;;  %v1459_v19 = vld [vmem:[%s9211_s3 + $0x2338] sm:$0xff] }
 0x2e0   :  { %3435 = vmatpush.msrb.mxu2 %v618_v26  ;;  %3494 = vmatpush.msrb.mxu1 %v1206_v7  ;;  %v1110_v0 = vld [vmem:[%s9211_s3 + $0x1850] sm:$0xff]  ;;  %v871_v21 = vld [vmem:[%s9211_s3 + $0x10d8] sm:$0xff] }
 0x2e1   :  { %3539 = vmatpush.msrb.mxu3 %v379_v28  ;;  %3554 = vmatpush.msra.mxu0 %v631_v29  ;;  %v1470_v4 = vld [vmem:[%s9211_s3 + $0x2390] sm:$0xff]  ;;  %v1195_v22 = vld [vmem:[%s9211_s3 + $0x1af8] sm:$0xff] }
 0x2e2   :  { %3436 = vmatpush.msrb.mxu2 %v606_v31  ;;  %3495 = vmatpush.msrb.mxu1 %v1194_v32  ;;  %v1458_v11 = vld [vmem:[%s9211_s3 + $0x2330] sm:$0xff]  ;;  %v1447_v23 = vld [vmem:[%s9211_s3 + $0x22d8] sm:$0xff] }
 0x2e3   :  { %3540 = vmatpush.msrb.mxu3 %v367_v10  ;;  %3555 = vmatpush.msra.mxu0 %v619_v33  ;;  %v1446_v17 = vld [vmem:[%s9211_s3 + $0x22d0] sm:$0xff]  ;;  %v859_v26 = vld [vmem:[%s9211_s3 + $0x1078] sm:$0xff] }
 0x2e4   :  { %3437 = vmatpush.msrb.mxu2 %v594_v35  ;;  %3496 = vmatpush.msrb.mxu1 %v1182_v37  ;;  %v1434_v20 = vld [vmem:[%s9211_s3 + $0x2270] sm:$0xff]  ;;  %v1183_v7 = vld [vmem:[%s9211_s3 + $0x1a98] sm:$0xff] }
 0x2e5   :  { %3541 = vmatpush.msrb.mxu3 %v355_v25  ;;  %3556 = vmatpush.msra.mxu0 %v607_v38  ;;  %v1422_v24 = vld [vmem:[%s9211_s3 + $0x2210] sm:$0xff]  ;;  %v1435_v28 = vld [vmem:[%s9211_s3 + $0x2278] sm:$0xff] }
 0x2e6   :  { %3438 = vmatpush.msrb.mxu2 %v582_v39  ;;  %3497 = vmatpush.msrb.mxu1 %v1170_v40  ;;  %v1410_v29 = vld [vmem:[%s9211_s3 + $0x21b0] sm:$0xff]  ;;  %v847_v31 = vld [vmem:[%s9211_s3 + $0x1018] sm:$0xff] }
 0x2e7   :  { %3542 = vmatpush.msrb.mxu3 %v343_v41  ;;  %3557 = vmatpush.msra.mxu0 %v595_v42  ;;  %v1171_v32 = vld [vmem:[%s9211_s3 + $0x1a38] sm:$0xff]  ;;  %v1398_v33 = vld [vmem:[%s9211_s3 + $0x2150] sm:$0xff] }
 0x2e8   :  { %3543 = vmatmul.f32.vlgmr.msrb.gmra.mxu3 %v5152_v3  ;;  %3439 = vmatpush.msrb.mxu2 %v570_v43  ;;  %v1267_v3 = vld [vmem:[%s9211_s3 + $0x1d38] sm:$0xff]  ;;  %v1386_v38 = vld [vmem:[%s9211_s3 + $0x20f0] sm:$0xff] }
 0x2e9   :  { %3607 = vmatpush.msra.mxu3 %v1291_v44  ;;  %3498 = vmatpush.msrb.mxu1 %v1158_v45  ;;  %v1423_v10 = vld [vmem:[%s9211_s3 + $0x2218] sm:$0xff]  ;;  %v1374_v42 = vld [vmem:[%s9211_s3 + $0x2090] sm:$0xff] }
 0x2ea   :  { %3558 = vmatpush.msra.mxu0 %v583_v51  ;;  %3440 = vmatpush.msrb.mxu2 %v558_v46  ;;  %v835_v35 = vld [vmem:[%s9211_s3 + $0xfb8] sm:$0xff]  ;;  %v1362_v51 = vld [vmem:[%s9211_s3 + $0x2030] sm:$0xff] }
 0x2eb   :  { %3608 = vmatpush.msra.mxu3 %v1279_v47  ;;  %3499 = vmatpush.msrb.mxu1 %v1146_v57  ;;  %v1159_v37 = vld [vmem:[%s9211_s3 + $0x19d8] sm:$0xff] }
 0x2ec   :  { %3559 = vmatpush.msra.mxu0 %v571_v48  ;;  %3441 = vmatpush.msrb.mxu2 %v546_v50  ;;  %v1411_v25 = vld [vmem:[%s9211_s3 + $0x21b8] sm:$0xff]  ;;  %v8432_v48 = vpop.f32.mrf.mxu1  ;;  %v1350_v50 = vld [vmem:[%s9211_s3 + $0x1fd0] sm:$0xff] }
 0x2ed   :  { %3609 = vmatpush.msra.mxu3 %v1267_v3  ;;  %3500 = vmatpush.msrb.mxu1 %v1134_v53  ;;  %v823_v39 = vld [vmem:[%s9211_s3 + $0xf58] sm:$0xff] }
 0x2ee   :  { %3560 = vmatpush.msra.mxu0 %v559_v54  ;;  %3442 = vmatpush.msrb.mxu2 %v534_v59  ;;  %v1147_v40 = vld [vmem:[%s9211_s3 + $0x1978] sm:$0xff]  ;;  %v8446_v59 = vpop.f32.mrf.mxu2 }
 0x2ef   :  { %3610 = vmatpush.msra.mxu3 %v1255_v60  ;;  %3501 = vmatpush.msrb.mxu1 %v1122_v61  ;;  %v1399_v41 = vld [vmem:[%s9211_s3 + $0x2158] sm:$0xff]  ;;  %v1338_v60 = vld [vmem:[%s9211_s3 + $0x1f70] sm:$0xff] }
 0x2f0   :  { %3561 = vmatpush.msra.mxu0 %v547_v62  ;;  %3443 = vmatmul.f32.vlgmr.msrb.gmra.mxu2 %v5200_v27  ;;  %v811_v43 = vld [vmem:[%s9211_s3 + $0xef8] sm:$0xff] }
 0x2f1   :  { %3507 = vmatpush.msra.mxu2 %v1482_v63  ;;  %3611 = vmatpush.msra.mxu3 %v1243_v34  ;;  %v1135_v44 = vld [vmem:[%s9211_s3 + $0x1918] sm:$0xff]  ;;  %v1326_v34 = vld [vmem:[%s9211_s3 + $0x1f10] sm:$0xff] }
 0x2f2   :  { %3502 = vmatpush.msrb.mxu1 %v1110_v0  ;;  %3562 = vmatpush.msra.mxu0 %v535_v2  ;;  %v1387_v45 = vld [vmem:[%s9211_s3 + $0x20f8] sm:$0xff]  ;;  %v8463_v0 = vpop.f32.mrf.mxu3  ;;  %v1530_v2 = vld [vmem:[%s9214_s5 + $0x170] sm:$0xff] }
 0x2f3   :  { %3503 = vmatmul.f32.vlgmr.msrb.gmra.mxu1 %v5577_v56  ;;  %3508 = vmatpush.msra.mxu2 %v1470_v4  ;;  %v799_v46 = vld [vmem:[%s9211_s3 + $0xe98] sm:$0xff] }
 0x2f4   :  { %3563 = vmatmul.f32.vlgmr.msra.gmra.mxu0 %v5200_v27  ;;  %3567 = vmatpush.msra.mxu1 %v907_v5  ;;  %v1207_v27 = vld [vmem:[%s9211_s3 + $0x1b58] sm:$0xff] }
 0x2f5   :  { %3612 = vmatpush.msra.mxu3 %v1231_v6  ;;  %3627 = vmatpush.msrb.mxu0 %v1483_v8  ;;  %v1123_v47 = vld [vmem:[%s9211_s3 + $0x18b8] sm:$0xff]  ;;  %v1314_v6 = vld [vmem:[%s9211_s3 + $0x1eb0] sm:$0xff]  ;;  %v1529_v8 = vld [vmem:[%s9214_s5 + $0x168] sm:$0xff] }
 0x2f6   :  { %3509 = vmatpush.msra.mxu2 %v1458_v11  ;;  %3568 = vmatpush.msra.mxu1 %v895_v12  ;;  %v1375_v57 = vld [vmem:[%s9211_s3 + $0x2098] sm:$0xff]  ;;  %v8486_v12 = vpop.f32.mrf.mxu1 }
 0x2f7   :  { %3613 = vmatpush.msra.mxu3 %v1219_v13  ;;  %3628 = vmatpush.msrb.mxu0 %v1471_v14  ;;  %v787_v3 = vld [vmem:[%s9211_s3 + $0xe38] sm:$0xff]  ;;  %v1302_v14 = vld [vmem:[%s9211_s3 + $0x1e50] sm:$0xff] }
 0x2f8   :  { %3510 = vmatpush.msra.mxu2 %v1446_v17  ;;  %3569 = vmatpush.msra.mxu1 %v883_v18  ;;  %v1111_v53 = vld [vmem:[%s9211_s3 + $0x1858] sm:$0xff]  ;;  %v1528_v17 = vld [vmem:[%s9214_s5 + $0x160] sm:$0xff] }
 0x2f9   :  { %3614 = vmatpush.msra.mxu3 %v1207_v27  ;;  %3629 = vmatpush.msrb.mxu0 %v1459_v19  ;;  %v1363_v54 = vld [vmem:[%s9211_s3 + $0x2038] sm:$0xff]  ;;  %v8500_v27 = vpop.f32.mrf.mxu2 }
 0x2fa   :  { %3511 = vmatpush.msra.mxu2 %v1434_v20  ;;  %3570 = vmatpush.msra.mxu1 %v871_v21  ;;  %v1531_v61 = vld [vmem:[%s9214_s5 + $0x178] sm:$0xff] }
 0x2fb   :  { %3615 = vmatpush.msra.mxu3 %v1195_v22  ;;  %3630 = vmatpush.msrb.mxu0 %v1447_v23  ;;  %v775_v62 = vld [vmem:[%s9211_s3 + $0xdd8] sm:$0xff] }
 0x2fc   :  { %3512 = vmatpush.msra.mxu2 %v1422_v24  ;;  %3571 = vmatpush.msra.mxu1 %v859_v26  ;;  %v1351_v63 = vld [vmem:[%s9211_s3 + $0x1fd8] sm:$0xff]  ;;  %v8520_v24 = vld [vmem:[%s9213_s4] sm:$0xff] }
 0x2fd   :  { %3616 = vmatpush.msra.mxu3 %v1183_v7  ;;  %3631 = vmatpush.msrb.mxu0 %v1435_v28  ;;  %v763_v4 = vld [vmem:[%s9211_s3 + $0xd78] sm:$0xff]  ;;  %v2185_v26 = vperm.slane %v8520_v24, 2  ;;  %v8523_v7 = vpop.f32.mrf.mxu3 }
 0x2fe   :  { %3513 = vmatpush.msra.mxu2 %v1410_v29  ;;  %3572 = vmatpush.msra.mxu1 %v847_v31  ;;  %v1339_v5 = vld [vmem:[%s9211_s3 + $0x1f78] sm:$0xff] }
 0x2ff   :  { %3617 = vmatpush.msra.mxu3 %v1171_v32  ;;  %3632 = vmatpush.msrb.mxu0 %v1423_v10  ;;  %v751_v11 = vld [vmem:[%s9211_s3 + $0xd18] sm:$0xff]  ;;  %v1526_v32 = vld [vmem:[%s9214_s5 + $0x150] sm:$0xff] }
 0x300   :  { %3514 = vmatpush.msra.mxu2 %v1398_v33  ;;  %3573 = vmatpush.msra.mxu1 %v835_v35  ;;  %v1327_v13 = vld [vmem:[%s9211_s3 + $0x1f18] sm:$0xff]  ;;  %v8540_v33 = vpop.f32.mrf.mxu1 }
 0x301   :  { %3618 = vmatpush.msra.mxu3 %v1159_v37  ;;  %3633 = vmatpush.msrb.mxu0 %v1411_v25  ;;  %v739_v18 = vld [vmem:[%s9211_s3 + $0xcb8] sm:$0xff]  ;;  %v1498_v37 = vld [vmem:[%s9214_s5 + $0x70] sm:$0xff]  ;;  %v2465_v25 = vadd.f32 %v8432_v48, %v2185_v26 }
 0x302   :  { %3515 = vmatpush.msra.mxu2 %v1386_v38  ;;  %3574 = vmatpush.msra.mxu1 %v823_v39  ;;  %v1315_v19 = vld [vmem:[%s9211_s3 + $0x1eb8] sm:$0xff]  ;;  %v1525_v38 = vld [vmem:[%s9214_s5 + $0x148] sm:$0xff]  ;;  %v8557_v39 = vpop.f32.mrf.mxu2  ;;  %v1518_v26 = vld [vmem:[%s9214_s5 + $0x110] sm:$0xff] }
 0x303   :  { %3619 = vmatpush.msra.mxu3 %v1147_v40  ;;  %3634 = vmatpush.msrb.mxu0 %v1399_v41  ;;  %v1099_v20 = vld [vmem:[%s9211_s3 + $0x17f8] sm:$0xff]  ;;  %v2485_v41 = vadd.f32 %v8446_v59, %v2465_v25 }
 0x304   :  { %3516 = vmatpush.msra.mxu2 %v1374_v42  ;;  %3575 = vmatpush.msra.mxu1 %v811_v43  ;;  %v1527_v21 = vld [vmem:[%s9214_s5 + $0x158] sm:$0xff]  ;;  %v1524_v42 = vld [vmem:[%s9214_s5 + $0x140] sm:$0xff]  ;;  %v1545_v43 = vld [vmem:[%s9214_s5 + $0x1e8] sm:$0xff] }
 0x305   :  { %3620 = vmatpush.msra.mxu3 %v1135_v44  ;;  %3635 = vmatpush.msrb.mxu0 %v1387_v45  ;;  %v727_v22 = vld [vmem:[%s9211_s3 + $0xc58] sm:$0xff]  ;;  %v1496_v45 = vld [vmem:[%s9214_s5 + $0x60] sm:$0xff] }
 0x306   :  { %3517 = vmatpush.msra.mxu2 %v1362_v51  ;;  %3576 = vmatpush.msra.mxu1 %v799_v46  ;;  %v1303_v23 = vld [vmem:[%s9211_s3 + $0x1e58] sm:$0xff]  ;;  %v8578_v51 = vpop.f32.mrf.mxu3 }
 0x307   :  { %3621 = vmatpush.msra.mxu3 %v1123_v47  ;;  %3636 = vmatpush.msrb.mxu0 %v1375_v57  ;;  %v1087_v28 = vld [vmem:[%s9211_s3 + $0x1798] sm:$0xff]  ;;  %v1544_v47 = vld [vmem:[%s9214_s5 + $0x1e0] sm:$0xff] }
 0x308   :  { %3518 = vmatpush.msra.mxu2 %v1350_v50  ;;  %3577 = vmatpush.msra.mxu1 %v787_v3  ;;  %v1499_v29 = vld [vmem:[%s9214_s5 + $0x78] sm:$0xff]  ;;  %v2505_v50 = vadd.f32 %v8463_v0, %v2485_v41  ;;  %v8601_v59 = vpop.f32.mrf.mxu1 }
 0x309   :  { %3622 = vmatpush.msra.mxu3 %v1111_v53  ;;  %3637 = vmatpush.msrb.mxu0 %v1363_v54  ;;  %v1547_v10 = vld [vmem:[%s9214_s5 + $0x1f8] sm:$0xff]  ;;  %v1522_v53 = vld [vmem:[%s9214_s5 + $0x130] sm:$0xff] }
 0x30a   :  { %3623 = vmatmul.f32.vlgmr.msra.gmra.mxu3 %v5577_v56  ;;  %3519 = vmatpush.msra.mxu2 %v1338_v60  ;;  %v8478_v56 = vpop.f32.mrf.mxu0  ;;  %v1075_v35 = vld [vmem:[%s9211_s3 + $0x1738] sm:$0xff] }
 0x30b   :  { %3707 = vmatpush.msrb.mxu3 %v1531_v61  ;;  %3578 = vmatpush.msra.mxu1 %v775_v62  ;;  %v1063_v40 = vld [vmem:[%s9211_s3 + $0x16d8] sm:$0xff]  ;;  %v1494_v61 = vld [vmem:[%s9214_s5 + $0x50] sm:$0xff]  ;;  %v1521_v62 = vld [vmem:[%s9214_s5 + $0x128] sm:$0xff] }
 0x30c   :  { %3638 = vmatpush.msrb.mxu0 %v1351_v63  ;;  %3520 = vmatpush.msra.mxu2 %v1326_v34  ;;  %v1051_v44 = vld [vmem:[%s9211_s3 + $0x1678] sm:$0xff]  ;;  %v1542_v63 = vld [vmem:[%s9214_s5 + $0x1d0] sm:$0xff]  ;;  %v8615_v34 = vpop.f32.mrf.mxu2 }
 0x30d   :  { %3708 = vmatpush.msrb.mxu3 %v1530_v2  ;;  %3579 = vmatpush.msra.mxu1 %v763_v4  ;;  %v1523_v46 = vld [vmem:[%s9214_s5 + $0x138] sm:$0xff]  ;;  %v1493_v2 = vld [vmem:[%s9214_s5 + $0x48] sm:$0xff]  ;;  %v2186_v4 = vperm.slane %v8520_v24, 3 }
 0x30e   :  { %3639 = vmatpush.msrb.mxu0 %v1339_v5  ;;  %3521 = vmatpush.msra.mxu2 %v1314_v6  ;;  %v1039_v57 = vld [vmem:[%s9211_s3 + $0x1618] sm:$0xff]  ;;  %v2525_v5 = vadd.f32 %v8478_v56, %v2505_v50  ;;  %v1520_v6 = vld [vmem:[%s9214_s5 + $0x120] sm:$0xff] }
 0x30f   :  { %3709 = vmatpush.msrb.mxu3 %v1529_v8  ;;  %3580 = vmatpush.msra.mxu1 %v751_v11  ;;  %v1495_v48 = vld [vmem:[%s9214_s5 + $0x58] sm:$0xff]  ;;  %v1541_v8 = vld [vmem:[%s9214_s5 + $0x1c8] sm:$0xff]  ;;  %v1492_v56 = vld [vmem:[%s9214_s5 + $0x40] sm:$0xff] }
 0x310   :  { %3640 = vmatpush.msrb.mxu0 %v1327_v13  ;;  %3522 = vmatpush.msra.mxu2 %v1302_v14  ;;  %v1543_v54 = vld [vmem:[%s9214_s5 + $0x1d8] sm:$0xff]  ;;  %v8637_v13 = vpop.f32.mrf.mxu3 }
 0x311   :  { %3710 = vmatpush.msrb.mxu3 %v1528_v17  ;;  %3581 = vmatpush.msra.mxu1 %v739_v18  ;;  %v1027_v60 = vld [vmem:[%s9211_s3 + $0x15b8] sm:$0xff]  ;;  %v1540_v17 = vld [vmem:[%s9214_s5 + $0x1c0] sm:$0xff]  ;;  %v2183_v18 = vperm.slane %v8520_v24, 0 }
 0x312   :  { %3641 = vmatpush.msrb.mxu0 %v1315_v19  ;;  %3523 = vmatmul.f32.vlgmr.msra.gmra.mxu2 %v5725_v52  ;;  %v8532_v31 = vpop.f32.mrf.mxu0  ;;  %v1015_v0 = vld [vmem:[%s9211_s3 + $0x1558] sm:$0xff] }
 0x313   :  { %3587 = vmatpush.msrb.mxu2 %v1099_v20  ;;  %3711 = vmatpush.msrb.mxu3 %v1527_v21  ;;  %v1003_v11 = vld [vmem:[%s9211_s3 + $0x14f8] sm:$0xff]  ;;  %v2585_v21 = vadd.f32 %v8523_v7, %v2186_v4  ;;  %v1490_v7 = vld [vmem:[%s9214_s5 + $0x30] sm:$0xff]  ;;  %v2225_v25 = vadd.f32 %v6250_v58, %v2183_v18  ;;  %v1516_v58 = vld [vmem:[%s9214_s5 + $0x100] sm:$0xff] }
 0x314   :  { %3582 = vmatpush.msra.mxu1 %v727_v22  ;;  %3642 = vmatpush.msrb.mxu0 %v1303_v23  ;;  %v1519_v14 = vld [vmem:[%s9214_s5 + $0x118] sm:$0xff]  ;;  %v2545_v22 = vadd.f32 %v8486_v12, %v2525_v5  ;;  %v1533_v5 = vld [vmem:[%s9214_s5 + $0x188] sm:$0xff]  ;;  %v1514_v18 = vld [vmem:[%s9214_s5 + $0xf0] sm:$0xff] }
 0x315   :  { %3583 = vmatmul.f32.vlgmr.msra.gmra.mxu1 %v5367_v30  ;;  %3588 = vmatpush.msrb.mxu2 %v1087_v28  ;;  %v1546_v30 = vld [vmem:[%s9214_s5 + $0x1f0] sm:$0xff]  ;;  %v991_v19 = vld [vmem:[%s9211_s3 + $0x1498] sm:$0xff] }
 0x316   :  { %3643 = vmatmul.f32.vlgmr.msrb.gmra.mxu0 %v5725_v52  ;;  %3667 = vmatpush.msrb.mxu1 %v1499_v29  ;;  %v1497_v52 = vld [vmem:[%s9214_s5 + $0x68] sm:$0xff]  ;;  %v1491_v20 = vld [vmem:[%s9214_s5 + $0x38] sm:$0xff]  ;;  %v8662_v29 = vpop.f32.mrf.mxu1 }
 0x317   :  { %3712 = vmatpush.msrb.mxu3 %v1526_v32  ;;  %3727 = vmatpush.msra.mxu0 %v1547_v10  ;;  %v1539_v28 = vld [vmem:[%s9214_s5 + $0x1b8] sm:$0xff]  ;;  %v2605_v32 = vadd.f32 %v8532_v31, %v2585_v21  ;;  %v2565_v10 = vadd.f32 %v8500_v27, %v2545_v22  ;;  %v1489_v31 = vld [vmem:[%s9214_s5 + $0x28] sm:$0xff] }
 0x318   :  { %3589 = vmatpush.msrb.mxu2 %v1075_v35  ;;  %3668 = vmatpush.msrb.mxu1 %v1498_v37  ;;  %v979_v12 = vld [vmem:[%s9211_s3 + $0x1438] sm:$0xff]  ;;  %v1517_v35 = vld [vmem:[%s9214_s5 + $0x108] sm:$0xff]  ;;  %v1538_v37 = vld [vmem:[%s9214_s5 + $0x1b0] sm:$0xff] }
 0x319   :  { %3713 = vmatpush.msrb.mxu3 %v1525_v38  ;;  %3728 = vmatpush.msra.mxu0 %v1546_v30  ;;  %v8679_v38 = vpop.f32.mrf.mxu2  ;;  %v967_v27 = vld [vmem:[%s9211_s3 + $0x13d8] sm:$0xff]  ;;  %v2625_v30 = vadd.f32 %v8540_v33, %v2605_v32 }
 0x31a   :  { %3590 = vmatpush.msrb.mxu2 %v1063_v40  ;;  %3669 = vmatpush.msrb.mxu1 %v1497_v52  ;;  %v8593_v3 = vpop.f32.mrf.mxu0  ;;  %v1537_v40 = vld [vmem:[%s9214_s5 + $0x1a8] sm:$0xff]  ;;  %v2245_v52 = vadd.f32 %v6465_v15, %v2225_v25  ;;  %v955_v41 = vld [vmem:[%s9211_s3 + $0x1378] sm:$0xff]  ;;  %v1488_v15 = vld [vmem:[%s9214_s5 + $0x20] sm:$0xff] }
 0x31b   :  { %3714 = vmatpush.msrb.mxu3 %v1524_v42  ;;  %3729 = vmatpush.msra.mxu0 %v1545_v43  ;;  %v3649_v42 = vmax.f32 %v2565_v10, 0.0  ;;  %v2645_v33 = vadd.f32 %v8557_v39, %v2625_v30  ;;  %v8699_v43 = vpop.f32.mrf.mxu3  ;;  %v1536_v39 = vld [vmem:[%s9214_s5 + $0x1a0] sm:$0xff]  ;;  %v1563_v21 = vld [vmem:[%s9214_s5 + $0x278] sm:$0xff]  ;;  %v1589_v10 = vld [vmem:[%s9214_s5 + $0x348] sm:$0xff] }
 0x31c   :  { %3591 = vmatpush.msrb.mxu2 %v1051_v44  ;;  %3670 = vmatpush.msrb.mxu1 %v1496_v45  ;;  %v1595_v44 = vld [vmem:[%s9214_s5 + $0x378] sm:$0xff]  ;;  %v2265_v45 = vadd.f32 %v6078_v49, %v2245_v52  ;;  %v1561_v25 = vld [vmem:[%s9214_s5 + $0x268] sm:$0xff]  ;;  %v1588_v30 = vld [vmem:[%s9214_s5 + $0x340] sm:$0xff] }
 0x31d   :  { %3715 = vmatpush.msrb.mxu3 %v1523_v46  ;;  %3730 = vmatpush.msra.mxu0 %v1544_v47  ;;  %v943_v46 = vld [vmem:[%s9211_s3 + $0x1318] sm:$0xff]  ;;  %v1560_v52 = vld [vmem:[%s9214_s5 + $0x260] sm:$0xff] }
 0x31e   :  { %3592 = vmatpush.msrb.mxu2 %v1039_v57  ;;  %3671 = vmatpush.msrb.mxu1 %v1495_v48  ;;  %v1594_v57 = vld [vmem:[%s9214_s5 + $0x370] sm:$0xff]  ;;  %v1487_v49 = vld [vmem:[%s9214_s5 + $0x18] sm:$0xff]  ;;  %v2285_v48 = vadd.f32 %v6111_v1, %v2265_v45  ;;  %v8723_v50 = vpop.f32.mrf.mxu1  ;;  %v1593_v1 = vld [vmem:[%s9214_s5 + $0x368] sm:$0xff]  ;;  %v2187_v45 = vperm.slane %v8520_v24, 4 }
 0x31f   :  { %3716 = vmatpush.msrb.mxu3 %v1522_v53  ;;  %3731 = vmatpush.msra.mxu0 %v1543_v54  ;;  %v1535_v53 = vld [vmem:[%s9214_s5 + $0x198] sm:$0xff] }
 0x320   :  { %3593 = vmatpush.msrb.mxu2 %v1027_v60  ;;  %3672 = vmatpush.msrb.mxu1 %v1494_v61  ;;  %v931_v54 = vld [vmem:[%s9211_s3 + $0x12b8] sm:$0xff]  ;;  %v2665_v60 = vadd.f32 %v8578_v51, %v2645_v33  ;;  %v1486_v61 = vld [vmem:[%s9214_s5 + $0x10] sm:$0xff]  ;;  %v1608_v33 = vld [vmem:[%s9214_s5 + $0x3e0] sm:$0xff] }
 0x321   :  { %3717 = vmatpush.msrb.mxu3 %v1521_v62  ;;  %3732 = vmatpush.msra.mxu0 %v1542_v63  ;;  %v2305_v62 = vadd.f32 %v6304_v16, %v2285_v48  ;;  %v8739_v63 = vpop.f32.mrf.mxu2  ;;  %v1534_v51 = vld [vmem:[%s9214_s5 + $0x190] sm:$0xff]  ;;  %v1485_v16 = vld [vmem:[%s9214_s5 + $0x8] sm:$0xff] }
 0x322   :  { %3594 = vmatpush.msrb.mxu2 %v1015_v0  ;;  %3673 = vmatpush.msrb.mxu1 %v1493_v2  ;;  %v8654_v23 = vpop.f32.mrf.mxu0  ;;  %v919_v0 = vld [vmem:[%s9211_s3 + $0x1258] sm:$0xff]  ;;  %v1592_v2 = vld [vmem:[%s9214_s5 + $0x360] sm:$0xff]  ;;  %v1509_v48 = vld [vmem:[%s9214_s5 + $0xc8] sm:$0xff] }
 0x323   :  { %3718 = vmatpush.msrb.mxu3 %v1520_v6  ;;  %3733 = vmatpush.msra.mxu0 %v1541_v8  ;;  %v2325_v4 = vadd.f32 %v6519_v36, %v2305_v62  ;;  %v2685_v6 = vadd.f32 %v8593_v3, %v2665_v60  ;;  %v8758_v8 = vpop.f32.mrf.mxu3  ;;  %v1591_v36 = vld [vmem:[%s9214_s5 + $0x358] sm:$0xff]  ;;  %v1532_v3 = vld [vmem:[%s9214_s5 + $0x180] sm:$0xff]  ;;  %v1585_v60 = vld [vmem:[%s9214_s5 + $0x328] sm:$0xff] }
 0x324   :  { %3595 = vmatpush.msrb.mxu2 %v1003_v11  ;;  %3674 = vmatpush.msrb.mxu1 %v1492_v56  ;;  %v1515_v11 = vld [vmem:[%s9214_s5 + $0xf8] sm:$0xff]  ;;  %v1484_v56 = vld [vmem:[%s9214_s5] sm:$0xff] }
 0x325   :  { %3719 = vmatpush.msrb.mxu3 %v1519_v14  ;;  %3734 = vmatpush.msra.mxu0 %v1540_v17  ;;  %v2189_v17 = vperm.slane %v8520_v24, 6  ;;  %v3650_v22 = vmax.f32 %v2685_v6, 0.0  ;;  %v1508_v62 = vld [vmem:[%s9214_s5 + $0xc0] sm:$0xff]  ;;  %v1507_v6 = vld [vmem:[%s9214_s5 + $0xb8] sm:$0xff] }
 0x326   :  { %3596 = vmatpush.msrb.mxu2 %v991_v19  ;;  %3675 = vmatpush.msrb.mxu1 %v1491_v20  ;;  %v3647_v19 = vmax.f32 %v2325_v4, 0.0  ;;  %v2944_v20 = vpop.f32.mrf.mxu1  ;;  %v1584_v4 = vld [vmem:[%s9214_s5 + $0x320] sm:$0xff] }
 0x327   :  { %3720 = vmatpush.msrb.mxu3 %v1518_v26  ;;  %3735 = vmatpush.msra.mxu0 %v1539_v28  ;;  %v1590_v26 = vld [vmem:[%s9214_s5 + $0x350] sm:$0xff]  ;;  %v2945_v32 = vadd.f32 %v2944_v20, %v2189_v17 }
 0x328   :  { %3597 = vmatpush.msrb.mxu2 %v979_v12  ;;  %3676 = vmatpush.msrb.mxu1 %v1490_v7  ;;  %v1513_v12 = vld [vmem:[%s9214_s5 + $0xe8] sm:$0xff]  ;;  %v1562_v7 = vld [vmem:[%s9214_s5 + $0x270] sm:$0xff] }
 0x329   :  { %3721 = vmatpush.msrb.mxu3 %v1517_v35  ;;  %3736 = vmatpush.msra.mxu0 %v1538_v37  ;;  %v2964_v28 = vpop.f32.mrf.mxu2  ;;  %v1610_v35 = vld [vmem:[%s9214_s5 + $0x3f0] sm:$0xff]  ;;  %v1512_v37 = vld [vmem:[%s9214_s5 + $0xe0] sm:$0xff] }
 0x32a   :  { %3598 = vmatpush.msrb.mxu2 %v967_v27  ;;  %3677 = vmatpush.msrb.mxu1 %v1489_v31  ;;  %v8714_v47 = vpop.f32.mrf.mxu0  ;;  %v2965_v31 = vadd.f32 %v2964_v28, %v2945_v32  ;;  %v1554_v28 = vld [vmem:[%s9214_s5 + $0x230] sm:$0xff] }
 0x32b   :  { %3722 = vmatpush.msrb.mxu3 %v1516_v58  ;;  %3737 = vmatpush.msra.mxu0 %v1537_v40  ;;  %v2984_v27 = vpop.f32.mrf.mxu3  ;;  %v1609_v58 = vld [vmem:[%s9214_s5 + $0x3e8] sm:$0xff]  ;;  %v1511_v40 = vld [vmem:[%s9214_s5 + $0xd8] sm:$0xff] }
 0x32c   :  { %3723 = vmatmul.f32.vlgmr.msrb.gmra.mxu3 %v3649_v42  ;;  %3599 = vmatpush.msrb.mxu2 %v955_v41  ;;  %v1587_v42 = vld [vmem:[%s9214_s5 + $0x338] sm:$0xff] }
 0x32d   :  { %3787 = vmatpush.msra.mxu3 %v1595_v44  ;;  %3678 = vmatpush.msrb.mxu1 %v1488_v15  ;;  %v1510_v44 = vld [vmem:[%s9214_s5 + $0xd0] sm:$0xff]  ;;  %v1559_v15 = vld [vmem:[%s9214_s5 + $0x258] sm:$0xff] }
 0x32e   :  { %3738 = vmatpush.msra.mxu0 %v1536_v39  ;;  %3600 = vmatpush.msrb.mxu2 %v943_v46  ;;  %v3024_v39 = vpop.f32.mrf.mxu1  ;;  %v2985_v46 = vadd.f32 %v2984_v27, %v2965_v31  ;;  %v1580_v27 = vld [vmem:[%s9214_s5 + $0x300] sm:$0xff]  ;;  %v1601_v31 = vld [vmem:[%s9214_s5 + $0x3a8] sm:$0xff] }
 0x32f   :  { %3788 = vmatpush.msra.mxu3 %v1594_v57  ;;  %3679 = vmatpush.msrb.mxu1 %v1487_v49  ;;  %v1586_v57 = vld [vmem:[%s9214_s5 + $0x330] sm:$0xff]  ;;  %v1607_v49 = vld [vmem:[%s9214_s5 + $0x3d8] sm:$0xff] }
 0x330   :  { %3739 = vmatpush.msra.mxu0 %v1535_v53  ;;  %3601 = vmatpush.msrb.mxu2 %v931_v54  ;;  %v1558_v53 = vld [vmem:[%s9214_s5 + $0x250] sm:$0xff] }
 0x331   :  { %3789 = vmatpush.msra.mxu3 %v1593_v1  ;;  %3680 = vmatpush.msrb.mxu1 %v1486_v61  ;;  %v3044_v54 = vpop.f32.mrf.mxu2  ;;  %v1606_v1 = vld [vmem:[%s9214_s5 + $0x3d0] sm:$0xff]  ;;  %v2190_v61 = vperm.slane %v8520_v24, 7 }
 0x332   :  { %3740 = vmatpush.msra.mxu0 %v1534_v51  ;;  %3602 = vmatpush.msrb.mxu2 %v919_v0  ;;  %v8772_v14 = vpop.f32.mrf.mxu0  ;;  %v1557_v51 = vld [vmem:[%s9214_s5 + $0x248] sm:$0xff]  ;;  %v2705_v0 = vadd.f32 %v8601_v59, %v2187_v45  ;;  %v1556_v59 = vld [vmem:[%s9214_s5 + $0x240] sm:$0xff] }
 0x333   :  { %3790 = vmatpush.msra.mxu3 %v1592_v2  ;;  %3681 = vmatpush.msrb.mxu1 %v1485_v16  ;;  %v3064_v2 = vpop.f32.mrf.mxu3 }
 0x334   :  { %3741 = vmatpush.msra.mxu0 %v1533_v5  ;;  %3603 = vmatmul.f32.vlgmr.msrb.gmra.mxu2 %v5422_v55  ;;  %v1611_v55 = vld [vmem:[%s9214_s5 + $0x3f8] sm:$0xff]  ;;  %v1605_v5 = vld [vmem:[%s9214_s5 + $0x3c8] sm:$0xff]  ;;  %v3065_v17 = vadd.f32 %v3064_v2, %v2190_v61  ;;  %v3648_v61 = vmax.f32 %v6600_v9, 0.0  ;;  %v1578_v9 = vld [vmem:[%s9214_s5 + $0x2f0] sm:$0xff] }
 0x335   :  { %3687 = vmatpush.msra.mxu2 %v1515_v11  ;;  %3791 = vmatpush.msra.mxu3 %v1591_v36  ;;  %v2725_v11 = vadd.f32 %v8615_v34, %v2705_v0  ;;  %v1555_v34 = vld [vmem:[%s9214_s5 + $0x238] sm:$0xff] }
 0x336   :  { %3682 = vmatpush.msrb.mxu1 %v1484_v56  ;;  %3742 = vmatpush.msra.mxu0 %v1532_v3  ;;  %v1583_v56 = vld [vmem:[%s9214_s5 + $0x318] sm:$0xff]  ;;  %v1604_v3 = vld [vmem:[%s9214_s5 + $0x3c0] sm:$0xff] }
 0x337   :  { %3683 = vmatmul.f32.vlgmr.msrb.gmra.mxu1 %v3647_v19  ;;  %3688 = vmatpush.msra.mxu2 %v1514_v18  ;;  %v1506_v18 = vld [vmem:[%s9214_s5 + $0xb0] sm:$0xff]  ;;  %v3104_v19 = vpop.f32.mrf.mxu1 }
 0x338   :  { %3743 = vmatmul.f32.vlgmr.msra.gmra.mxu0 %v3650_v22  ;;  %3747 = vmatpush.msra.mxu1 %v1563_v21  ;;  %v1582_v21 = vld [vmem:[%s9214_s5 + $0x310] sm:$0xff]  ;;  %v1603_v22 = vld [vmem:[%s9214_s5 + $0x3b8] sm:$0xff] }
 0x339   :  { %3792 = vmatpush.msra.mxu3 %v1590_v26  ;;  %3807 = vmatpush.msrb.mxu0 %v1611_v55  ;;  %v1505_v55 = vld [vmem:[%s9214_s5 + $0xa8] sm:$0xff]  ;;  %v3124_v32 = vpop.f32.mrf.mxu2 }
 0x33a   :  { %3689 = vmatpush.msra.mxu2 %v1513_v12  ;;  %3748 = vmatpush.msra.mxu1 %v1562_v7  ;;  %v3004_v41 = vpop.f32.mrf.mxu0  ;;  %v2745_v12 = vadd.f32 %v8637_v13, %v2725_v11  ;;  %v1553_v13 = vld [vmem:[%s9214_s5 + $0x228] sm:$0xff] }
 0x33b   :  { %3793 = vmatpush.msra.mxu3 %v1589_v10  ;;  %3808 = vmatpush.msrb.mxu0 %v1610_v35  ;;  %v3005_v16 = vadd.f32 %v3004_v41, %v2985_v46  ;;  %v1581_v10 = vld [vmem:[%s9214_s5 + $0x308] sm:$0xff]  ;;  %v1602_v35 = vld [vmem:[%s9214_s5 + $0x3b0] sm:$0xff]  ;;  %v1552_v41 = vld [vmem:[%s9214_s5 + $0x220] sm:$0xff] }
 0x33c   :  { %3690 = vmatpush.msra.mxu2 %v1512_v37  ;;  %3749 = vmatpush.msra.mxu1 %v1561_v25  ;;  %v1504_v25 = vld [vmem:[%s9214_s5 + $0xa0] sm:$0xff]  ;;  %v8983_v11 = vld [vmem:[%s9213_s4 + $0x8] sm:$0xf] }
 0x33d   :  { %3794 = vmatpush.msra.mxu3 %v1588_v30  ;;  %3809 = vmatpush.msrb.mxu0 %v1609_v58  ;;  %v3025_v20 = vadd.f32 %v3024_v39, %v3005_v16  ;;  %v1503_v58 = vld [vmem:[%s9214_s5 + $0x98] sm:$0xff]  ;;  %v1501_v39 = vld [vmem:[%s9214_s5 + $0x88] sm:$0xff] }
 0x33e   :  { %3691 = vmatpush.msra.mxu2 %v1511_v40  ;;  %3750 = vmatpush.msra.mxu1 %v1560_v52  ;;  %v2765_v40 = vadd.f32 %v8654_v23, %v2745_v12  ;;  %v1551_v23 = vld [vmem:[%s9214_s5 + $0x218] sm:$0xff]  ;;  %v1621_v12 = vld [vmem:[%s9214_s5 + $0x448] sm:$0xff] }
 0x33f   :  { %3795 = vmatpush.msra.mxu3 %v1587_v42  ;;  %3810 = vmatpush.msrb.mxu0 %v1608_v33  ;;  %v3045_v7 = vadd.f32 %v3044_v54, %v3025_v20  ;;  %v1600_v42 = vld [vmem:[%s9214_s5 + $0x3a0] sm:$0xff]  ;;  %v1502_v33 = vld [vmem:[%s9214_s5 + $0x90] sm:$0xff]  ;;  %v1627_v16 = vld [vmem:[%s9214_s5 + $0x478] sm:$0xff] }
 0x340   :  { %3692 = vmatpush.msra.mxu2 %v1510_v44  ;;  %3751 = vmatpush.msra.mxu1 %v1559_v15  ;;  %v3144_v44 = vpop.f32.mrf.mxu3  ;;  %v1599_v15 = vld [vmem:[%s9214_s5 + $0x398] sm:$0xff]  ;;  %v2785_v46 = vadd.f32 %v8662_v29, %v2765_v40  ;;  %v1549_v29 = vld [vmem:[%s9214_s5 + $0x208] sm:$0xff]  ;;  %v1618_v40 = vld [vmem:[%s9214_s5 + $0x430] sm:$0xff] }
 0x341   :  { %3796 = vmatpush.msra.mxu3 %v1586_v57  ;;  %3811 = vmatpush.msrb.mxu0 %v1607_v49  ;;  %v3653_v52 = vmax.f32 %v3045_v7, 0.0  ;;  %v1550_v57 = vld [vmem:[%s9214_s5 + $0x210] sm:$0xff]  ;;  %v1573_v20 = vld [vmem:[%s9214_s5 + $0x2c8] sm:$0xff] }
 0x342   :  { %3693 = vmatpush.msra.mxu2 %v1509_v48  ;;  %3752 = vmatpush.msra.mxu1 %v1558_v53  ;;  %v3084_v36 = vpop.f32.mrf.mxu0  ;;  %v1598_v49 = vld [vmem:[%s9214_s5 + $0x390] sm:$0xff]  ;;  %v1500_v48 = vld [vmem:[%s9214_s5 + $0x80] sm:$0xff]  ;;  %v2805_v53 = vadd.f32 %v8679_v38, %v2785_v46  ;;  %v1579_v38 = vld [vmem:[%s9214_s5 + $0x2f8] sm:$0xff] }
 0x343   :  { %3797 = vmatpush.msra.mxu3 %v1585_v60  ;;  %3812 = vmatpush.msrb.mxu0 %v1606_v1  ;;  %v3085_v26 = vadd.f32 %v3084_v36, %v3065_v17  ;;  %v1597_v60 = vld [vmem:[%s9214_s5 + $0x388] sm:$0xff]  ;;  %v1575_v36 = vld [vmem:[%s9214_s5 + $0x2d8] sm:$0xff]  ;;  %v1574_v17 = vld [vmem:[%s9214_s5 + $0x2d0] sm:$0xff] }
 0x344   :  { %3694 = vmatpush.msra.mxu2 %v1508_v62  ;;  %3753 = vmatpush.msra.mxu1 %v1557_v51  ;;  %v1548_v62 = vld [vmem:[%s9214_s5 + $0x200] sm:$0xff]  ;;  %v3651_v0 = vmax.f32 %v2805_v53, 0.0  ;;  %v1615_v46 = vld [vmem:[%s9214_s5 + $0x418] sm:$0xff]  ;;  %v1565_v53 = vld [vmem:[%s9214_s5 + $0x288] sm:$0xff] }
 0x345   :  { %3798 = vmatpush.msra.mxu3 %v1584_v4  ;;  %3813 = vmatpush.msrb.mxu0 %v1605_v5  ;;  %v3105_v37 = vadd.f32 %v3104_v19, %v3085_v26  ;;  %v1596_v51 = vld [vmem:[%s9214_s5 + $0x380] sm:$0xff]  ;;  %v1577_v4 = vld [vmem:[%s9214_s5 + $0x2e8] sm:$0xff]  ;;  %v1626_v5 = vld [vmem:[%s9214_s5 + $0x470] sm:$0xff]  ;;  %v3184_v19 = vpop.f32.mrf.mxu1 }
 0x346   :  { %3695 = vmatpush.msra.mxu2 %v1507_v6  ;;  %3754 = vmatpush.msra.mxu1 %v1556_v59  ;;  %v1576_v6 = vld [vmem:[%s9214_s5 + $0x2e0] sm:$0xff]  ;;  %v1625_v59 = vld [vmem:[%s9214_s5 + $0x468] sm:$0xff] }
 0x347   :  { %3799 = vmatpush.msra.mxu3 %v1583_v56  ;;  %3814 = vmatpush.msrb.mxu0 %v1604_v3  ;;  %v3125_v30 = vadd.f32 %v3124_v32, %v3105_v37  ;;  %v1624_v56 = vld [vmem:[%s9214_s5 + $0x460] sm:$0xff]  ;;  %v2188_v3 = vperm.slane %v8520_v24, 5  ;;  %v1622_v24 = vld [vmem:[%s9214_s5 + $0x450] sm:$0xff] }
 0x348   :  { %3696 = vmatpush.msra.mxu2 %v1506_v18  ;;  %3755 = vmatpush.msra.mxu1 %v1555_v34  ;;  %v2191_v18 = vperm.slane %v8983_v11, 0  ;;  %v1623_v34 = vld [vmem:[%s9214_s5 + $0x458] sm:$0xff]  ;;  %v1572_v26 = vld [vmem:[%s9214_s5 + $0x2c0] sm:$0xff]  ;;  %v1658_v32 = vld [vmem:[%s9214_s5 + $0x570] sm:$0xff] }
 0x349   :  { %3800 = vmatpush.msra.mxu3 %v1582_v21  ;;  %3815 = vmatpush.msrb.mxu0 %v1603_v22  ;;  %v3145_v45 = vadd.f32 %v3144_v44, %v3125_v30  ;;  %v2825_v21 = vadd.f32 %v8699_v43, %v2188_v3  ;;  %v3204_v22 = vpop.f32.mrf.mxu2  ;;  %v1571_v43 = vld [vmem:[%s9214_s5 + $0x2b8] sm:$0xff]  ;;  %v1656_v30 = vld [vmem:[%s9214_s5 + $0x560] sm:$0xff] }
 0x34a   :  { %3697 = vmatpush.msra.mxu2 %v1505_v55  ;;  %3756 = vmatpush.msra.mxu1 %v1554_v28  ;;  %v3164_v54 = vpop.f32.mrf.mxu0  ;;  %v1659_v55 = vld [vmem:[%s9214_s5 + $0x578] sm:$0xff]  ;;  %v3185_v28 = vadd.f32 %v3184_v19, %v2191_v18  ;;  %v1645_v19 = vld [vmem:[%s9214_s5 + $0x508] sm:$0xff] }
 0x34b   :  { %3801 = vmatpush.msra.mxu3 %v1581_v10  ;;  %3816 = vmatpush.msrb.mxu0 %v1602_v35  ;;  %v3165_v1 = vadd.f32 %v3164_v54, %v3145_v45  ;;  %v2845_v7 = vadd.f32 %v8714_v47, %v2825_v21  ;;  %v1620_v35 = vld [vmem:[%s9214_s5 + $0x440] sm:$0xff]  ;;  %v1570_v47 = vld [vmem:[%s9214_s5 + $0x2b0] sm:$0xff]  ;;  %v1567_v44 = vld [vmem:[%s9214_s5 + $0x298] sm:$0xff] }
 0x34c   :  { %3698 = vmatpush.msra.mxu2 %v1504_v25  ;;  %3757 = vmatpush.msra.mxu1 %v1553_v13  ;;  %v3205_v10 = vadd.f32 %v3204_v22, %v3185_v28  ;;  %v1657_v25 = vld [vmem:[%s9214_s5 + $0x568] sm:$0xff]  ;;  %v1619_v13 = vld [vmem:[%s9214_s5 + $0x438] sm:$0xff]  ;;  %v1616_v45 = vld [vmem:[%s9214_s5 + $0x420] sm:$0xff]  ;;  %v2193_v28 = vperm.slane %v8983_v11, 2 }
 0x34d   :  { %3802 = vmatpush.msra.mxu3 %v1580_v27  ;;  %3817 = vmatpush.msrb.mxu0 %v1601_v31  ;;  %v3654_v2 = vmax.f32 %v3165_v1, 0.0  ;;  %v2865_v37 = vadd.f32 %v8723_v50, %v2845_v7  ;;  %v3224_v31 = vpop.f32.mrf.mxu3  ;;  %v1569_v50 = vld [vmem:[%s9214_s5 + $0x2a8] sm:$0xff]  ;;  %v1652_v54 = vld [vmem:[%s9214_s5 + $0x540] sm:$0xff]  ;;  %v1651_v1 = vld [vmem:[%s9214_s5 + $0x538] sm:$0xff] }
 0x34e   :  { %3803 = vmatmul.f32.vlgmr.msra.gmra.mxu3 %v3653_v52  ;;  %3699 = vmatpush.msra.mxu2 %v1503_v58  ;;  %v3225_v58 = vadd.f32 %v3224_v31, %v3205_v10  ;;  %v1655_v52 = vld [vmem:[%s9214_s5 + $0x558] sm:$0xff]  ;;  %v1644_v22 = vld [vmem:[%s9214_s5 + $0x500] sm:$0xff] }
 0x34f   :  { %3758 = vmatpush.msra.mxu1 %v1552_v41  ;;  %3818 = vmatpush.msrb.mxu0 %v1600_v42  ;;  %v2885_v27 = vadd.f32 %v8739_v63, %v2865_v37  ;;  %v1568_v63 = vld [vmem:[%s9214_s5 + $0x2a0] sm:$0xff]  ;;  %v1617_v41 = vld [vmem:[%s9214_s5 + $0x428] sm:$0xff]  ;;  %v1639_v18 = vld [vmem:[%s9214_s5 + $0x4d8] sm:$0xff] }
 0x350   :  { %3700 = vmatpush.msra.mxu2 %v1502_v33  ;;  %3867 = vmatpush.msrb.mxu3 %v1659_v55  ;;  %v1635_v10 = vld [vmem:[%s9214_s5 + $0x4b8] sm:$0xff] }
 0x351   :  { %3759 = vmatpush.msra.mxu1 %v1551_v23  ;;  %3819 = vmatpush.msrb.mxu0 %v1599_v15  ;;  %v2905_v42 = vadd.f32 %v8758_v8, %v2885_v27  ;;  %v1654_v23 = vld [vmem:[%s9214_s5 + $0x550] sm:$0xff] }
 0x352   :  { %3701 = vmatpush.msra.mxu2 %v1501_v39  ;;  %3868 = vmatpush.msrb.mxu3 %v1658_v32  ;;  %v3244_v33 = vpop.f32.mrf.mxu0  ;;  %v1566_v8 = vld [vmem:[%s9214_s5 + $0x290] sm:$0xff]  ;;  %v1653_v39 = vld [vmem:[%s9214_s5 + $0x548] sm:$0xff] }
 0x353   :  { %3760 = vmatpush.msra.mxu1 %v1550_v57  ;;  %3820 = vmatpush.msrb.mxu0 %v1598_v49  ;;  %v3245_v15 = vadd.f32 %v3244_v33, %v3225_v58  ;;  %v2925_v57 = vadd.f32 %v8772_v14, %v2905_v42  ;;  %v3264_v49 = vpop.f32.mrf.mxu1  ;;  %v1564_v14 = vld [vmem:[%s9214_s5 + $0x280] sm:$0xff] }
 0x354   :  { %3702 = vmatpush.msra.mxu2 %v1500_v48  ;;  %3869 = vmatpush.msrb.mxu3 %v1657_v25  ;;  %v3284_v48 = vpop.f32.mrf.mxu2  ;;  %v1634_v25 = vld [vmem:[%s9214_s5 + $0x4b0] sm:$0xff] }
 0x355   :  { %3761 = vmatpush.msra.mxu1 %v1549_v29  ;;  %3821 = vmatpush.msrb.mxu0 %v1597_v60  ;;  %v3265_v29 = vadd.f32 %v3264_v49, %v3245_v15  ;;  %v1614_v60 = vld [vmem:[%s9214_s5 + $0x410] sm:$0xff]  ;;  %v1628_v15 = vld [vmem:[%s9214_s5 + $0x480] sm:$0xff] }
 0x356   :  { %3703 = vmatmul.f32.vlgmr.msra.gmra.mxu2 %v3648_v61  ;;  %3870 = vmatpush.msrb.mxu3 %v1656_v30  ;;  %v1632_v30 = vld [vmem:[%s9214_s5 + $0x4a0] sm:$0xff] }
 0x357   :  { %3767 = vmatpush.msrb.mxu2 %v1579_v38  ;;  %3762 = vmatpush.msra.mxu1 %v1548_v62  ;;  %v3285_v61 = vadd.f32 %v3284_v48, %v3265_v29  ;;  %v1613_v38 = vld [vmem:[%s9214_s5 + $0x408] sm:$0xff]  ;;  %v3652_v62 = vmax.f32 %v2925_v57, 0.0  ;;  %v1663_v48 = vld [vmem:[%s9214_s5 + $0x598] sm:$0xff]  ;;  %v1660_v29 = vld [vmem:[%s9214_s5 + $0x580] sm:$0xff] }
 0x358   :  { %3822 = vmatpush.msrb.mxu0 %v1596_v51  ;;  %3763 = vmatmul.f32.vlgmr.msra.gmra.mxu1 %v3651_v0  ;;  %v1643_v51 = vld [vmem:[%s9214_s5 + $0x4f8] sm:$0xff]  ;;  %v1650_v0 = vld [vmem:[%s9214_s5 + $0x530] sm:$0xff] }
 0x359   :  { %3768 = vmatpush.msrb.mxu2 %v1578_v9  ;;  %3823 = vmatmul.f32.vlgmr.msrb.gmra.mxu0 %v3654_v2  ;;  %v1612_v9 = vld [vmem:[%s9214_s5 + $0x400] sm:$0xff]  ;;  %v1642_v2 = vld [vmem:[%s9214_s5 + $0x4f0] sm:$0xff] }
 0x35a   :  { %3827 = vmatpush.msrb.mxu1 %v1627_v16  ;;  %3871 = vmatpush.msrb.mxu3 %v1655_v52  ;;  %v1649_v16 = vld [vmem:[%s9214_s5 + $0x528] sm:$0xff]  ;;  %v3324_v21 = vpop.f32.mrf.mxu0  ;;  %v1631_v52 = vld [vmem:[%s9214_s5 + $0x498] sm:$0xff] }
 0x35b   :  { %3769 = vmatpush.msrb.mxu2 %v1577_v4  ;;  %v3655_v4 = vmax.f32 %v3285_v61, 0.0  ;;  %v3344_v3 = vpop.f32.mrf.mxu1  ;;  %3899 = vmatpush.msra.mxu0 %v1663_v48 }
 0x35c   :  { %3828 = vmatpush.msrb.mxu1 %v1626_v5  ;;  %3872 = vmatpush.msrb.mxu3 %v1654_v23  ;;  %v1648_v5 = vld [vmem:[%s9214_s5 + $0x520] sm:$0xff] }
 0x35d   :  { %3770 = vmatpush.msrb.mxu2 %v1576_v6  ;;  %v1641_v6 = vld [vmem:[%s9214_s5 + $0x4e8] sm:$0xff] }
 0x35e   :  { %3829 = vmatpush.msrb.mxu1 %v1625_v59  ;;  %3873 = vmatpush.msrb.mxu3 %v1653_v39  ;;  %v1647_v59 = vld [vmem:[%s9214_s5 + $0x518] sm:$0xff] }
 0x35f   :  { %3771 = vmatpush.msrb.mxu2 %v1575_v36  ;;  %v1640_v36 = vld [vmem:[%s9214_s5 + $0x4e0] sm:$0xff] }
 0x360   :  { %3830 = vmatpush.msrb.mxu1 %v1624_v56  ;;  %3874 = vmatpush.msrb.mxu3 %v1652_v54  ;;  %v3304_v56 = vpop.f32.mrf.mxu3  ;;  %v1661_v54 = vld [vmem:[%s9214_s5 + $0x588] sm:$0xff] }
 0x361   :  { %3772 = vmatpush.msrb.mxu2 %v1574_v17  ;;  %v1646_v17 = vld [vmem:[%s9214_s5 + $0x510] sm:$0xff] }
 0x362   :  { %3831 = vmatpush.msrb.mxu1 %v1623_v34  ;;  %3875 = vmatpush.msrb.mxu3 %v1651_v1  ;;  %v3364_v34 = vpop.f32.mrf.mxu2 }
 0x363   :  { %3773 = vmatpush.msrb.mxu2 %v1573_v20  ;;  %v2192_v20 = vperm.slane %v8983_v11, 1 }
 0x364   :  { %3832 = vmatpush.msrb.mxu1 %v1622_v24  ;;  %3876 = vmatpush.msrb.mxu3 %v1650_v0  ;;  %v1638_v24 = vld [vmem:[%s9214_s5 + $0x4d0] sm:$0xff] }
 0x365   :  { %3774 = vmatpush.msrb.mxu2 %v1572_v26  ;;  %v1637_v26 = vld [vmem:[%s9214_s5 + $0x4c8] sm:$0xff]  ;;  %v3305_v55 = vadd.f32 %v3304_v56, %v2192_v20  ;;  %v1667_v56 = vld [vmem:[%s9217_s7 + $0x18] sm:$0xff]  ;;  %v1666_v20 = vld [vmem:[%s9217_s7 + $0x10] sm:$0xff] }
 0x366   :  { %3833 = vmatpush.msrb.mxu1 %v1621_v12  ;;  %3877 = vmatpush.msrb.mxu3 %v1649_v16  ;;  %v1636_v12 = vld [vmem:[%s9214_s5 + $0x4c0] sm:$0xff] }
 0x367   :  { %3775 = vmatpush.msrb.mxu2 %v1571_v43  ;;  %v3424_v43 = vpop.f32.mrf.mxu1  ;;  %v3325_v32 = vadd.f32 %v3324_v21, %v3305_v55 }
 0x368   :  { %3834 = vmatpush.msrb.mxu1 %v1620_v35  ;;  %3878 = vmatpush.msrb.mxu3 %v1648_v5  ;;  %v3384_v7 = vpop.f32.mrf.mxu3 }
 0x369   :  { %3776 = vmatpush.msrb.mxu2 %v1570_v47  ;;  %v3345_v37 = vadd.f32 %v3344_v3, %v3325_v32  ;;  %v3425_v47 = vadd.f32 %v3424_v43, %v2193_v28  ;;  %v3956_v3 = vld [vmem:[%s9215_s6] ss:$0 sm:$0xff] }
 0x36a   :  { %3835 = vmatpush.msrb.mxu1 %v1619_v13  ;;  %3879 = vmatpush.msrb.mxu3 %v1647_v59  ;;  %v3404_v13 = vpop.f32.mrf.mxu0  ;;  %v1670_v59 = vld [vmem:[%s9217_s7 + $0x30] sm:$0x3] }
 0x36b   :  { %3777 = vmatpush.msrb.mxu2 %v1569_v50  ;;  %v3365_v27 = vadd.f32 %v3364_v34, %v3345_v37  ;;  %v1633_v50 = vld [vmem:[%s9214_s5 + $0x4a8] sm:$0xff] }
 0x36c   :  { %3836 = vmatpush.msrb.mxu1 %v1618_v40  ;;  %3880 = vmatpush.msrb.mxu3 %v1646_v17 }
 0x36d   :  { %3778 = vmatpush.msrb.mxu2 %v1568_v63  ;;  %v3385_v40 = vadd.f32 %v3384_v7, %v3365_v27 }
 0x36e   :  { %3837 = vmatpush.msrb.mxu1 %v1617_v41  ;;  %3881 = vmatpush.msrb.mxu3 %v1645_v19  ;;  %v1630_v41 = vld [vmem:[%s9214_s5 + $0x490] sm:$0xff] }
 0x36f   :  { %3779 = vmatpush.msrb.mxu2 %v1567_v44  ;;  %v3405_v33 = vadd.f32 %v3404_v13, %v3385_v40  ;;  %v1629_v44 = vld [vmem:[%s9214_s5 + $0x488] sm:$0xff] }
 0x370   :  { %3838 = vmatpush.msrb.mxu1 %v1616_v45  ;;  %3882 = vmatpush.msrb.mxu3 %v1644_v22  ;;  %v3464_v58 = vpop.f32.mrf.mxu3  ;;  %v3504_v45 = vpop.f32.mrf.mxu1 }
 0x371   :  { %3780 = vmatpush.msrb.mxu2 %v1566_v8  ;;  %v3656_v8 = vmax.f32 %v3405_v33, 0.0 }
 0x372   :  { %3839 = vmatpush.msrb.mxu1 %v1615_v46  ;;  %v3484_v42 = vpop.f32.mrf.mxu0 }
 0x373   :  { %3781 = vmatpush.msrb.mxu2 %v1565_v53  ;;  %v3444_v35 = vpop.f32.mrf.mxu2  ;;  %v1662_v53 = vld [vmem:[%s9214_s5 + $0x590] sm:$0xff] }
 0x374   :  { %3840 = vmatpush.msrb.mxu1 %v1614_v60  ;;  %v3445_v31 = vadd.f32 %v3444_v35, %v3425_v47  ;;  %3900 = vmatpush.msra.mxu0 %v1662_v53  ;;  %v2194_v60 = vperm.slane %v8983_v11, 3  ;;  %v1669_v11 = vld [vmem:[%s9217_s7 + $0x28] sm:$0xff] }
 0x375   :  { %3782 = vmatpush.msrb.mxu2 %v1564_v14 }
 0x376   :  { %3841 = vmatpush.msrb.mxu1 %v1613_v38  ;;  %3783 = vmatmul.f32.vlgmr.msrb.gmra.mxu2 %v3652_v62  ;;  %v3465_v63 = vadd.f32 %v3464_v58, %v3445_v31 }
 0x377   :  { %3847 = vmatpush.msra.mxu2 %v1643_v51  ;;  %3901 = vmatpush.msra.mxu0 %v1661_v54 }
 0x378   :  { %3842 = vmatpush.msrb.mxu1 %v1612_v9  ;;  %v3485_v23 = vadd.f32 %v3484_v42, %v3465_v63  ;;  %v3544_v14 = vpop.f32.mrf.mxu3 }
 0x379   :  { %3843 = vmatmul.f32.vlgmr.msrb.gmra.mxu1 %v3655_v4  ;;  %3848 = vmatpush.msra.mxu2 %v1642_v2  ;;  %v3545_v61 = vadd.f32 %v3544_v14, %v2194_v60 }
 0x37a   :  { %v3505_v39 = vadd.f32 %v3504_v45, %v3485_v23  ;;  %3902 = vmatpush.msra.mxu0 %v1660_v29  ;;  %v3564_v1 = vpop.f32.mrf.mxu0 }
 0x37b   :  { %3849 = vmatpush.msra.mxu2 %v1641_v6  ;;  %v3565_v62 = vadd.f32 %v3564_v1, %v3545_v61 }
 0x37c   :  { %3954 = vmatpush.msk.msrb.mxu0 %vm3916_vm2, %v1670_v59 }
 0x37d   :  { %3850 = vmatpush.msra.mxu2 %v1640_v36  ;;  %v1668_v36 = vld [vmem:[%s9217_s7 + $0x20] sm:$0xff] }
 0x37e   :  { %3930 = vmatpush.msrb.mxu0 %v1669_v11 }
 0x37f   :  { %3851 = vmatpush.msra.mxu2 %v1639_v18 }
 0x380   :  { %3931 = vmatpush.msrb.mxu0 %v1668_v36 }
 0x381   :  { %3852 = vmatpush.msra.mxu2 %v1638_v24  ;;  %v1665_v24 = vld [vmem:[%s9217_s7 + $0x8] sm:$0xff] }
 0x382   :  { %3932 = vmatpush.msrb.mxu0 %v1667_v56 }
 0x383   :  { %3853 = vmatpush.msra.mxu2 %v1637_v26  ;;  %v1664_v26 = vld [vmem:[%s9217_s7] sm:$0xff] }
 0x384   :  { %3933 = vmatpush.msrb.mxu0 %v1666_v20 }
 0x385   :  { %3854 = vmatpush.msra.mxu2 %v1636_v12 }
 0x386   :  { %3934 = vmatpush.msrb.mxu0 %v1665_v24 }
 0x387   :  { %3855 = vmatpush.msra.mxu2 %v1635_v10 }
 0x388   :  { %3935 = vmatpush.msrb.mxu0 %v1664_v26 }
 0x389   :  { %3856 = vmatpush.msra.mxu2 %v1634_v25 }
 0x38b   :  { %3857 = vmatpush.msra.mxu2 %v1633_v50 }
 0x38d   :  { %3858 = vmatpush.msra.mxu2 %v1632_v30  ;;  %v3624_v2 = vpop.f32.mrf.mxu3 }
 0x38f   :  { %3859 = vmatpush.msra.mxu2 %v1631_v52  ;;  %v3957_v52 = vld [vmem:[%s9216_s8] ss:$0 sm:$0xff] }
 0x391   :  { %3860 = vmatpush.msra.mxu2 %v1630_v41 }
 0x392   :  { %v3584_v38 = vpop.f32.mrf.mxu1 }
 0x393   :  { %3861 = vmatpush.msra.mxu2 %v1629_v44  ;;  %v3585_v51 = vadd.f32 %v3584_v38, %v3565_v62  ;;  %v3644_v4 = vpop.f32.mrf.mxu0 }
 0x395   :  { %3862 = vmatpush.msra.mxu2 %v1628_v15  ;;  %v3524_v46 = vpop.f32.mrf.mxu2 }
 0x396   :  { %3863 = vmatmul.f32.vlgmr.msra.gmra.mxu2 %v3656_v8  ;;  %v3525_v57 = vadd.f32 %v3524_v46, %v3505_v39 }
 0x398   :  { %v3657_v49 = vmax.f32 %v3525_v57, 0.0 }
 0x39a   :  { %3883 = vmatmul.f32.vlgmr.msrb.gmra.mxu3 %v3657_v49 }
 0x3af   :  { %v3724_v21 = vpop.f32.mrf.mxu3 }
 0x3b4   :  { %v3684_v17 = vpop.f32.mrf.mxu1 }
 0x3b5   :  { %v3685_v34 = vadd.f32 %v3956_v3, %v3684_v17  ;;  %v3744_v55 = vpop.f32.mrf.mxu0 }
 0x3b7   :  { %v3604_v0 = vpop.f32.mrf.mxu2 }
 0x3b8   :  { %v3605_v9 = vadd.f32 %v3604_v0, %v3585_v51 }
 0x3ba   :  { %v3625_v16 = vadd.f32 %v3624_v2, %v3605_v9 }
 0x3bc   :  { %v3645_v5 = vadd.f32 %v3644_v4, %v3625_v16 }
 0x3be   :  { %v3658_v6 = vmax.f32 %v3645_v5, 0.0 }
 0x3c0   :  { %3953 = vmatmul.msk.f32.vlgmr.msra.gmra.mxu0 %vm3663_vm1, %v3658_v6 }
 0x3d1   :  { %v3804_v10 = vpop.f32.mrf.mxu3 }
 0x3d5   :  { %v3764_v12 = vpop.f32.mrf.mxu1 }
 0x3d6   :  { %v3824_v37 = vpop.f32.mrf.mxu0 }
 0x3d9   :  { %v3704_v18 = vpop.f32.mrf.mxu2 }
 0x3da   :  { %v3705_v19 = vadd.f32 %v3704_v18, %v3685_v34 }
 0x3dc   :  { %v3725_v22 = vadd.f32 %v3724_v21, %v3705_v19 }
 0x3de   :  { %v3745_v28 = vadd.f32 %v3744_v55, %v3725_v22 }
 0x3e0   :  { %v3765_v43 = vadd.f32 %v3764_v12, %v3745_v28 }
 0x3f6   :  { %v3844_v25 = vpop.f32.mrf.mxu1 }
 0x3f9   :  { %v3784_v7 = vpop.f32.mrf.mxu2 }
 0x3fa   :  { %v3785_v32 = vadd.f32 %v3784_v7, %v3765_v43 }
 0x3fc   :  { %v3805_v35 = vadd.f32 %v3804_v10, %v3785_v32 }
 0x3fe   :  { %v3825_v47 = vadd.f32 %v3824_v37, %v3805_v35 }
 0x400   :  { %v3845_v27 = vadd.f32 %v3844_v25, %v3825_v47 }
 0x419   :  { %v3864_v13 = vpop.f32.mrf.mxu2 }
 0x41a   :  { %v3865_v50 = vadd.f32 %v3864_v13, %v3845_v27 }
 0x41d   :  { %v3884_v31 = vpop.f32.mrf.mxu3 }
 0x41e   :  { %v3885_v30 = vadd.f32 %v3884_v31, %v3865_v50 }
 0x43d   :  { %v3904_v58 = vpop.f32.mrf.mxu0 }
 0x43e   :  { %v3905_v40 = vadd.f32 %v3904_v58, %v3885_v30 }
 0x440   :  { %v3907_v63 = vmax.f32 %v3905_v40, 0.0 }
 0x442   :  { %3955 = vmatmul.msk.f32.vlgmr.msrb.gmra.mxu0 %vm3912_vm3, %v3907_v63 }
 0x4bf   :  { %v3937_v41 = vpop.f32.mrf.mxu0 }
 0x4c0   :  { %v3938_v42 = vadd.f32 %v3957_v52, %v3937_v41 }
 0x4c2   :  { %v3940_v33 = vmax.f32 %v3938_v42, 0.0 }
 0x4c4   :  { %3942 = vst.msk [vmem:[%s9218_s9] sm:$0xff] %vm3941_vm4, %v3940_v33 }

</bundles_post_ra>
